<compile_context>
chip_gen: v6e
topology: v6e:2x2x1
jax: 0.10.0
libtpu: 0.0.40
codegen_flags: <defaults>
</compile_context>

<pallas_src>
import jax
import jax.numpy as jnp
from jax.experimental import pallas as pl
from jax.experimental.pallas import tpu as pltpu

D_IN = 512
D_HID = 256
TM_MAX = 512  # row tile upper bound (instances per grid step)


def _round_up(x: int, m: int) -> int:
    return (x + m - 1) // m * m


def attention_net_kernel(x_ref, w12_ref, b12_ref, wf_ref, bf_ref, out_ref):
    # Single fused (TM, 512) @ (512, 512) matmul on the MXU, bf16 in / f32 acc.
    x = x_ref[...].astype(jnp.bfloat16)                       # (TM, 512)
    h = jnp.dot(x, w12_ref[...], preferred_element_type=jnp.float32)
    h = h + b12_ref[...]                                      # (TM, 512) f32

    # Branch 1: tanh on columns [0:256].
    h1 = jnp.tanh(h[:, :D_HID])                               # (TM, 256)
    # Branch 2: sigmoid via tanh (single EUP op per element).
    h2 = 0.5 * (jnp.tanh(0.5 * h[:, D_HID:]) + 1.0)           # (TM, 256)

    # Gated product, then 256 -> 1 projection on VPU (mul) + XLU (lane reduce).
    g = h1 * h2                                               # (TM, 256)
    a = jnp.sum(g * wf_ref[...], axis=-1, keepdims=True)      # (TM, 1)
    a = a + bf_ref[0, 0]                                      # SMEM scalar bias
    out_ref[...] = jnp.maximum(a, 0.0).astype(out_ref.dtype)


def attention_net_forward(features, params, tm_max=TM_MAX):
    """features: (N, 512) float32 (or bfloat16); returns (N, 1) float32."""
    w1, b1, w2, b2, wf, bf = params
    n = features.shape[0]

    # Tile choice: big tiles for MXU/pipeline efficiency, but don't over-pad
    # tiny bags.  For n > tm_max the grid automatically has >= 2 steps, which
    # keeps both v7x TensorCores busy via the "parallel" grid axis.
    tm = min(tm_max, _round_up(n, 128))
    n_pad = _round_up(n, tm)
    if n_pad != n:
        features = jnp.pad(features, ((0, n_pad - n), (0, 0)))
    grid = (n_pad // tm,)

    # One-time parameter fusion / casts (weights are tiny and stay resident).
    w12 = jnp.concatenate([w1, w2], axis=1).astype(jnp.bfloat16)  # (512, 512)
    b12 = jnp.concatenate([b1, b2], axis=1).astype(jnp.float32)   # (1, 512)
    wf_row = wf.reshape(1, D_HID).astype(jnp.float32)             # (1, 256)
    bf_s = bf.reshape(1, 1).astype(jnp.float32)                   # (1, 1) SMEM

    resident = lambda i: (0, 0)  # weights/biases: same block every step

    out = pl.pallas_call(
        attention_net_kernel,
        out_shape=jax.ShapeDtypeStruct((n_pad, 1), jnp.float32),
        grid_spec=pltpu.PrefetchScalarGridSpec(
            num_scalar_prefetch=0,
            grid=grid,
            in_specs=[
                pl.BlockSpec((tm, D_IN), lambda i: (i, 0)),       # feature tile
                pl.BlockSpec((D_IN, 2 * D_HID), resident),        # W1|W2 fused
                pl.BlockSpec((1, 2 * D_HID), resident),           # b1|b2 fused
                pl.BlockSpec((1, D_HID), resident),               # Wf as a row
                pl.BlockSpec(memory_space=pltpu.MemorySpace.SMEM),  # bf scalar
            ],
            out_specs=pl.BlockSpec((tm, 1), lambda i: (i, 0)),
        ),
        compiler_params=pltpu.CompilerParams(
            dimension_semantics=("parallel",)),
    )(features, w12, b12, wf_row, bf_s)

    return out[:n]


def init_params(key):
    """Deterministic init mimicking PyTorch Linear default: U(-1/sqrt(fan_in), +)."""
    k1, k2, k3, k4, k5, k6 = jax.random.split(key, 6)
    s1 = 1.0 / jnp.sqrt(jnp.float32(D_IN))
    s2 = 1.0 / jnp.sqrt(jnp.float32(D_HID))
    w1 = jax.random.uniform(k1, (D_IN, D_HID), jnp.float32, -s1, s1)
    b1 = jax.random.uniform(k2, (1, D_HID), jnp.float32, -s1, s1)
    w2 = jax.random.uniform(k3, (D_IN, D_HID), jnp.float32, -s1, s1)
    b2 = jax.random.uniform(k4, (1, D_HID), jnp.float32, -s1, s1)
    wf = jax.random.uniform(k5, (D_HID, 1), jnp.float32, -s2, s2)
    bf = jax.random.uniform(k6, (1, 1), jnp.float32, -s2, s2)
    return (w1, b1, w2, b2, wf, bf)


def reference_forward(features, params):
    """Plain-JAX f32 reference of the PyTorch forward (eval mode)."""
    w1, b1, w2, b2, wf, bf = params
    a1 = jnp.tanh(features @ w1 + b1)
    a2 = jax.nn.sigmoid(features @ w2 + b2)
    return jnp.maximum((a1 * a2) @ wf + bf, 0.0)


if __name__ == "__main__":
    key = jax.random.PRNGKey(0)
    kx, kp = jax.random.split(key)

    N = 300  # bag size; deliberately not a tile multiple to exercise padding
    features = jax.random.normal(kx, (N, D_IN), dtype=jnp.float32)
    params = init_params(kp)

    out = jax.block_until_ready(attention_net_forward(features, params))
    ref = reference_forward(features, params)

    assert out.shape == (N, 1)
    # bf16 matmul operands -> relaxed tolerance vs. the pure-f32 reference.
    assert jnp.allclose(out, ref, atol=2e-2, rtol=2e-2), "mismatch vs reference"

    print("KERNEL_OK")
</pallas_src>

<mosaic_0001>
module attributes {stable_mosaic.version = 11 : i64} {
  func.func @attention_net_kernel(%arg0: i32, %arg1: memref<384x512xf32, #tpu.memory_space<vmem>>, %arg2: memref<512x512xbf16, #tpu.memory_space<vmem>>, %arg3: memref<1x512xf32, #tpu.memory_space<vmem>>, %arg4: memref<1x256xf32, #tpu.memory_space<vmem>>, %arg5: memref<1x1xf32, #tpu.memory_space<smem>>, %arg6: memref<384x1xf32, #tpu.memory_space<vmem>>) attributes {dimension_semantics = [#tpu.dimension_semantics<parallel>], iteration_bounds = array<i64: 1>, scalar_prefetch = 0 : i64, scratch_operands = 0 : i64, tpu.core_type = #tpu.core_type<tc>, window_params = [{transform_indices = @transform_0, window_bounds = array<i64: 384, 512>}, {pipeline_mode = #tpu.pipeline_mode<synchronous>, transform_indices = @transform_1, window_bounds = array<i64: 512, 512>}, {pipeline_mode = #tpu.pipeline_mode<synchronous>, transform_indices = @transform_2, window_bounds = array<i64: 1, 512>}, {pipeline_mode = #tpu.pipeline_mode<synchronous>, transform_indices = @transform_3, window_bounds = array<i64: 1, 256>}, {transform_indices = @transform_4, window_bounds = array<i64: 1, 1>}, {transform_indices = @transform_5, window_bounds = array<i64: 384, 1>}]} {
    %c0 = arith.constant 0 : index
    %c0_0 = arith.constant 0 : index
    %0 = vector.load %arg1[%c0, %c0_0] : memref<384x512xf32, #tpu.memory_space<vmem>>, vector<384x512xf32>
    %1 = arith.truncf %0 : vector<384x512xf32> to vector<384x512xbf16>
    %c0_1 = arith.constant 0 : index
    %c0_2 = arith.constant 0 : index
    %2 = vector.load %arg2[%c0_1, %c0_2] : memref<512x512xbf16, #tpu.memory_space<vmem>>, vector<512x512xbf16>
    %cst = arith.constant dense<0.000000e+00> : vector<384x512xf32>
    %3 = tpu.matmul %1, %2, %cst {dimension_numbers = #tpu.dot_dimension_numbers<[1], [0], [0], [1], [0, 0, 1, 1], [], []>} : vector<384x512xbf16>, vector<512x512xbf16>, vector<384x512xf32> -> vector<384x512xf32>
    %c0_3 = arith.constant 0 : index
    %c0_4 = arith.constant 0 : index
    %4 = vector.load %arg3[%c0_3, %c0_4] : memref<1x512xf32, #tpu.memory_space<vmem>>, vector<1x512xf32>
    %5 = vector.broadcast %4 : vector<1x512xf32> to vector<384x512xf32>
    %6 = arith.addf %3, %5 : vector<384x512xf32>
    %7 = vector.extract_strided_slice %6 {offsets = [0, 0], sizes = [384, 256], strides = [1, 1]} : vector<384x512xf32> to vector<384x256xf32>
    %8 = math.tanh %7 : vector<384x256xf32>
    %9 = vector.extract_strided_slice %6 {offsets = [0, 256], sizes = [384, 256], strides = [1, 1]} : vector<384x512xf32> to vector<384x256xf32>
    %cst_5 = arith.constant 5.000000e-01 : f32
    %10 = vector.broadcast %cst_5 : f32 to vector<384x256xf32>
    %11 = arith.mulf %10, %9 : vector<384x256xf32>
    %12 = math.tanh %11 : vector<384x256xf32>
    %cst_6 = arith.constant 1.000000e+00 : f32
    %13 = vector.broadcast %cst_6 : f32 to vector<384x256xf32>
    %14 = arith.addf %12, %13 : vector<384x256xf32>
    %cst_7 = arith.constant 5.000000e-01 : f32
    %15 = vector.broadcast %cst_7 : f32 to vector<384x256xf32>
    %16 = arith.mulf %15, %14 : vector<384x256xf32>
    %17 = arith.mulf %8, %16 : vector<384x256xf32>
    %c0_8 = arith.constant 0 : index
    %c0_9 = arith.constant 0 : index
    %18 = vector.load %arg4[%c0_8, %c0_9] : memref<1x256xf32, #tpu.memory_space<vmem>>, vector<1x256xf32>
    %19 = vector.broadcast %18 : vector<1x256xf32> to vector<384x256xf32>
    %20 = arith.mulf %17, %19 : vector<384x256xf32>
    %cst_10 = arith.constant dense<0.000000e+00> : vector<384xf32>
    %21 = vector.multi_reduction <add>, %20, %cst_10 [1] : vector<384x256xf32> to vector<384xf32>
    %22 = vector.shape_cast %21 : vector<384xf32> to vector<384x1xf32>
    %c0_11 = arith.constant 0 : index
    %c0_12 = arith.constant 0 : index
    %23 = memref.load %arg5[%c0_11, %c0_12] : memref<1x1xf32, #tpu.memory_space<smem>>
    %24 = vector.broadcast %23 : f32 to vector<384x1xf32>
    %25 = arith.addf %22, %24 : vector<384x1xf32>
    %cst_13 = arith.constant 0.000000e+00 : f32
    %26 = vector.broadcast %cst_13 : f32 to vector<384x1xf32>
    %27 = arith.maximumf %25, %26 : vector<384x1xf32>
    %c0_14 = arith.constant 0 : index
    %c0_15 = arith.constant 0 : index
    %28 = vector.load %arg6[%c0_14, %c0_15] : memref<384x1xf32, #tpu.memory_space<vmem>>, vector<384x1xf32>
    tpu.vector_store %arg6[%c0_14, %c0_15], %27 {strides = array<i32>} : memref<384x1xf32, #tpu.memory_space<vmem>>, vector<384x1xf32>,
    return
  }
  func.func @transform_0(%arg0: i32) -> (i32, i32) {
    %c0_i32 = arith.constant 0 : i32
    %c0_i32_0 = arith.constant 0 : i32
    return %arg0, %c0_i32 : i32, i32
  }
  func.func @transform_1(%arg0: i32) -> (i32, i32) {
    %c0_i32 = arith.constant 0 : i32
    %c0_i32_0 = arith.constant 0 : i32
    %c0_i32_1 = arith.constant 0 : i32
    return %c0_i32, %c0_i32_0 : i32, i32
  }
  func.func @transform_2(%arg0: i32) -> (i32, i32) {
    %c0_i32 = arith.constant 0 : i32
    %c0_i32_0 = arith.constant 0 : i32
    %c0_i32_1 = arith.constant 0 : i32
    return %c0_i32, %c0_i32_0 : i32, i32
  }
  func.func @transform_3(%arg0: i32) -> (i32, i32) {
    %c0_i32 = arith.constant 0 : i32
    %c0_i32_0 = arith.constant 0 : i32
    %c0_i32_1 = arith.constant 0 : i32
    return %c0_i32, %c0_i32_0 : i32, i32
  }
  func.func @transform_4(%arg0: i32) -> (i32, i32) {
    %c0_i32 = arith.constant 0 : i32
    %c0_i32_0 = arith.constant 0 : i32
    %c0_i32_1 = arith.constant 0 : i32
    return %c0_i32, %c0_i32_0 : i32, i32
  }
  func.func @transform_5(%arg0: i32) -> (i32, i32) {
    %c0_i32 = arith.constant 0 : i32
    %c0_i32_0 = arith.constant 0 : i32
    return %arg0, %c0_i32 : i32, i32
  }
}

</mosaic_0001>

<bundles_post_ra>
// kernel: tpu_custom_call.1
= control target key start
LH: loop header
LB: loop body
LE: loop exit
PB: predicated region body
PF: predicated region fallthrough
CT: control target
= control target key end

     0   :  { %11 = vsyncpa [#allocation4], 0  ;;  %s5693_s0 = inlined_call_operand.hbm [shape: f32[384,512], index: 0, kind: input, shape index: {}]   ;;  %s5694_s1 = inlined_call_operand.hbm [shape: bf16[512,512], index: 1, kind: input, shape index: {}]   ;;  %s5695_s2 = inlined_call_operand.vmem [shape: f32[1,512], index: 2, kind: input, shape index: {}]   ;;  %s5696_s3 = inlined_call_operand.vmem [shape: f32[1,256], index: 3, kind: input, shape index: {}]   ;;  %s5697_s4 = inlined_call_operand.<no memory space> [shape: f32[1,1], index: 4, kind: input, shape index: {}]   ;;  %s5698_s5 = inlined_call_operand.vmem [shape: f32[384,1], index: 5, kind: output, shape index: {}]  }
   0x1   :  { %12 = vsyncpa [#allocation6], 0  ;;  %s3955_s18 = smov [#allocation3]  }
   0x2   :  { %s18_s19 = sshll.u32 %s3955_s18, 4  ;;  %s19_s19 = int_to_ptr.vmem [resolvable:$true] %s18_s19 }
   0x3   :  { %s3919_s20 = scalar_lea.vmem %s19_s19, 24576  ;;  %p3924_p1 = scmp.lt.s32.totalorder %s19_s19, %s19_s19 }
   0x4   :  { %p3920_p0 = scmp.ne.s32.totalorder %s19_s19, %s3919_s20  ;;  %p3925_p2 = scmp.lt.s32.totalorder %s3919_s20, %s3919_s20 }
   0x6   :  { %p3926_p3 = por %p3925_p2, %p3924_p1 }
   0x8   :  { %p3927_p4 = pnand %p3926_p3, %p3920_p0 }
   0xa   :  { %3930 = shalt.err (!%p3927_p4)
}
   0xb   :  { %s3956_s21 = smov 512   ;;  %s3957_s22 = smov 32  }
   0xc   :  { %24 = dma.hbm_to_vmem [thread:$0]  %s5693_s0, 24576, %s19_s19, [#allocation4], %s3956_s21, %s3956_s21, %s3957_s22  }
   0xd   :  { %s3958_s25 = smov [#allocation5]  }
   0xe   :  { %s30_s26 = sshll.u32 %s3958_s25, 4  ;;  %s31_s26 = int_to_ptr.vmem [resolvable:$true] %s30_s26 }
   0xf   :  { %s3939_s27 = scalar_lea.vmem %s31_s26, 16384  ;;  %p3944_p6 = scmp.lt.s32.totalorder %s31_s26, %s31_s26 }
  0x10   :  { %p3940_p5 = scmp.ne.s32.totalorder %s31_s26, %s3939_s27  ;;  %p3945_p7 = scmp.lt.s32.totalorder %s3939_s27, %s3939_s27 }
  0x12   :  { %p3946_p8 = por %p3945_p7, %p3944_p6 }
  0x14   :  { %p3947_p9 = pnand %p3946_p8, %p3940_p5 }
  0x16   :  { %3950 = shalt.err (!%p3947_p9)
}
  0x17   :  { %s3959_s28 = smov 256   ;;  %s3960_s29 = smov 16  }
  0x18   :  { %36 = dma.hbm_to_vmem [thread:$0]  %s5694_s1, 16384, %s31_s26, [#allocation6], %s3959_s28, %s3959_s28, %s3960_s29  }
  0x19   :  { %3951 = dma.done.wait [#allocation4], 24576  }
  0x1a   :  { %3952 = vsyncadd [#allocation4], 4294942720 }
  0x1b   :  { %3953 = dma.done.wait [#allocation6], 16384  }
  0x1c   :  { %3954 = vsyncadd [#allocation6], 4294950912  ;;  %v3334_v0 = vld [vmem:[#allocation5 + $0xe4] ss:$16 sps:$4 sm:$0xff]   ;;  %v3338_v2 = vld [vmem:[#allocation5 + $0xe0] ss:$16 sps:$4 sm:$0xff]  }
  0x1d   :  { %v3336_v1 = vld [vmem:[#allocation5 + $0x2e4] ss:$16 sps:$4 sm:$0xff]   ;;  %1127 = vmatprep.subr.bf16.mxu0 %v3334_v0  ;;  %v3339_v3 = vld [vmem:[#allocation5 + $0x2e0] ss:$16 sps:$4 sm:$0xff]   ;;  %v50_v46 = vld [vmem:[#allocation3 + $0x8] sm:$0xff]  ;;  %vm3145_vm0 = vcmask 7168  }
  0x1e   :  { %1400 = vmatprep.subr.bf16.mxu1 %v3336_v1  ;;  %v3340_v4 = vld [vmem:[#allocation5 + $0xc4] ss:$16 sps:$4 sm:$0xff]   ;;  %1128 = vmatpush1.bf16.msra.mxu0 %v3338_v2  ;;  %v3344_v6 = vld [vmem:[#allocation5 + $0xc0] ss:$16 sps:$4 sm:$0xff]   ;;  %v54_v47 = vld [vmem:[#allocation3 + $0x28] sm:$0xff] }
  0x1f   :  { %1401 = vmatpush1.bf16.msra.mxu1 %v3339_v3  ;;  %v3342_v5 = vld [vmem:[#allocation5 + $0x2c4] ss:$16 sps:$4 sm:$0xff]   ;;  %1129 = vmatprep.subr.bf16.mxu0 %v3340_v4  ;;  %v3345_v7 = vld [vmem:[#allocation5 + $0x2c0] ss:$16 sps:$4 sm:$0xff]   ;;  %v52_v48 = vld [vmem:[#allocation3 + $0x18] sm:$0xff]  ;;  %v3997_v53 = vpack.c.bf16 %v54_v47, %v50_v46 }
  0x20   :  { %1402 = vmatprep.subr.bf16.mxu1 %v3342_v5  ;;  %v3346_v8 = vld [vmem:[#allocation5 + $0xa4] ss:$16 sps:$4 sm:$0xff]   ;;  %v3350_v10 = vld [vmem:[#allocation5 + $0xa0] ss:$16 sps:$4 sm:$0xff]   ;;  %v56_v49 = vld [vmem:[#allocation3 + $0x38] sm:$0xff] }
  0x21   :  { %v3348_v9 = vld [vmem:[#allocation5 + $0x2a4] ss:$16 sps:$4 sm:$0xff]   ;;  %v3351_v11 = vld [vmem:[#allocation5 + $0x2a0] ss:$16 sps:$4 sm:$0xff]   ;;  %v3999_v54 = vpack.c.bf16 %v56_v49, %v52_v48  ;;  %1159 = vmatprep.mubr.bf16.mxu0 %v3997_v53  ;;  %v3453_v46 = vld [vmem:[#allocation5 + $0x28c] ss:$16 sps:$4 sm:$0xff]  }
  0x22   :  { %1130 = vmatpush1.bf16.msra.mxu0 %v3344_v6  ;;  %v3352_v12 = vld [vmem:[#allocation5 + $0x84] ss:$16 sps:$4 sm:$0xff]   ;;  %v3356_v14 = vld [vmem:[#allocation5 + $0x80] ss:$16 sps:$4 sm:$0xff]   ;;  %v74_v48 = vld [vmem:[#allocation3 + $0xc8] sm:$0xff] }
  0x23   :  { %1403 = vmatpush1.bf16.msra.mxu1 %v3345_v7  ;;  %1131 = vmatprep.subr.bf16.mxu0 %v3346_v8  ;;  %v3354_v13 = vld [vmem:[#allocation5 + $0x284] ss:$16 sps:$4 sm:$0xff]   ;;  %v3357_v15 = vld [vmem:[#allocation5 + $0x280] ss:$16 sps:$4 sm:$0xff]   ;;  %v78_v49 = vld [vmem:[#allocation3 + $0xe8] sm:$0xff] }
  0x24   :  { %1404 = vmatprep.subr.bf16.mxu1 %v3348_v9  ;;  %v3358_v16 = vld [vmem:[#allocation5 + $0x64] ss:$16 sps:$4 sm:$0xff]   ;;  %v3362_v18 = vld [vmem:[#allocation5 + $0x60] ss:$16 sps:$4 sm:$0xff]   ;;  %1432 = vmatprep.mubr.bf16.mxu1 %v3999_v54 }
  0x25   :  { %v3360_v17 = vld [vmem:[#allocation5 + $0x264] ss:$16 sps:$4 sm:$0xff]   ;;  %v3363_v19 = vld [vmem:[#allocation5 + $0x260] ss:$16 sps:$4 sm:$0xff]  }
  0x26   :  { %1132 = vmatpush1.bf16.msra.mxu0 %v3350_v10  ;;  %v3364_v20 = vld [vmem:[#allocation5 + $0x44] ss:$16 sps:$4 sm:$0xff]   ;;  %v3368_v22 = vld [vmem:[#allocation5 + $0x40] ss:$16 sps:$4 sm:$0xff]   ;;  %v3432_v10 = vld [vmem:[#allocation5 + $0xec] ss:$16 sps:$4 sm:$0xff]  }
  0x27   :  { %1405 = vmatpush1.bf16.msra.mxu1 %v3351_v11  ;;  %1133 = vmatprep.subr.bf16.mxu0 %v3352_v12  ;;  %v3366_v21 = vld [vmem:[#allocation5 + $0x244] ss:$16 sps:$4 sm:$0xff]   ;;  %v3369_v23 = vld [vmem:[#allocation5 + $0x240] ss:$16 sps:$4 sm:$0xff]   ;;  %v3435_v11 = vld [vmem:[#allocation5 + $0x2ec] ss:$16 sps:$4 sm:$0xff]  }
  0x28   :  { %1406 = vmatprep.subr.bf16.mxu1 %v3354_v13  ;;  %v3370_v24 = vld [vmem:[#allocation5 + $0x24] ss:$16 sps:$4 sm:$0xff]   ;;  %v3374_v26 = vld [vmem:[#allocation5 + $0x20] ss:$16 sps:$4 sm:$0xff]   ;;  %v58_v12 = vld [vmem:[#allocation3 + $0x48] sm:$0xff] }
  0x29   :  { %v3372_v25 = vld [vmem:[#allocation5 + $0x224] ss:$16 sps:$4 sm:$0xff]   ;;  %v3375_v27 = vld [vmem:[#allocation5 + $0x220] ss:$16 sps:$4 sm:$0xff]   ;;  %v62_v13 = vld [vmem:[#allocation3 + $0x68] sm:$0xff] }
  0x2a   :  { %1134 = vmatpush1.bf16.msra.mxu0 %v3356_v14  ;;  %v3376_v28 = vld [vmem:[#allocation5 + $0x4] ss:$16 sps:$4 sm:$0xff]   ;;  %v3380_v30 = vld [vmem:[#allocation5] ss:$16 sps:$4 sm:$0xff]   ;;  %v60_v14 = vld [vmem:[#allocation3 + $0x58] sm:$0xff] }
  0x2b   :  { %1407 = vmatpush1.bf16.msra.mxu1 %v3357_v15  ;;  %1135 = vmatprep.subr.bf16.mxu0 %v3358_v16  ;;  %v3378_v29 = vld [vmem:[#allocation5 + $0x204] ss:$16 sps:$4 sm:$0xff]   ;;  %v3381_v31 = vld [vmem:[#allocation5 + $0x200] ss:$16 sps:$4 sm:$0xff]   ;;  %v64_v15 = vld [vmem:[#allocation3 + $0x78] sm:$0xff] }
  0x2c   :  { %1408 = vmatprep.subr.bf16.mxu1 %v3360_v17  ;;  %v3382_v32 = vld [vmem:[#allocation5 + $0x1e4] ss:$16 sps:$4 sm:$0xff]   ;;  %v3386_v34 = vld [vmem:[#allocation5 + $0x1e0] ss:$16 sps:$4 sm:$0xff]  }
  0x2d   :  { %v3384_v33 = vld [vmem:[#allocation5 + $0x3e4] ss:$16 sps:$4 sm:$0xff]   ;;  %v3387_v35 = vld [vmem:[#allocation5 + $0x3e0] ss:$16 sps:$4 sm:$0xff]  }
  0x2e   :  { %1136 = vmatpush1.bf16.msra.mxu0 %v3362_v18  ;;  %v3388_v36 = vld [vmem:[#allocation5 + $0x1c4] ss:$16 sps:$4 sm:$0xff]   ;;  %v3392_v38 = vld [vmem:[#allocation5 + $0x1c0] ss:$16 sps:$4 sm:$0xff]   ;;  %v3430_v18 = vld [vmem:[#allocation5 + $0xe8] ss:$16 sps:$4 sm:$0xff]  }
  0x2f   :  { %1409 = vmatpush1.bf16.msra.mxu1 %v3363_v19  ;;  %1137 = vmatprep.subr.bf16.mxu0 %v3364_v20  ;;  %v3390_v37 = vld [vmem:[#allocation5 + $0x3c4] ss:$16 sps:$4 sm:$0xff]   ;;  %v3393_v39 = vld [vmem:[#allocation5 + $0x3c0] ss:$16 sps:$4 sm:$0xff]   ;;  %v3433_v19 = vld [vmem:[#allocation5 + $0x2e8] ss:$16 sps:$4 sm:$0xff]   ;;  %v4007_v20 = vpack.c.bf16 %v62_v13, %v58_v12 }
  0x30   :  { %1410 = vmatprep.subr.bf16.mxu1 %v3366_v21  ;;  %v3394_v40 = vld [vmem:[#allocation5 + $0x1a4] ss:$16 sps:$4 sm:$0xff]   ;;  %v3398_v42 = vld [vmem:[#allocation5 + $0x1a0] ss:$16 sps:$4 sm:$0xff]   ;;  %v4009_v21 = vpack.c.bf16 %v64_v15, %v60_v14  ;;  %v3468_v12 = vld [vmem:[#allocation5 + $0x2c] ss:$16 sps:$4 sm:$0xff]  }
  0x31   :  { %v3396_v41 = vld [vmem:[#allocation5 + $0x3a4] ss:$16 sps:$4 sm:$0xff]   ;;  %v3399_v43 = vld [vmem:[#allocation5 + $0x3a0] ss:$16 sps:$4 sm:$0xff]   ;;  %v3471_v15 = vld [vmem:[#allocation5 + $0x22c] ss:$16 sps:$4 sm:$0xff]  }
  0x32   :  { %1138 = vmatpush1.bf16.msra.mxu0 %v3368_v22  ;;  %v3400_v44 = vld [vmem:[#allocation5 + $0x184] ss:$16 sps:$4 sm:$0xff]   ;;  %v3404_v50 = vld [vmem:[#allocation5 + $0x180] ss:$16 sps:$4 sm:$0xff]  }
  0x33   :  { %1411 = vmatpush1.bf16.msra.mxu1 %v3369_v23  ;;  %1139 = vmatprep.subr.bf16.mxu0 %v3370_v24  ;;  %v3402_v45 = vld [vmem:[#allocation5 + $0x384] ss:$16 sps:$4 sm:$0xff]   ;;  %v3405_v51 = vld [vmem:[#allocation5 + $0x380] ss:$16 sps:$4 sm:$0xff]  }
  0x34   :  { %1412 = vmatprep.subr.bf16.mxu1 %v3372_v25  ;;  %v3406_v52 = vld [vmem:[#allocation5 + $0x164] ss:$16 sps:$4 sm:$0xff]   ;;  %v3410_v56 = vld [vmem:[#allocation5 + $0x160] ss:$16 sps:$4 sm:$0xff]   ;;  %v3438_v25 = vld [vmem:[#allocation5 + $0xcc] ss:$16 sps:$4 sm:$0xff]  }
  0x35   :  { %v3408_v55 = vld [vmem:[#allocation5 + $0x364] ss:$16 sps:$4 sm:$0xff]   ;;  %v3411_v57 = vld [vmem:[#allocation5 + $0x360] ss:$16 sps:$4 sm:$0xff]  }
  0x36   :  { %1140 = vmatpush1.bf16.msra.mxu0 %v3374_v26  ;;  %v3412_v58 = vld [vmem:[#allocation5 + $0x144] ss:$16 sps:$4 sm:$0xff]   ;;  %v3416_v60 = vld [vmem:[#allocation5 + $0x140] ss:$16 sps:$4 sm:$0xff]   ;;  %v3441_v26 = vld [vmem:[#allocation5 + $0x2cc] ss:$16 sps:$4 sm:$0xff]  }
  0x37   :  { %1413 = vmatpush1.bf16.msra.mxu1 %v3375_v27  ;;  %1141 = vmatprep.subr.bf16.mxu0 %v3376_v28  ;;  %v3414_v59 = vld [vmem:[#allocation5 + $0x344] ss:$16 sps:$4 sm:$0xff]   ;;  %v3417_v61 = vld [vmem:[#allocation5 + $0x340] ss:$16 sps:$4 sm:$0xff]   ;;  %v3436_v28 = vld [vmem:[#allocation5 + $0xc8] ss:$16 sps:$4 sm:$0xff]  }
  0x38   :  { %1414 = vmatprep.subr.bf16.mxu1 %v3378_v29  ;;  %v3418_v62 = vld [vmem:[#allocation5 + $0x124] ss:$16 sps:$4 sm:$0xff]   ;;  %v3422_v0 = vld [vmem:[#allocation5 + $0x120] ss:$16 sps:$4 sm:$0xff]   ;;  %v3439_v29 = vld [vmem:[#allocation5 + $0x2c8] ss:$16 sps:$4 sm:$0xff]  }
  0x39   :  { %v3420_v63 = vld [vmem:[#allocation5 + $0x324] ss:$16 sps:$4 sm:$0xff]   ;;  %v3423_v1 = vld [vmem:[#allocation5 + $0x320] ss:$16 sps:$4 sm:$0xff]  }
  0x3a   :  { %1142 = vmatpush1.bf16.msra.mxu0 %v3380_v30  ;;  %v3424_v2 = vld [vmem:[#allocation5 + $0x104] ss:$16 sps:$4 sm:$0xff]   ;;  %v3428_v4 = vld [vmem:[#allocation5 + $0x100] ss:$16 sps:$4 sm:$0xff]   ;;  %v66_v30 = vld [vmem:[#allocation3 + $0x88] sm:$0xff] }
  0x3b   :  { %1415 = vmatpush1.bf16.msra.mxu1 %v3381_v31  ;;  %1143 = vmatprep.subr.bf16.mxu0 %v3382_v32  ;;  %v3426_v3 = vld [vmem:[#allocation5 + $0x304] ss:$16 sps:$4 sm:$0xff]   ;;  %v3429_v5 = vld [vmem:[#allocation5 + $0x300] ss:$16 sps:$4 sm:$0xff]   ;;  %v70_v31 = vld [vmem:[#allocation3 + $0xa8] sm:$0xff] }
  0x3c   :  { %1416 = vmatprep.subr.bf16.mxu1 %v3384_v33  ;;  %v49_v6 = vld [vmem:[#allocation3] sm:$0xff]  ;;  %v51_v8 = vld [vmem:[#allocation3 + $0x10] sm:$0xff]  ;;  %v68_v32 = vld [vmem:[#allocation3 + $0x98] sm:$0xff] }
  0x3d   :  { %v53_v7 = vld [vmem:[#allocation3 + $0x20] sm:$0xff]  ;;  %v55_v9 = vld [vmem:[#allocation3 + $0x30] sm:$0xff]  ;;  %v72_v33 = vld [vmem:[#allocation3 + $0xb8] sm:$0xff] }
  0x3e   :  { %1144 = vmatpush2.bf16.msra.mxu0 %v3386_v34  ;;  %v4003_v16 = vpack.c.bf16 %v53_v7, %v49_v6  ;;  %v4005_v17 = vpack.c.bf16 %v55_v9, %v51_v8  ;;  %v57_v22 = vld [vmem:[#allocation3 + $0x40] sm:$0xff]  ;;  %v59_v24 = vld [vmem:[#allocation3 + $0x50] sm:$0xff]  ;;  %v3444_v34 = vld [vmem:[#allocation5 + $0xac] ss:$16 sps:$4 sm:$0xff]  }
  0x3f   :  { %1417 = vmatpush2.bf16.msra.mxu1 %v3387_v35  ;;  %1145 = vmatprep.subr.bf16.mxu0 %v3388_v36  ;;  %v61_v23 = vld [vmem:[#allocation3 + $0x60] sm:$0xff]  ;;  %v63_v27 = vld [vmem:[#allocation3 + $0x70] sm:$0xff]  ;;  %v3447_v35 = vld [vmem:[#allocation5 + $0x2ac] ss:$16 sps:$4 sm:$0xff]  }
  0x40   :  { %1418 = vmatprep.subr.bf16.mxu1 %v3390_v37  ;;  %v4015_v36 = vpack.c.bf16 %v61_v23, %v57_v22  ;;  %v4017_v37 = vpack.c.bf16 %v63_v27, %v59_v24  ;;  %v71_v47 = vld [vmem:[#allocation3 + $0xb0] sm:$0xff]  ;;  %v82_v6 = vld [vmem:[#allocation3 + $0x108] sm:$0xff]  ;;  %v84_v8 = vld [vmem:[#allocation3 + $0x118] sm:$0xff] }
  0x41   :  { %v86_v7 = vld [vmem:[#allocation3 + $0x128] sm:$0xff]  ;;  %v88_v9 = vld [vmem:[#allocation3 + $0x138] sm:$0xff]  ;;  %v81_v24 = vld [vmem:[#allocation3 + $0x100] sm:$0xff] }
  0x42   :  { %1146 = vmatpush2.bf16.msra.mxu0 %v3392_v38  ;;  %v4019_v38 = vpack.c.bf16 %v70_v31, %v66_v30  ;;  %v3466_v22 = vld [vmem:[#allocation5 + $0x28] ss:$16 sps:$4 sm:$0xff]   ;;  %v87_v27 = vld [vmem:[#allocation3 + $0x130] sm:$0xff]  ;;  %v3474_v31 = vld [vmem:[#allocation5 + $0xc] ss:$16 sps:$4 sm:$0xff]  }
  0x43   :  { %1419 = vmatpush2.bf16.msra.mxu1 %v3393_v39  ;;  %1147 = vmatprep.subr.bf16.mxu0 %v3394_v40  ;;  %v4021_v39 = vpack.c.bf16 %v72_v33, %v68_v32  ;;  %v3442_v40 = vld [vmem:[#allocation5 + $0xa8] ss:$16 sps:$4 sm:$0xff]  }
  0x44   :  { %1420 = vmatprep.subr.bf16.mxu1 %v3396_v41  ;;  %v3445_v41 = vld [vmem:[#allocation5 + $0x2a8] ss:$16 sps:$4 sm:$0xff]  }
  0x45   :  { %v3469_v23 = vld [vmem:[#allocation5 + $0x228] ss:$16 sps:$4 sm:$0xff]  }
  0x46   :  { %1148 = vmatpush2.bf16.msra.mxu0 %v3398_v42  ;;  %v65_v42 = vld [vmem:[#allocation3 + $0x80] sm:$0xff]  ;;  %v92_v30 = vld [vmem:[#allocation3 + $0x158] sm:$0xff] }
  0x47   :  { %1421 = vmatpush2.bf16.msra.mxu1 %v3399_v43  ;;  %1149 = vmatprep.subr.bf16.mxu0 %v3400_v44  ;;  %v69_v43 = vld [vmem:[#allocation3 + $0xa0] sm:$0xff]  ;;  %v67_v44 = vld [vmem:[#allocation3 + $0x90] sm:$0xff]  ;;  %v96_v32 = vld [vmem:[#allocation3 + $0x178] sm:$0xff] }
  0x48   :  { %1422 = vmatprep.subr.bf16.mxu1 %v3402_v45  ;;  %v3450_v45 = vld [vmem:[#allocation5 + $0x8c] ss:$16 sps:$4 sm:$0xff]   ;;  %v3472_v33 = vld [vmem:[#allocation5 + $0x8] ss:$16 sps:$4 sm:$0xff]  }
  0x4a   :  { %1150 = vmatpush2.bf16.msra.mxu0 %v3404_v50  ;;  %v76_v50 = vld [vmem:[#allocation3 + $0xd8] sm:$0xff] }
  0x4b   :  { %1423 = vmatpush2.bf16.msra.mxu1 %v3405_v51  ;;  %1151 = vmatprep.subr.bf16.mxu0 %v3406_v52  ;;  %v80_v51 = vld [vmem:[#allocation3 + $0xf8] sm:$0xff] }
  0x4c   :  { %1424 = vmatprep.subr.bf16.mxu1 %v3408_v55  ;;  %v3448_v52 = vld [vmem:[#allocation5 + $0x88] ss:$16 sps:$4 sm:$0xff]  }
  0x4d   :  { %v3451_v55 = vld [vmem:[#allocation5 + $0x288] ss:$16 sps:$4 sm:$0xff]  }
  0x4e   :  { %1152 = vmatpush2.bf16.msra.mxu0 %v3410_v56  ;;  %v3456_v56 = vld [vmem:[#allocation5 + $0x6c] ss:$16 sps:$4 sm:$0xff]  }
  0x4f   :  { %1425 = vmatpush2.bf16.msra.mxu1 %v3411_v57  ;;  %1153 = vmatprep.subr.bf16.mxu0 %v3412_v58  ;;  %v3459_v57 = vld [vmem:[#allocation5 + $0x26c] ss:$16 sps:$4 sm:$0xff]   ;;  %v4027_v58 = vpack.c.bf16 %v69_v43, %v65_v42  ;;  %v4057_v43 = vpack.c.bf16 %v96_v32, %v92_v30  ;;  %v107_v32 = vld [vmem:[#allocation3 + $0x1d0] sm:$0xff] }
  0x50   :  { %1426 = vmatprep.subr.bf16.mxu1 %v3414_v59  ;;  %v4029_v59 = vpack.c.bf16 %v71_v47, %v67_v44  ;;  %v89_v44 = vld [vmem:[#allocation3 + $0x140] sm:$0xff]  ;;  %v95_v47 = vld [vmem:[#allocation3 + $0x170] sm:$0xff]  ;;  %v3495_v30 = vld [vmem:[#allocation5 + $0x3ac] ss:$16 sps:$4 sm:$0xff]  }
  0x52   :  { %1154 = vmatpush2.bf16.msra.mxu0 %v3416_v60  ;;  %v4031_v60 = vpack.c.bf16 %v78_v49, %v74_v48  ;;  %v98_v48 = vld [vmem:[#allocation3 + $0x188] sm:$0xff] }
  0x53   :  { %1427 = vmatpush2.bf16.msra.mxu1 %v3417_v61  ;;  %1155 = vmatprep.subr.bf16.mxu0 %v3418_v62  ;;  %v4033_v61 = vpack.c.bf16 %v80_v51, %v76_v50  ;;  %v3454_v62 = vld [vmem:[#allocation5 + $0x68] ss:$16 sps:$4 sm:$0xff]   ;;  %v3480_v51 = vld [vmem:[#allocation5 + $0x1ec] ss:$16 sps:$4 sm:$0xff]  }
  0x54   :  { %1428 = vmatprep.subr.bf16.mxu1 %v3420_v63  ;;  %v3457_v63 = vld [vmem:[#allocation5 + $0x268] ss:$16 sps:$4 sm:$0xff]  }
  0x55   :  { %v102_v49 = vld [vmem:[#allocation3 + $0x1a8] sm:$0xff] }
  0x56   :  { %1156 = vmatpush2.bf16.msra.mxu0 %v3422_v0  ;;  %v73_v0 = vld [vmem:[#allocation3 + $0xc0] sm:$0xff]  ;;  %v3478_v50 = vld [vmem:[#allocation5 + $0x1e8] ss:$16 sps:$4 sm:$0xff]  }
  0x57   :  { %1429 = vmatpush2.bf16.msra.mxu1 %v3423_v1  ;;  %1157 = vmatprep.subr.bf16.mxu0 %v3424_v2  ;;  %v77_v1 = vld [vmem:[#allocation3 + $0xe0] sm:$0xff]  ;;  %v75_v2 = vld [vmem:[#allocation3 + $0xd0] sm:$0xff] }
  0x58   :  { %1430 = vmatprep.subr.bf16.mxu1 %v3426_v3  ;;  %v3462_v3 = vld [vmem:[#allocation5 + $0x4c] ss:$16 sps:$4 sm:$0xff]   ;;  %v4039_v13 = vpack.c.bf16 %v77_v1, %v73_v0  ;;  %v4067_v0 = vpack.c.bf16 %v102_v49, %v98_v48 }
  0x5a   :  { %1158 = vmatpush2.bf16.msra.mxu0 %v3428_v4  ;;  %v3465_v4 = vld [vmem:[#allocation5 + $0x24c] ss:$16 sps:$4 sm:$0xff]  }
  0x5b   :  { %1431 = vmatpush2.bf16.msra.mxu1 %v3429_v5  ;;  %1673 = vmatprep.subr.bf16.mxu0 %v3432_v10  ;;  %v79_v5 = vld [vmem:[#allocation3 + $0xf0] sm:$0xff]  ;;  %v3460_v10 = vld [vmem:[#allocation5 + $0x48] ss:$16 sps:$4 sm:$0xff]  }
  0x5c   :  { %1946 = vmatprep.subr.bf16.mxu1 %v3435_v11  ;;  %v3463_v11 = vld [vmem:[#allocation5 + $0x248] ss:$16 sps:$4 sm:$0xff]   ;;  %v4041_v14 = vpack.c.bf16 %v79_v5, %v75_v2  ;;  %v3486_v2 = vld [vmem:[#allocation5 + $0x1cc] ss:$16 sps:$4 sm:$0xff]  }
  0x5d   :  { %1160 = vmatmul.mubr.bf16.vlgmr.msra.gmra.mxu0 %v4003_v16  ;;  %v3489_v5 = vld [vmem:[#allocation5 + $0x3cc] ss:$16 sps:$4 sm:$0xff]  }
  0x5e   :  { %1433 = vmatmul.mubr.bf16.vlgmr.msra.gmra.mxu1 %v4005_v17  ;;  %1674 = vmatpush1.bf16.msra.mxu0 %v3430_v18  ;;  %v4043_v18 = vpack.c.bf16 %v86_v7, %v82_v6  ;;  %v97_v6 = vld [vmem:[#allocation3 + $0x180] sm:$0xff] }
  0x5f   :  { %1947 = vmatpush1.bf16.msra.mxu1 %v3433_v19  ;;  %1169 = vmatprep.mubr.bf16.mxu0 %v4007_v20  ;;  %v4045_v19 = vpack.c.bf16 %v88_v9, %v84_v8  ;;  %v101_v7 = vld [vmem:[#allocation3 + $0x1a0] sm:$0xff]  ;;  %v99_v8 = vld [vmem:[#allocation3 + $0x190] sm:$0xff] }
  0x60   :  { %1442 = vmatprep.mubr.bf16.mxu1 %v4009_v21  ;;  %1675 = vmatprep.subr.bf16.mxu0 %v3438_v25  ;;  %v85_v25 = vld [vmem:[#allocation3 + $0x120] sm:$0xff]  ;;  %v103_v9 = vld [vmem:[#allocation3 + $0x1b0] sm:$0xff] }
  0x61   :  { %1948 = vmatprep.subr.bf16.mxu1 %v3441_v26  ;;  %v83_v26 = vld [vmem:[#allocation3 + $0x110] sm:$0xff] }
  0x62   :  { %1676 = vmatpush1.bf16.msra.mxu0 %v3436_v28  ;;  %v90_v28 = vld [vmem:[#allocation3 + $0x148] sm:$0xff] }
  0x63   :  { %1949 = vmatpush1.bf16.msra.mxu1 %v3439_v29  ;;  %1677 = vmatprep.subr.bf16.mxu0 %v3444_v34  ;;  %v94_v29 = vld [vmem:[#allocation3 + $0x168] sm:$0xff] }
  0x64   :  { %1950 = vmatprep.subr.bf16.mxu1 %v3447_v35  ;;  %v3475_v34 = vld [vmem:[#allocation5 + $0x208] ss:$16 sps:$4 sm:$0xff]   ;;  %v3477_v35 = vld [vmem:[#allocation5 + $0x20c] ss:$16 sps:$4 sm:$0xff]   ;;  %v4055_v42 = vpack.c.bf16 %v94_v29, %v90_v28 }
  0x65   :  { %1170 = vmatmul.mubr.bf16.gmra.mxu0 %v4015_v36  ;;  %v3490_v28 = vld [vmem:[#allocation5 + $0x1a8] ss:$16 sps:$4 sm:$0xff]  }
  0x66   :  { %1443 = vmatmul.mubr.bf16.gmra.mxu1 %v4017_v37  ;;  %1179 = vmatprep.mubr.bf16.mxu0 %v4019_v38  ;;  %v3493_v29 = vld [vmem:[#allocation5 + $0x3a8] ss:$16 sps:$4 sm:$0xff]  }
  0x67   :  { %1452 = vmatprep.mubr.bf16.mxu1 %v4021_v39  ;;  %1678 = vmatpush1.bf16.msra.mxu0 %v3442_v40  ;;  %v4051_v40 = vpack.c.bf16 %v85_v25, %v81_v24 }
  0x68   :  { %1951 = vmatpush1.bf16.msra.mxu1 %v3445_v41  ;;  %1679 = vmatprep.subr.bf16.mxu0 %v3450_v45  ;;  %v4053_v41 = vpack.c.bf16 %v87_v27, %v83_v26  ;;  %v93_v45 = vld [vmem:[#allocation3 + $0x160] sm:$0xff]  ;;  %v3492_v26 = vld [vmem:[#allocation5 + $0x1ac] ss:$16 sps:$4 sm:$0xff]  }
  0x69   :  { %1952 = vmatprep.subr.bf16.mxu1 %v3453_v46  ;;  %v91_v46 = vld [vmem:[#allocation3 + $0x150] sm:$0xff]  ;;  %v105_v27 = vld [vmem:[#allocation3 + $0x1c0] sm:$0xff] }
  0x6b   :  { %1680 = vmatpush1.bf16.msra.mxu0 %v3448_v52  ;;  %v3481_v52 = vld [vmem:[#allocation5 + $0x3e8] ss:$16 sps:$4 sm:$0xff]  }
  0x6c   :  { %1953 = vmatpush1.bf16.msra.mxu1 %v3451_v55  ;;  %1681 = vmatprep.subr.bf16.mxu0 %v3456_v56  ;;  %v100_v55 = vld [vmem:[#allocation3 + $0x198] sm:$0xff] }
  0x6d   :  { %1954 = vmatprep.subr.bf16.mxu1 %v3459_v57  ;;  %1180 = vmatmul.mubr.bf16.gmra.mxu0 %v4027_v58  ;;  %v104_v56 = vld [vmem:[#allocation3 + $0x1b8] sm:$0xff] }
  0x6e   :  { %1453 = vmatmul.mubr.bf16.gmra.mxu1 %v4029_v59  ;;  %1189 = vmatprep.mubr.bf16.mxu0 %v4031_v60  ;;  %v3483_v57 = vld [vmem:[#allocation5 + $0x3ec] ss:$16 sps:$4 sm:$0xff]   ;;  %v4069_v1 = vpack.c.bf16 %v104_v56, %v100_v55  ;;  %v113_v56 = vld [vmem:[#allocation3 + $0x200] sm:$0xff] }
  0x6f   :  { %1462 = vmatprep.mubr.bf16.mxu1 %v4033_v61  ;;  %1682 = vmatpush1.bf16.msra.mxu0 %v3454_v62  ;;  %v4063_v62 = vpack.c.bf16 %v93_v45, %v89_v44  ;;  %v116_v44 = vld [vmem:[#allocation3 + $0x218] sm:$0xff] }
  0x70   :  { %1955 = vmatpush1.bf16.msra.mxu1 %v3457_v63  ;;  %1683 = vmatprep.subr.bf16.mxu0 %v3462_v3  ;;  %v4065_v63 = vpack.c.bf16 %v95_v47, %v91_v46  ;;  %v3484_v3 = vld [vmem:[#allocation5 + $0x1c8] ss:$16 sps:$4 sm:$0xff]   ;;  %v3498_v47 = vld [vmem:[#allocation5 + $0x18c] ss:$16 sps:$4 sm:$0xff]  }
  0x71   :  { %1956 = vmatprep.subr.bf16.mxu1 %v3465_v4  ;;  %v3487_v4 = vld [vmem:[#allocation5 + $0x3c8] ss:$16 sps:$4 sm:$0xff]  }
  0x72   :  { %v120_v45 = vld [vmem:[#allocation3 + $0x238] sm:$0xff] }
  0x73   :  { %1684 = vmatpush1.bf16.msra.mxu0 %v3460_v10  ;;  %v106_v10 = vld [vmem:[#allocation3 + $0x1c8] sm:$0xff]  ;;  %v4093_v55 = vpack.c.bf16 %v120_v45, %v116_v44  ;;  %v132_v45 = vld [vmem:[#allocation3 + $0x298] sm:$0xff] }
  0x74   :  { %1957 = vmatpush1.bf16.msra.mxu1 %v3463_v11  ;;  %1685 = vmatprep.subr.bf16.mxu0 %v3468_v12  ;;  %v110_v11 = vld [vmem:[#allocation3 + $0x1e8] sm:$0xff]  ;;  %v108_v12 = vld [vmem:[#allocation3 + $0x1d8] sm:$0xff] }
  0x75   :  { %1958 = vmatprep.subr.bf16.mxu1 %v3471_v15  ;;  %1190 = vmatmul.mubr.bf16.gmra.mxu0 %v4039_v13  ;;  %v112_v15 = vld [vmem:[#allocation3 + $0x1f8] sm:$0xff]  ;;  %v4079_v24 = vpack.c.bf16 %v110_v11, %v106_v10 }
  0x76   :  { %1463 = vmatmul.mubr.bf16.gmra.mxu1 %v4041_v14  ;;  %1199 = vmatprep.mubr.bf16.mxu0 %v4043_v18  ;;  %v4081_v25 = vpack.c.bf16 %v112_v15, %v108_v12  ;;  %v3496_v46 = vld [vmem:[#allocation5 + $0x188] ss:$16 sps:$4 sm:$0xff]   ;;  %v3507_v15 = vld [vmem:[#allocation5 + $0x36c] ss:$16 sps:$4 sm:$0xff]  }
  0x77   :  { %1472 = vmatprep.mubr.bf16.mxu1 %v4045_v19  ;;  %1686 = vmatpush1.bf16.msra.mxu0 %v3466_v22  ;;  %v4075_v22 = vpack.c.bf16 %v101_v7, %v97_v6  ;;  %v124_v6 = vld [vmem:[#allocation3 + $0x258] sm:$0xff] }
  0x78   :  { %1959 = vmatpush1.bf16.msra.mxu1 %v3469_v23  ;;  %1687 = vmatprep.subr.bf16.mxu0 %v3474_v31  ;;  %v4077_v23 = vpack.c.bf16 %v103_v9, %v99_v8  ;;  %v109_v31 = vld [vmem:[#allocation3 + $0x1e0] sm:$0xff]  ;;  %v128_v7 = vld [vmem:[#allocation3 + $0x278] sm:$0xff] }
  0x79   :  { %1960 = vmatprep.subr.bf16.mxu1 %v3477_v35  ;;  %v118_v35 = vld [vmem:[#allocation3 + $0x228] sm:$0xff]  ;;  %v4087_v48 = vpack.c.bf16 %v109_v31, %v105_v27  ;;  %v4105_v27 = vpack.c.bf16 %v128_v7, %v124_v6  ;;  %v127_v31 = vld [vmem:[#allocation3 + $0x270] sm:$0xff] }
  0x7a   :  { %v3502_v8 = vld [vmem:[#allocation5 + $0x168] ss:$16 sps:$4 sm:$0xff]   ;;  %v3504_v9 = vld [vmem:[#allocation5 + $0x16c] ss:$16 sps:$4 sm:$0xff]  }
  0x7b   :  { %1688 = vmatpush1.bf16.msra.mxu0 %v3472_v33  ;;  %v111_v33 = vld [vmem:[#allocation3 + $0x1f0] sm:$0xff]  ;;  %v3505_v12 = vld [vmem:[#allocation5 + $0x368] ss:$16 sps:$4 sm:$0xff]  }
  0x7c   :  { %1961 = vmatpush1.bf16.msra.mxu1 %v3475_v34  ;;  %1689 = vmatprep.subr.bf16.mxu0 %v3480_v51  ;;  %v114_v34 = vld [vmem:[#allocation3 + $0x208] sm:$0xff]  ;;  %v4089_v49 = vpack.c.bf16 %v111_v33, %v107_v32 }
  0x7d   :  { %1200 = vmatmul.mubr.bf16.gmra.mxu0 %v4051_v40  ;;  %1962 = vmatprep.subr.bf16.mxu1 %v3483_v57  ;;  %v3501_v51 = vld [vmem:[#allocation5 + $0x38c] ss:$16 sps:$4 sm:$0xff]   ;;  %v117_v57 = vld [vmem:[#allocation3 + $0x220] sm:$0xff]  ;;  %v3511_v44 = vld [vmem:[#allocation5 + $0x348] ss:$16 sps:$4 sm:$0xff]  }
  0x7e   :  { %1473 = vmatmul.mubr.bf16.gmra.mxu1 %v4053_v41  ;;  %1209 = vmatprep.mubr.bf16.mxu0 %v4055_v42  ;;  %v4099_v10 = vpack.c.bf16 %v117_v57, %v113_v56  ;;  %v130_v32 = vld [vmem:[#allocation3 + $0x288] sm:$0xff] }
  0x7f   :  { %1482 = vmatprep.mubr.bf16.mxu1 %v4057_v43  ;;  %1690 = vmatpush2.bf16.msra.mxu0 %v3478_v50  ;;  %v3499_v50 = vld [vmem:[#allocation5 + $0x388] ss:$16 sps:$4 sm:$0xff]  }
  0x80   :  { %1963 = vmatpush2.bf16.msra.mxu1 %v3481_v52  ;;  %1691 = vmatprep.subr.bf16.mxu0 %v3486_v2  ;;  %v4091_v52 = vpack.c.bf16 %v118_v35, %v114_v34  ;;  %v115_v2 = vld [vmem:[#allocation3 + $0x210] sm:$0xff]  ;;  %v134_v33 = vld [vmem:[#allocation3 + $0x2a8] sm:$0xff] }
  0x81   :  { %1964 = vmatprep.subr.bf16.mxu1 %v3489_v5  ;;  %v126_v5 = vld [vmem:[#allocation3 + $0x268] sm:$0xff]  ;;  %v4115_v56 = vpack.c.bf16 %v134_v33, %v130_v32 }
  0x82   :  { %v3508_v34 = vld [vmem:[#allocation5 + $0x148] ss:$16 sps:$4 sm:$0xff]   ;;  %v3510_v35 = vld [vmem:[#allocation5 + $0x14c] ss:$16 sps:$4 sm:$0xff]  }
  0x83   :  { %1692 = vmatpush2.bf16.msra.mxu0 %v3484_v3  ;;  %v119_v3 = vld [vmem:[#allocation3 + $0x230] sm:$0xff]  ;;  %v138_v6 = vld [vmem:[#allocation3 + $0x2c8] sm:$0xff] }
  0x84   :  { %1965 = vmatpush2.bf16.msra.mxu1 %v3487_v4  ;;  %1693 = vmatprep.subr.bf16.mxu0 %v3492_v26  ;;  %v122_v4 = vld [vmem:[#allocation3 + $0x248] sm:$0xff]  ;;  %v4101_v11 = vpack.c.bf16 %v119_v3, %v115_v2  ;;  %v129_v2 = vld [vmem:[#allocation3 + $0x280] sm:$0xff] }
  0x85   :  { %1210 = vmatmul.mubr.bf16.gmra.mxu0 %v4063_v62  ;;  %1966 = vmatprep.subr.bf16.mxu1 %v3495_v30  ;;  %v4103_v26 = vpack.c.bf16 %v126_v5, %v122_v4  ;;  %v123_v30 = vld [vmem:[#allocation3 + $0x250] sm:$0xff]  ;;  %v133_v3 = vld [vmem:[#allocation3 + $0x2a0] sm:$0xff]  ;;  %v142_v7 = vld [vmem:[#allocation3 + $0x2e8] sm:$0xff] }
  0x86   :  { %1483 = vmatmul.mubr.bf16.gmra.mxu1 %v4065_v63  ;;  %1219 = vmatprep.mubr.bf16.mxu0 %v4067_v0  ;;  %v131_v4 = vld [vmem:[#allocation3 + $0x290] sm:$0xff]  ;;  %v4127_v32 = vpack.c.bf16 %v142_v7, %v138_v6  ;;  %v148_v6 = vld [vmem:[#allocation3 + $0x318] sm:$0xff] }
  0x87   :  { %1492 = vmatprep.mubr.bf16.mxu1 %v4069_v1  ;;  %1694 = vmatpush2.bf16.msra.mxu0 %v3490_v28  ;;  %v121_v28 = vld [vmem:[#allocation3 + $0x240] sm:$0xff]  ;;  %v135_v5 = vld [vmem:[#allocation3 + $0x2b0] sm:$0xff]  ;;  %v152_v7 = vld [vmem:[#allocation3 + $0x338] sm:$0xff] }
  0x88   :  { %1967 = vmatpush2.bf16.msra.mxu1 %v3493_v29  ;;  %1695 = vmatprep.subr.bf16.mxu0 %v3498_v47  ;;  %v125_v29 = vld [vmem:[#allocation3 + $0x260] sm:$0xff]  ;;  %v3513_v47 = vld [vmem:[#allocation5 + $0x34c] ss:$16 sps:$4 sm:$0xff]  }
  0x89   :  { %1968 = vmatprep.subr.bf16.mxu1 %v3501_v51  ;;  %v4113_v51 = vpack.c.bf16 %v127_v31, %v123_v30  ;;  %v4123_v30 = vpack.c.bf16 %v133_v3, %v129_v2  ;;  %v4125_v31 = vpack.c.bf16 %v135_v5, %v131_v4  ;;  %v139_v2 = vld [vmem:[#allocation3 + $0x2d0] sm:$0xff]  ;;  %v146_v4 = vld [vmem:[#allocation3 + $0x308] sm:$0xff] }
  0x8a   :  { %v143_v3 = vld [vmem:[#allocation3 + $0x2f0] sm:$0xff]  ;;  %v150_v5 = vld [vmem:[#allocation3 + $0x328] sm:$0xff] }
  0x8b   :  { %1696 = vmatpush2.bf16.msra.mxu0 %v3496_v46  ;;  %v136_v46 = vld [vmem:[#allocation3 + $0x2b8] sm:$0xff] }
  0x8c   :  { %1969 = vmatpush2.bf16.msra.mxu1 %v3499_v50  ;;  %1697 = vmatprep.subr.bf16.mxu0 %v3504_v9  ;;  %v4111_v50 = vpack.c.bf16 %v125_v29, %v121_v28  ;;  %v4117_v57 = vpack.c.bf16 %v136_v46, %v132_v45  ;;  %v3516_v9 = vld [vmem:[#allocation5 + $0x12c] ss:$16 sps:$4 sm:$0xff]   ;;  %v137_v46 = vld [vmem:[#allocation3 + $0x2c0] sm:$0xff] }
  0x8d   :  { %1220 = vmatmul.mubr.bf16.gmra.mxu0 %v4075_v22  ;;  %1970 = vmatprep.subr.bf16.mxu1 %v3507_v15  ;;  %v140_v15 = vld [vmem:[#allocation3 + $0x2d8] sm:$0xff] }
  0x8e   :  { %1493 = vmatmul.mubr.bf16.gmra.mxu1 %v4077_v23  ;;  %1229 = vmatprep.mubr.bf16.mxu0 %v4079_v24  ;;  %v144_v28 = vld [vmem:[#allocation3 + $0x2f8] sm:$0xff] }
  0x8f   :  { %1502 = vmatprep.mubr.bf16.mxu1 %v4081_v25  ;;  %1698 = vmatpush2.bf16.msra.mxu0 %v3502_v8  ;;  %v3514_v8 = vld [vmem:[#allocation5 + $0x128] ss:$16 sps:$4 sm:$0xff]   ;;  %v3519_v29 = vld [vmem:[#allocation5 + $0x32c] ss:$16 sps:$4 sm:$0xff]   ;;  %v4129_v33 = vpack.c.bf16 %v144_v28, %v140_v15  ;;  %v4141_v15 = vpack.c.bf16 %v152_v7, %v148_v6  ;;  %v145_v28 = vld [vmem:[#allocation3 + $0x300] sm:$0xff] }
  0x90   :  { %1971 = vmatpush2.bf16.msra.mxu1 %v3505_v12  ;;  %1699 = vmatprep.subr.bf16.mxu0 %v3510_v35  ;;  %v3517_v12 = vld [vmem:[#allocation5 + $0x328] ss:$16 sps:$4 sm:$0xff]   ;;  %v3525_v45 = vld [vmem:[#allocation5 + $0x30c] ss:$16 sps:$4 sm:$0xff]   ;;  %v153_v6 = vld [vmem:[#allocation3 + $0x340] sm:$0xff] }
  0x91   :  { %1972 = vmatprep.subr.bf16.mxu1 %v3513_v47  ;;  %v3520_v35 = vld [vmem:[#allocation5 + $0x108] ss:$16 sps:$4 sm:$0xff]   ;;  %v141_v47 = vld [vmem:[#allocation3 + $0x2e0] sm:$0xff]  ;;  %5752 = vst [vmem:[#allocation10_spill] sm:$0xff] %v4141_v15 }
  0x92   :  { %v157_v7 = vld [vmem:[#allocation3 + $0x360] sm:$0xff] }
  0x93   :  { %1700 = vmatpush2.bf16.msra.mxu0 %v3508_v34  ;;  %v3522_v34 = vld [vmem:[#allocation5 + $0x10c] ss:$16 sps:$4 sm:$0xff]  }
  0x94   :  { %1973 = vmatpush2.bf16.msra.mxu1 %v3511_v44  ;;  %1701 = vmatprep.subr.bf16.mxu0 %v3516_v9  ;;  %v3523_v44 = vld [vmem:[#allocation5 + $0x308] ss:$16 sps:$4 sm:$0xff]   ;;  %v4137_v9 = vpack.c.bf16 %v143_v3, %v139_v2 }
  0x95   :  { %1230 = vmatmul.mubr.bf16.gmra.mxu0 %v4087_v48  ;;  %1974 = vmatprep.subr.bf16.mxu1 %v3519_v29  ;;  %v149_v29 = vld [vmem:[#allocation3 + $0x320] sm:$0xff] }
  0x96   :  { %1503 = vmatmul.mubr.bf16.gmra.mxu1 %v4089_v49  ;;  %1239 = vmatprep.mubr.bf16.mxu0 %v4091_v52  ;;  %v4147_v2 = vpack.c.bf16 %v149_v29, %v145_v28  ;;  %v162_v28 = vld [vmem:[#allocation3 + $0x388] sm:$0xff] }
  0x97   :  { %1512 = vmatprep.mubr.bf16.mxu1 %v4093_v55  ;;  %1702 = vmatpush2.bf16.msra.mxu0 %v3514_v8  ;;  %v4135_v8 = vpack.c.bf16 %v141_v47, %v137_v46  ;;  %v156_v46 = vld [vmem:[#allocation3 + $0x358] sm:$0xff]  ;;  %v166_v29 = vld [vmem:[#allocation3 + $0x3a8] sm:$0xff] }
  0x98   :  { %1975 = vmatpush2.bf16.msra.mxu1 %v3517_v12  ;;  %1703 = vmatprep.subr.bf16.mxu0 %v3522_v34  ;;  %v4139_v12 = vpack.c.bf16 %v150_v5, %v146_v4  ;;  %v147_v34 = vld [vmem:[#allocation3 + $0x310] sm:$0xff]  ;;  %v160_v47 = vld [vmem:[#allocation3 + $0x378] sm:$0xff]  ;;  %5753 = vst [vmem:[#allocation11_spill] sm:$0xff] %v4147_v2 }
  0x99   :  { %1976 = vmatprep.subr.bf16.mxu1 %v3525_v45  ;;  %v158_v45 = vld [vmem:[#allocation3 + $0x368] sm:$0xff]  ;;  %v4153_v5 = vpack.c.bf16 %v160_v47, %v156_v46  ;;  %v4163_v46 = vpack.c.bf16 %v166_v29, %v162_v28 }
  0x9a   :  { %5751 = vst [vmem:[#allocation9_spill] sm:$0xff] %v4139_v12 }
  0x9b   :  { %1704 = vmatpush2.bf16.msra.mxu0 %v3520_v35  ;;  %v151_v35 = vld [vmem:[#allocation3 + $0x330] sm:$0xff]  ;;  %5756 = vst [vmem:[#allocation14_spill] sm:$0xff] %v4153_v5  ;;  %5759 = vst [vmem:[#allocation17_spill] sm:$0xff] %v4163_v46 }
  0x9c   :  { %1977 = vmatpush2.bf16.msra.mxu1 %v3523_v44  ;;  %v154_v44 = vld [vmem:[#allocation3 + $0x348] sm:$0xff]  ;;  %v4149_v3 = vpack.c.bf16 %v151_v35, %v147_v34  ;;  %v164_v34 = vld [vmem:[#allocation3 + $0x398] sm:$0xff] }
  0x9d   :  { %1240 = vmatmul.mubr.bf16.gmra.mxu0 %v4099_v10  ;;  %v4151_v4 = vpack.c.bf16 %v158_v45, %v154_v44  ;;  %v168_v35 = vld [vmem:[#allocation3 + $0x3b8] sm:$0xff]  ;;  %v4159_v44 = vpack.c.bf16 %v157_v7, %v153_v6  ;;  %v170_v6 = vld [vmem:[#allocation3 + $0x3c8] sm:$0xff] }
  0x9e   :  { %1513 = vmatmul.mubr.bf16.gmra.mxu1 %v4101_v11  ;;  %1249 = vmatprep.mubr.bf16.mxu0 %v4103_v26  ;;  %5754 = vst [vmem:[#allocation12_spill] sm:$0xff] %v4149_v3  ;;  %v4165_v47 = vpack.c.bf16 %v168_v35, %v164_v34  ;;  %v174_v7 = vld [vmem:[#allocation3 + $0x3e8] sm:$0xff] }
  0x9f   :  { %1522 = vmatprep.mubr.bf16.mxu1 %v4105_v27  ;;  %5755 = vst [vmem:[#allocation13_spill] sm:$0xff] %v4151_v4  ;;  %5757 = vst [vmem:[#allocation15_spill] sm:$0xff] %v4159_v44  ;;  %v4175_v34 = vpack.c.bf16 %v174_v7, %v170_v6 }
  0xa0   :  { %5760 = vst [vmem:[#allocation18_spill] sm:$0xff] %v4165_v47 }
  0xa1   :  { %5763 = vst [vmem:[#allocation21_spill] sm:$0xff] %v4175_v34 }
  0xa5   :  { %1250 = vmatmul.mubr.bf16.gmra.mxu0 %v4111_v50 }
  0xa6   :  { %1523 = vmatmul.mubr.bf16.gmra.mxu1 %v4113_v51  ;;  %1259 = vmatprep.mubr.bf16.mxu0 %v4115_v56 }
  0xa7   :  { %1532 = vmatprep.mubr.bf16.mxu1 %v4117_v57 }
  0xad   :  { %1260 = vmatmul.mubr.bf16.gmra.mxu0 %v4123_v30 }
  0xae   :  { %1533 = vmatmul.mubr.bf16.gmra.mxu1 %v4125_v31  ;;  %1269 = vmatprep.mubr.bf16.mxu0 %v4127_v32 }
  0xaf   :  { %1542 = vmatprep.mubr.bf16.mxu1 %v4129_v33 }
  0xb5   :  { %1270 = vmatmul.mubr.bf16.gmra.mxu0 %v4135_v8 }
  0xb6   :  { %1543 = vmatmul.mubr.bf16.gmra.mxu1 %v4137_v9  ;;  %1279 = vmatprep.mubr.bf16.mxu0 %v4139_v12  ;;  %v159_v12 = vld [vmem:[#allocation3 + $0x370] sm:$0xff] }
  0xb7   :  { %1552 = vmatprep.mubr.bf16.mxu1 %v4141_v15  ;;  %v155_v15 = vld [vmem:[#allocation3 + $0x350] sm:$0xff] }
  0xb8   :  { %v4161_v45 = vpack.c.bf16 %v159_v12, %v155_v15  ;;  %v172_v12 = vld [vmem:[#allocation3 + $0x3d8] sm:$0xff] }
  0xb9   :  { %v176_v15 = vld [vmem:[#allocation3 + $0x3f8] sm:$0xff] }
  0xba   :  { %5758 = vst [vmem:[#allocation16_spill] sm:$0xff] %v4161_v45  ;;  %v4177_v35 = vpack.c.bf16 %v176_v15, %v172_v12 }
  0xbc   :  { %5764 = vst [vmem:[#allocation22_spill] sm:$0xff] %v4177_v35 }
  0xbd   :  { %1280 = vmatmul.mubr.bf16.gmra.mxu0 %v4147_v2  ;;  %v167_v2 = vld [vmem:[#allocation3 + $0x3b0] sm:$0xff] }
  0xbe   :  { %1553 = vmatmul.mubr.bf16.gmra.mxu1 %v4149_v3  ;;  %1289 = vmatprep.mubr.bf16.mxu0 %v4151_v4  ;;  %v161_v4 = vld [vmem:[#allocation3 + $0x380] sm:$0xff]  ;;  %v163_v3 = vld [vmem:[#allocation3 + $0x390] sm:$0xff] }
  0xbf   :  { %1562 = vmatprep.mubr.bf16.mxu1 %v4153_v5  ;;  %v165_v5 = vld [vmem:[#allocation3 + $0x3a0] sm:$0xff]  ;;  %v4173_v29 = vpack.c.bf16 %v167_v2, %v163_v3  ;;  %v180_v2 = vld [vmem:[#allocation3 + $0x418] sm:$0xff] }
  0xc0   :  { %v4171_v28 = vpack.c.bf16 %v165_v5, %v161_v4  ;;  %v178_v4 = vld [vmem:[#allocation3 + $0x408] sm:$0xff]  ;;  %v184_v3 = vld [vmem:[#allocation3 + $0x438] sm:$0xff] }
  0xc1   :  { %5762 = vst [vmem:[#allocation20_spill] sm:$0xff] %v4173_v29  ;;  %v182_v5 = vld [vmem:[#allocation3 + $0x428] sm:$0xff]  ;;  %v4189_v15 = vpack.c.bf16 %v184_v3, %v180_v2 }
  0xc2   :  { %5761 = vst [vmem:[#allocation19_spill] sm:$0xff] %v4171_v28  ;;  %v4187_v12 = vpack.c.bf16 %v182_v5, %v178_v4 }
  0xc3   :  { %5768 = vst [vmem:[#allocation26_spill] sm:$0xff] %v4189_v15 }
  0xc4   :  { %5767 = vst [vmem:[#allocation25_spill] sm:$0xff] %v4187_v12 }
  0xc5   :  { %1290 = vmatmul.mubr.bf16.gmra.mxu0 %v4159_v44  ;;  %v175_v44 = vld [vmem:[#allocation3 + $0x3f0] sm:$0xff] }
  0xc6   :  { %1563 = vmatmul.mubr.bf16.gmra.mxu1 %v4161_v45  ;;  %1299 = vmatprep.mubr.bf16.mxu0 %v4163_v46  ;;  %v169_v46 = vld [vmem:[#allocation3 + $0x3c0] sm:$0xff]  ;;  %v171_v45 = vld [vmem:[#allocation3 + $0x3d0] sm:$0xff] }
  0xc7   :  { %1572 = vmatprep.mubr.bf16.mxu1 %v4165_v47  ;;  %v173_v47 = vld [vmem:[#allocation3 + $0x3e0] sm:$0xff]  ;;  %v4185_v7 = vpack.c.bf16 %v175_v44, %v171_v45  ;;  %v188_v44 = vld [vmem:[#allocation3 + $0x458] sm:$0xff] }
  0xc8   :  { %v4183_v6 = vpack.c.bf16 %v173_v47, %v169_v46  ;;  %v186_v46 = vld [vmem:[#allocation3 + $0x448] sm:$0xff]  ;;  %v192_v45 = vld [vmem:[#allocation3 + $0x478] sm:$0xff] }
  0xc9   :  { %5766 = vst [vmem:[#allocation24_spill] sm:$0xff] %v4185_v7  ;;  %v190_v47 = vld [vmem:[#allocation3 + $0x468] sm:$0xff]  ;;  %v4201_v3 = vpack.c.bf16 %v192_v45, %v188_v44 }
  0xca   :  { %5765 = vst [vmem:[#allocation23_spill] sm:$0xff] %v4183_v6  ;;  %v4199_v2 = vpack.c.bf16 %v190_v47, %v186_v46 }
  0xcb   :  { %5772 = vst [vmem:[#allocation30_spill] sm:$0xff] %v4201_v3 }
  0xcc   :  { %5771 = vst [vmem:[#allocation29_spill] sm:$0xff] %v4199_v2 }
  0xcd   :  { %1300 = vmatmul.mubr.bf16.gmra.mxu0 %v4171_v28  ;;  %v183_v28 = vld [vmem:[#allocation3 + $0x430] sm:$0xff] }
  0xce   :  { %1573 = vmatmul.mubr.bf16.gmra.mxu1 %v4173_v29  ;;  %1309 = vmatprep.mubr.bf16.mxu0 %v4175_v34  ;;  %v177_v34 = vld [vmem:[#allocation3 + $0x400] sm:$0xff]  ;;  %v179_v29 = vld [vmem:[#allocation3 + $0x410] sm:$0xff] }
  0xcf   :  { %1582 = vmatprep.mubr.bf16.mxu1 %v4177_v35  ;;  %v181_v35 = vld [vmem:[#allocation3 + $0x420] sm:$0xff]  ;;  %v4197_v5 = vpack.c.bf16 %v183_v28, %v179_v29  ;;  %v196_v28 = vld [vmem:[#allocation3 + $0x498] sm:$0xff] }
  0xd0   :  { %v4195_v4 = vpack.c.bf16 %v181_v35, %v177_v34  ;;  %v194_v34 = vld [vmem:[#allocation3 + $0x488] sm:$0xff]  ;;  %v200_v29 = vld [vmem:[#allocation3 + $0x4b8] sm:$0xff] }
  0xd1   :  { %5770 = vst [vmem:[#allocation28_spill] sm:$0xff] %v4197_v5  ;;  %v198_v35 = vld [vmem:[#allocation3 + $0x4a8] sm:$0xff]  ;;  %v4213_v45 = vpack.c.bf16 %v200_v29, %v196_v28 }
  0xd2   :  { %5769 = vst [vmem:[#allocation27_spill] sm:$0xff] %v4195_v4  ;;  %v4211_v44 = vpack.c.bf16 %v198_v35, %v194_v34 }
  0xd3   :  { %5776 = vst [vmem:[#allocation34_spill] sm:$0xff] %v4213_v45 }
  0xd4   :  { %5775 = vst [vmem:[#allocation33_spill] sm:$0xff] %v4211_v44 }
  0xd5   :  { %1310 = vmatmul.mubr.bf16.gmra.mxu0 %v4183_v6  ;;  %v191_v6 = vld [vmem:[#allocation3 + $0x470] sm:$0xff] }
  0xd6   :  { %1583 = vmatmul.mubr.bf16.gmra.mxu1 %v4185_v7  ;;  %1319 = vmatprep.mubr.bf16.mxu0 %v4187_v12  ;;  %v185_v12 = vld [vmem:[#allocation3 + $0x440] sm:$0xff]  ;;  %v187_v7 = vld [vmem:[#allocation3 + $0x450] sm:$0xff] }
  0xd7   :  { %1592 = vmatprep.mubr.bf16.mxu1 %v4189_v15  ;;  %v189_v15 = vld [vmem:[#allocation3 + $0x460] sm:$0xff]  ;;  %v4209_v47 = vpack.c.bf16 %v191_v6, %v187_v7  ;;  %v204_v6 = vld [vmem:[#allocation3 + $0x4d8] sm:$0xff] }
  0xd8   :  { %v4207_v46 = vpack.c.bf16 %v189_v15, %v185_v12  ;;  %v202_v12 = vld [vmem:[#allocation3 + $0x4c8] sm:$0xff]  ;;  %v208_v7 = vld [vmem:[#allocation3 + $0x4f8] sm:$0xff] }
  0xd9   :  { %5774 = vst [vmem:[#allocation32_spill] sm:$0xff] %v4209_v47  ;;  %v206_v15 = vld [vmem:[#allocation3 + $0x4e8] sm:$0xff]  ;;  %v4225_v29 = vpack.c.bf16 %v208_v7, %v204_v6 }
  0xda   :  { %5773 = vst [vmem:[#allocation31_spill] sm:$0xff] %v4207_v46  ;;  %v4223_v28 = vpack.c.bf16 %v206_v15, %v202_v12 }
  0xdb   :  { %5780 = vst [vmem:[#allocation38_spill] sm:$0xff] %v4225_v29 }
  0xdc   :  { %5779 = vst [vmem:[#allocation37_spill] sm:$0xff] %v4223_v28 }
  0xdd   :  { %1320 = vmatmul.mubr.bf16.gmra.mxu0 %v4195_v4  ;;  %v199_v4 = vld [vmem:[#allocation3 + $0x4b0] sm:$0xff] }
  0xde   :  { %1593 = vmatmul.mubr.bf16.gmra.mxu1 %v4197_v5  ;;  %1329 = vmatprep.mubr.bf16.mxu0 %v4199_v2  ;;  %v193_v2 = vld [vmem:[#allocation3 + $0x480] sm:$0xff]  ;;  %v195_v5 = vld [vmem:[#allocation3 + $0x490] sm:$0xff] }
  0xdf   :  { %1602 = vmatprep.mubr.bf16.mxu1 %v4201_v3  ;;  %v197_v3 = vld [vmem:[#allocation3 + $0x4a0] sm:$0xff]  ;;  %v4221_v35 = vpack.c.bf16 %v199_v4, %v195_v5  ;;  %v212_v4 = vld [vmem:[#allocation3 + $0x518] sm:$0xff] }
  0xe0   :  { %v4219_v34 = vpack.c.bf16 %v197_v3, %v193_v2  ;;  %v210_v2 = vld [vmem:[#allocation3 + $0x508] sm:$0xff]  ;;  %v216_v5 = vld [vmem:[#allocation3 + $0x538] sm:$0xff] }
  0xe1   :  { %5778 = vst [vmem:[#allocation36_spill] sm:$0xff] %v4221_v35  ;;  %v214_v3 = vld [vmem:[#allocation3 + $0x528] sm:$0xff]  ;;  %v4237_v7 = vpack.c.bf16 %v216_v5, %v212_v4 }
  0xe2   :  { %5777 = vst [vmem:[#allocation35_spill] sm:$0xff] %v4219_v34  ;;  %v4235_v6 = vpack.c.bf16 %v214_v3, %v210_v2 }
  0xe3   :  { %5784 = vst [vmem:[#allocation42_spill] sm:$0xff] %v4237_v7 }
  0xe4   :  { %5783 = vst [vmem:[#allocation41_spill] sm:$0xff] %v4235_v6 }
  0xe5   :  { %1330 = vmatmul.mubr.bf16.gmra.mxu0 %v4207_v46  ;;  %v207_v46 = vld [vmem:[#allocation3 + $0x4f0] sm:$0xff] }
  0xe6   :  { %1603 = vmatmul.mubr.bf16.gmra.mxu1 %v4209_v47  ;;  %1339 = vmatprep.mubr.bf16.mxu0 %v4211_v44  ;;  %v201_v44 = vld [vmem:[#allocation3 + $0x4c0] sm:$0xff]  ;;  %v203_v47 = vld [vmem:[#allocation3 + $0x4d0] sm:$0xff] }
  0xe7   :  { %1612 = vmatprep.mubr.bf16.mxu1 %v4213_v45  ;;  %v205_v45 = vld [vmem:[#allocation3 + $0x4e0] sm:$0xff]  ;;  %v4233_v15 = vpack.c.bf16 %v207_v46, %v203_v47  ;;  %v220_v46 = vld [vmem:[#allocation3 + $0x558] sm:$0xff] }
  0xe8   :  { %v4231_v12 = vpack.c.bf16 %v205_v45, %v201_v44  ;;  %v218_v44 = vld [vmem:[#allocation3 + $0x548] sm:$0xff]  ;;  %v224_v47 = vld [vmem:[#allocation3 + $0x578] sm:$0xff] }
  0xe9   :  { %5782 = vst [vmem:[#allocation40_spill] sm:$0xff] %v4233_v15  ;;  %v222_v45 = vld [vmem:[#allocation3 + $0x568] sm:$0xff]  ;;  %v4249_v5 = vpack.c.bf16 %v224_v47, %v220_v46 }
  0xea   :  { %5781 = vst [vmem:[#allocation39_spill] sm:$0xff] %v4231_v12  ;;  %v4247_v4 = vpack.c.bf16 %v222_v45, %v218_v44 }
  0xeb   :  { %5788 = vst [vmem:[#allocation46_spill] sm:$0xff] %v4249_v5 }
  0xec   :  { %5787 = vst [vmem:[#allocation45_spill] sm:$0xff] %v4247_v4 }
  0xed   :  { %1340 = vmatmul.mubr.bf16.gmra.mxu0 %v4219_v34  ;;  %v215_v34 = vld [vmem:[#allocation3 + $0x530] sm:$0xff] }
  0xee   :  { %1613 = vmatmul.mubr.bf16.gmra.mxu1 %v4221_v35  ;;  %1349 = vmatprep.mubr.bf16.mxu0 %v4223_v28  ;;  %v209_v28 = vld [vmem:[#allocation3 + $0x500] sm:$0xff]  ;;  %v211_v35 = vld [vmem:[#allocation3 + $0x510] sm:$0xff] }
  0xef   :  { %1622 = vmatprep.mubr.bf16.mxu1 %v4225_v29  ;;  %v213_v29 = vld [vmem:[#allocation3 + $0x520] sm:$0xff]  ;;  %v4245_v3 = vpack.c.bf16 %v215_v34, %v211_v35  ;;  %v228_v34 = vld [vmem:[#allocation3 + $0x598] sm:$0xff] }
  0xf0   :  { %v4243_v2 = vpack.c.bf16 %v213_v29, %v209_v28  ;;  %v226_v28 = vld [vmem:[#allocation3 + $0x588] sm:$0xff]  ;;  %v232_v35 = vld [vmem:[#allocation3 + $0x5b8] sm:$0xff] }
  0xf1   :  { %5786 = vst [vmem:[#allocation44_spill] sm:$0xff] %v4245_v3  ;;  %v230_v29 = vld [vmem:[#allocation3 + $0x5a8] sm:$0xff]  ;;  %v4261_v47 = vpack.c.bf16 %v232_v35, %v228_v34 }
  0xf2   :  { %5785 = vst [vmem:[#allocation43_spill] sm:$0xff] %v4243_v2  ;;  %v4259_v46 = vpack.c.bf16 %v230_v29, %v226_v28 }
  0xf3   :  { %5792 = vst [vmem:[#allocation50_spill] sm:$0xff] %v4261_v47 }
  0xf4   :  { %5791 = vst [vmem:[#allocation49_spill] sm:$0xff] %v4259_v46 }
  0xf5   :  { %1350 = vmatmul.mubr.bf16.gmra.mxu0 %v4231_v12  ;;  %v223_v12 = vld [vmem:[#allocation3 + $0x570] sm:$0xff] }
  0xf6   :  { %1623 = vmatmul.mubr.bf16.gmra.mxu1 %v4233_v15  ;;  %1359 = vmatprep.mubr.bf16.mxu0 %v4235_v6  ;;  %v217_v6 = vld [vmem:[#allocation3 + $0x540] sm:$0xff]  ;;  %v219_v15 = vld [vmem:[#allocation3 + $0x550] sm:$0xff] }
  0xf7   :  { %1632 = vmatprep.mubr.bf16.mxu1 %v4237_v7  ;;  %v221_v7 = vld [vmem:[#allocation3 + $0x560] sm:$0xff]  ;;  %v4257_v45 = vpack.c.bf16 %v223_v12, %v219_v15  ;;  %v236_v12 = vld [vmem:[#allocation3 + $0x5d8] sm:$0xff] }
  0xf8   :  { %v4255_v44 = vpack.c.bf16 %v221_v7, %v217_v6  ;;  %v234_v6 = vld [vmem:[#allocation3 + $0x5c8] sm:$0xff]  ;;  %v240_v15 = vld [vmem:[#allocation3 + $0x5f8] sm:$0xff] }
  0xf9   :  { %5790 = vst [vmem:[#allocation48_spill] sm:$0xff] %v4257_v45  ;;  %v238_v7 = vld [vmem:[#allocation3 + $0x5e8] sm:$0xff]  ;;  %v4273_v35 = vpack.c.bf16 %v240_v15, %v236_v12 }
  0xfa   :  { %5789 = vst [vmem:[#allocation47_spill] sm:$0xff] %v4255_v44  ;;  %v4271_v34 = vpack.c.bf16 %v238_v7, %v234_v6  ;;  %v465_v7 = vld [vmem:[%s5695_s2] sm:$0xf] }
  0xfb   :  { %5796 = vst [vmem:[#allocation54_spill] sm:$0xff] %v4273_v35 }
  0xfc   :  { %5795 = vst [vmem:[#allocation53_spill] sm:$0xff] %v4271_v34 }
  0xfd   :  { %1360 = vmatmul.mubr.bf16.gmra.mxu0 %v4243_v2  ;;  %v231_v2 = vld [vmem:[#allocation3 + $0x5b0] sm:$0xff] }
  0xfe   :  { %1633 = vmatmul.mubr.bf16.gmra.mxu1 %v4245_v3  ;;  %1369 = vmatprep.mubr.bf16.mxu0 %v4247_v4  ;;  %v225_v4 = vld [vmem:[#allocation3 + $0x580] sm:$0xff]  ;;  %v227_v3 = vld [vmem:[#allocation3 + $0x590] sm:$0xff] }
  0xff   :  { %1642 = vmatprep.mubr.bf16.mxu1 %v4249_v5  ;;  %v229_v5 = vld [vmem:[#allocation3 + $0x5a0] sm:$0xff]  ;;  %v4269_v29 = vpack.c.bf16 %v231_v2, %v227_v3 }
 0x100   :  { %v4267_v28 = vpack.c.bf16 %v229_v5, %v225_v4  ;;  %v467_v4 = vlaneseq }
 0x101   :  { %5794 = vst [vmem:[#allocation52_spill] sm:$0xff] %v4269_v29 }
 0x102   :  { %5793 = vst [vmem:[#allocation51_spill] sm:$0xff] %v4267_v28  ;;  %v4283_v3 = vshrl.u32 %v467_v4, 7 }
 0x104   :  { %5799 = vst [vmem:[#allocation57_spill] sm:$0xff] %v4283_v3  ;;  %v5741_v6 = vsub.s32 0, %v4283_v3 }
 0x105   :  { %1370 = vmatmul.mubr.bf16.gmra.mxu0 %v4255_v44  ;;  %v239_v44 = vld [vmem:[#allocation3 + $0x5f0] sm:$0xff] }
 0x106   :  { %1643 = vmatmul.mubr.bf16.gmra.mxu1 %v4257_v45  ;;  %1379 = vmatprep.mubr.bf16.mxu0 %v4259_v46  ;;  %v233_v46 = vld [vmem:[#allocation3 + $0x5c0] sm:$0xff]  ;;  %v235_v45 = vld [vmem:[#allocation3 + $0x5d0] sm:$0xff] }
 0x107   :  { %1652 = vmatprep.mubr.bf16.mxu1 %v4261_v47  ;;  %v237_v47 = vld [vmem:[#allocation3 + $0x5e0] sm:$0xff]  ;;  %v4281_v2 = vpack.c.bf16 %v239_v44, %v235_v45  ;;  %v4296_v44 = vrot.slane %v465_v7, %v5741_v6 }
 0x108   :  { %v4279_v5 = vpack.c.bf16 %v237_v47, %v233_v46  ;;  %v5742_v46 = vsub.s32 1, %v4283_v3 }
 0x109   :  { %5798 = vst [vmem:[#allocation56_spill] sm:$0xff] %v4281_v2 }
 0x10a   :  { %5797 = vst [vmem:[#allocation55_spill] sm:$0xff] %v4279_v5  ;;  %v4300_v45 = vrot.slane %v465_v7, %v5742_v46 }
 0x10d   :  { %1380 = vmatmul.mubr.bf16.gmra.mxu0 %v4267_v28 }
 0x10e   :  { %1653 = vmatmul.mubr.bf16.gmra.mxu1 %v4269_v29  ;;  %1389 = vmatprep.mubr.bf16.mxu0 %v4271_v34  ;;  %v5804_v29 = vld [vmem:[#allocation11_spill] sm:$0xff] }
 0x10f   :  { %1662 = vmatprep.mubr.bf16.mxu1 %v4273_v35 }
 0x115   :  { %1390 = vmatmul.mubr.bf16.gmra.mxu0 %v4279_v5 }
 0x116   :  { %1663 = vmatmul.mubr.bf16.gmra.mxu1 %v4281_v2  ;;  %1705 = vmatprep.mubr.bf16.mxu0 %v3997_v53 }
 0x117   :  { %1978 = vmatprep.mubr.bf16.mxu1 %v3999_v54 }
 0x11d   :  { %v1161_v47 = vpop.f32.mrf.mxu0  ;;  %1706 = vmatmul.mubr.bf16.vlgmr.msra.gmra.mxu0 %v4003_v16 }
 0x11e   :  { %v1434_v53 = vpop.f32.mrf.mxu1  ;;  %1979 = vmatmul.mubr.bf16.vlgmr.msra.gmra.mxu1 %v4005_v17  ;;  %v1162_v54 = vadd.f32 %v1161_v47, %v4296_v44  ;;  %1715 = vmatprep.mubr.bf16.mxu0 %v4007_v20 }
 0x11f   :  { %1988 = vmatprep.mubr.bf16.mxu1 %v4009_v21  ;;  %v1163_v12 = vpop.f32.mrf.mxu0 }
 0x120   :  { %v1436_v15 = vpop.f32.mrf.mxu1  ;;  %v4307_v4 = vadd.f32 %v1434_v53, %v1162_v54  ;;  %v1164_v6 = vadd.f32 %v1163_v12, %v4300_v45 }
 0x121   :  { %v1165_v7 = vpop.f32.mrf.mxu0 }
 0x122   :  { %v1438_v46 = vpop.f32.mrf.mxu1  ;;  %v4310_v3 = vadd.f32 %v1436_v15, %v1164_v6  ;;  %v1166_v16 = vadd.f32 %v1165_v7, %v4296_v44  ;;  %3526 = vtanh.f32 %v4307_v4 }
 0x123   :  { %v1167_v2 = vpop.f32.mrf.mxu0 }
 0x124   :  { %v1440_v17 = vpop.f32.mrf.mxu1  ;;  %v4313_v5 = vadd.f32 %v1438_v46, %v1166_v16  ;;  %v1168_v20 = vadd.f32 %v1167_v2, %v4300_v45  ;;  %3528 = vtanh.f32 %v4310_v3 }
 0x125   :  { %v1171_v47 = vpop.f32.mrf.mxu0  ;;  %1716 = vmatmul.mubr.bf16.gmra.mxu0 %v4015_v36 }
 0x126   :  { %v1444_v21 = vpop.f32.mrf.mxu1  ;;  %1989 = vmatmul.mubr.bf16.gmra.mxu1 %v4017_v37  ;;  %v4318_v53 = vadd.f32 %v1440_v17, %v1168_v20  ;;  %v1172_v54 = vadd.f32 %v1171_v47, %v4296_v44  ;;  %1725 = vmatprep.mubr.bf16.mxu0 %v4019_v38  ;;  %3530 = vtanh.f32 %v4313_v5 }
 0x127   :  { %1998 = vmatprep.mubr.bf16.mxu1 %v4021_v39  ;;  %v1173_v6 = vpop.f32.mrf.mxu0 }
 0x128   :  { %v1446_v12 = vpop.f32.mrf.mxu1  ;;  %v4323_v46 = vadd.f32 %v1444_v21, %v1172_v54  ;;  %v1174_v2 = vadd.f32 %v1173_v6, %v4300_v45  ;;  %3532 = vtanh.f32 %v4318_v53 }
 0x129   :  { %v1175_v15 = vpop.f32.mrf.mxu0 }
 0x12a   :  { %v1448_v7 = vpop.f32.mrf.mxu1  ;;  %v4326_v16 = vadd.f32 %v1446_v12, %v1174_v2  ;;  %v1176_v36 = vadd.f32 %v1175_v15, %v4296_v44  ;;  %3534 = vtanh.f32 %v4323_v46  ;;  %v5822_v46 = vld [vmem:[#allocation24_spill] sm:$0xff] }
 0x12b   :  { %v1177_v37 = vpop.f32.mrf.mxu0 }
 0x12c   :  { %v1450_v17 = vpop.f32.mrf.mxu1  ;;  %v4329_v20 = vadd.f32 %v1448_v7, %v1176_v36  ;;  %v1178_v38 = vadd.f32 %v1177_v37, %v4300_v45  ;;  %3536 = vtanh.f32 %v4326_v16 }
 0x12d   :  { %v1181_v47 = vpop.f32.mrf.mxu0  ;;  %1726 = vmatmul.mubr.bf16.gmra.mxu0 %v4027_v58 }
 0x12e   :  { %v1454_v39 = vpop.f32.mrf.mxu1  ;;  %1999 = vmatmul.mubr.bf16.gmra.mxu1 %v4029_v59  ;;  %v4334_v21 = vadd.f32 %v1450_v17, %v1178_v38  ;;  %v1182_v54 = vadd.f32 %v1181_v47, %v4296_v44  ;;  %1735 = vmatprep.mubr.bf16.mxu0 %v4031_v60  ;;  %3538 = vtanh.f32 %v4329_v20  ;;  %v5824_v20 = vld [vmem:[#allocation26_spill] sm:$0xff] }
 0x12f   :  { %2008 = vmatprep.mubr.bf16.mxu1 %v4033_v61  ;;  %v1183_v6 = vpop.f32.mrf.mxu0 }
 0x130   :  { %v1456_v12 = vpop.f32.mrf.mxu1  ;;  %v4339_v2 = vadd.f32 %v1454_v39, %v1182_v54  ;;  %v1184_v15 = vadd.f32 %v1183_v6, %v4300_v45  ;;  %3540 = vtanh.f32 %v4334_v21 }
 0x131   :  { %v1185_v7 = vpop.f32.mrf.mxu0 }
 0x132   :  { %v1458_v36 = vpop.f32.mrf.mxu1  ;;  %v4342_v37 = vadd.f32 %v1456_v12, %v1184_v15  ;;  %v1186_v58 = vadd.f32 %v1185_v7, %v4296_v44  ;;  %3542 = vtanh.f32 %v4339_v2 }
 0x133   :  { %v1187_v59 = vpop.f32.mrf.mxu0 }
 0x134   :  { %v1460_v17 = vpop.f32.mrf.mxu1  ;;  %v4345_v38 = vadd.f32 %v1458_v36, %v1186_v58  ;;  %v1188_v60 = vadd.f32 %v1187_v59, %v4300_v45  ;;  %3544 = vtanh.f32 %v4342_v37 }
 0x135   :  { %v1191_v47 = vpop.f32.mrf.mxu0  ;;  %1736 = vmatmul.mubr.bf16.gmra.mxu0 %v4039_v13 }
 0x136   :  { %v1464_v61 = vpop.f32.mrf.mxu1  ;;  %2009 = vmatmul.mubr.bf16.gmra.mxu1 %v4041_v14  ;;  %v4350_v39 = vadd.f32 %v1460_v17, %v1188_v60  ;;  %v1192_v54 = vadd.f32 %v1191_v47, %v4296_v44  ;;  %1745 = vmatprep.mubr.bf16.mxu0 %v4043_v18  ;;  %3546 = vtanh.f32 %v4345_v38 }
 0x137   :  { %2018 = vmatprep.mubr.bf16.mxu1 %v4045_v19  ;;  %v1193_v6 = vpop.f32.mrf.mxu0 }
 0x138   :  { %v1466_v12 = vpop.f32.mrf.mxu1  ;;  %v4355_v15 = vadd.f32 %v1464_v61, %v1192_v54  ;;  %v1194_v7 = vadd.f32 %v1193_v6, %v4300_v45  ;;  %3548 = vtanh.f32 %v4350_v39 }
 0x139   :  { %v1195_v36 = vpop.f32.mrf.mxu0 }
 0x13a   :  { %v1468_v58 = vpop.f32.mrf.mxu1  ;;  %v4358_v59 = vadd.f32 %v1466_v12, %v1194_v7  ;;  %v1196_v13 = vadd.f32 %v1195_v36, %v4296_v44  ;;  %3550 = vtanh.f32 %v4355_v15 }
 0x13b   :  { %v1197_v14 = vpop.f32.mrf.mxu0 }
 0x13c   :  { %v1470_v17 = vpop.f32.mrf.mxu1  ;;  %v4361_v60 = vadd.f32 %v1468_v58, %v1196_v13  ;;  %v1198_v18 = vadd.f32 %v1197_v14, %v4300_v45  ;;  %3552 = vtanh.f32 %v4358_v59 }
 0x13d   :  { %v1201_v47 = vpop.f32.mrf.mxu0  ;;  %1746 = vmatmul.mubr.bf16.gmra.mxu0 %v4051_v40 }
 0x13e   :  { %v1474_v19 = vpop.f32.mrf.mxu1  ;;  %2019 = vmatmul.mubr.bf16.gmra.mxu1 %v4053_v41  ;;  %v4366_v61 = vadd.f32 %v1470_v17, %v1198_v18  ;;  %v1202_v54 = vadd.f32 %v1201_v47, %v4296_v44  ;;  %1755 = vmatprep.mubr.bf16.mxu0 %v4055_v42  ;;  %3554 = vtanh.f32 %v4361_v60 }
 0x13f   :  { %2028 = vmatprep.mubr.bf16.mxu1 %v4057_v43  ;;  %v1203_v6 = vpop.f32.mrf.mxu0 }
 0x140   :  { %v1476_v12 = vpop.f32.mrf.mxu1  ;;  %v4371_v7 = vadd.f32 %v1474_v19, %v1202_v54  ;;  %v1204_v36 = vadd.f32 %v1203_v6, %v4300_v45  ;;  %3556 = vtanh.f32 %v4366_v61 }
 0x141   :  { %v1205_v58 = vpop.f32.mrf.mxu0 }
 0x142   :  { %v1478_v13 = vpop.f32.mrf.mxu1  ;;  %v4374_v14 = vadd.f32 %v1476_v12, %v1204_v36  ;;  %v1206_v40 = vadd.f32 %v1205_v58, %v4296_v44 }
 0x143   :  { %v1207_v41 = vpop.f32.mrf.mxu0 }
 0x144   :  { %v1480_v17 = vpop.f32.mrf.mxu1  ;;  %v4377_v18 = vadd.f32 %v1478_v13, %v1206_v40  ;;  %v1208_v42 = vadd.f32 %v1207_v41, %v4300_v45 }
 0x145   :  { %v1211_v47 = vpop.f32.mrf.mxu0  ;;  %1756 = vmatmul.mubr.bf16.gmra.mxu0 %v4063_v62 }
 0x146   :  { %v1484_v43 = vpop.f32.mrf.mxu1  ;;  %2029 = vmatmul.mubr.bf16.gmra.mxu1 %v4065_v63  ;;  %v4382_v19 = vadd.f32 %v1480_v17, %v1208_v42  ;;  %v1212_v54 = vadd.f32 %v1211_v47, %v4296_v44  ;;  %1765 = vmatprep.mubr.bf16.mxu0 %v4067_v0 }
 0x147   :  { %2038 = vmatprep.mubr.bf16.mxu1 %v4069_v1  ;;  %v1213_v6 = vpop.f32.mrf.mxu0 }
 0x148   :  { %v1486_v12 = vpop.f32.mrf.mxu1  ;;  %v4387_v36 = vadd.f32 %v1484_v43, %v1212_v54  ;;  %v1214_v58 = vadd.f32 %v1213_v6, %v4300_v45 }
 0x149   :  { %v1215_v13 = vpop.f32.mrf.mxu0 }
 0x14a   :  { %v1488_v40 = vpop.f32.mrf.mxu1  ;;  %v4390_v41 = vadd.f32 %v1486_v12, %v1214_v58  ;;  %v1216_v62 = vadd.f32 %v1215_v13, %v4296_v44 }
 0x14b   :  { %v1217_v63 = vpop.f32.mrf.mxu0 }
 0x14c   :  { %v1490_v17 = vpop.f32.mrf.mxu1  ;;  %v4393_v42 = vadd.f32 %v1488_v40, %v1216_v62  ;;  %v1218_v0 = vadd.f32 %v1217_v63, %v4300_v45 }
 0x14d   :  { %v1221_v47 = vpop.f32.mrf.mxu0  ;;  %1766 = vmatmul.mubr.bf16.gmra.mxu0 %v4075_v22 }
 0x14e   :  { %v1494_v1 = vpop.f32.mrf.mxu1  ;;  %2039 = vmatmul.mubr.bf16.gmra.mxu1 %v4077_v23  ;;  %v4398_v43 = vadd.f32 %v1490_v17, %v1218_v0  ;;  %v1222_v54 = vadd.f32 %v1221_v47, %v4296_v44  ;;  %1775 = vmatprep.mubr.bf16.mxu0 %v4079_v24 }
 0x14f   :  { %2048 = vmatprep.mubr.bf16.mxu1 %v4081_v25  ;;  %v1223_v6 = vpop.f32.mrf.mxu0 }
 0x150   :  { %v1496_v12 = vpop.f32.mrf.mxu1  ;;  %v4403_v58 = vadd.f32 %v1494_v1, %v1222_v54  ;;  %v1224_v13 = vadd.f32 %v1223_v6, %v4300_v45 }
 0x151   :  { %v1225_v40 = vpop.f32.mrf.mxu0 }
 0x152   :  { %v1498_v62 = vpop.f32.mrf.mxu1  ;;  %v4406_v63 = vadd.f32 %v1496_v12, %v1224_v13  ;;  %v1226_v22 = vadd.f32 %v1225_v40, %v4296_v44 }
 0x153   :  { %v1227_v23 = vpop.f32.mrf.mxu0 }
 0x154   :  { %v1500_v17 = vpop.f32.mrf.mxu1  ;;  %v4409_v0 = vadd.f32 %v1498_v62, %v1226_v22  ;;  %v1228_v24 = vadd.f32 %v1227_v23, %v4300_v45 }
 0x155   :  { %v1231_v47 = vpop.f32.mrf.mxu0  ;;  %1776 = vmatmul.mubr.bf16.gmra.mxu0 %v4087_v48 }
 0x156   :  { %v1504_v25 = vpop.f32.mrf.mxu1  ;;  %2049 = vmatmul.mubr.bf16.gmra.mxu1 %v4089_v49  ;;  %v4414_v1 = vadd.f32 %v1500_v17, %v1228_v24  ;;  %v1232_v54 = vadd.f32 %v1231_v47, %v4296_v44  ;;  %1785 = vmatprep.mubr.bf16.mxu0 %v4091_v52 }
 0x157   :  { %2058 = vmatprep.mubr.bf16.mxu1 %v4093_v55  ;;  %v1233_v6 = vpop.f32.mrf.mxu0 }
 0x158   :  { %v1506_v12 = vpop.f32.mrf.mxu1  ;;  %v4419_v13 = vadd.f32 %v1504_v25, %v1232_v54  ;;  %v1234_v40 = vadd.f32 %v1233_v6, %v4300_v45 }
 0x159   :  { %v1235_v62 = vpop.f32.mrf.mxu0 }
 0x15a   :  { %v1508_v22 = vpop.f32.mrf.mxu1  ;;  %v4422_v23 = vadd.f32 %v1506_v12, %v1234_v40  ;;  %v1236_v48 = vadd.f32 %v1235_v62, %v4296_v44 }
 0x15b   :  { %v1237_v49 = vpop.f32.mrf.mxu0 }
 0x15c   :  { %v1510_v17 = vpop.f32.mrf.mxu1  ;;  %v4425_v24 = vadd.f32 %v1508_v22, %v1236_v48  ;;  %v1238_v52 = vadd.f32 %v1237_v49, %v4300_v45 }
 0x15d   :  { %v1241_v47 = vpop.f32.mrf.mxu0  ;;  %1786 = vmatmul.mubr.bf16.gmra.mxu0 %v4099_v10 }
 0x15e   :  { %v1514_v55 = vpop.f32.mrf.mxu1  ;;  %2059 = vmatmul.mubr.bf16.gmra.mxu1 %v4101_v11  ;;  %v4430_v25 = vadd.f32 %v1510_v17, %v1238_v52  ;;  %v1242_v54 = vadd.f32 %v1241_v47, %v4296_v44  ;;  %1795 = vmatprep.mubr.bf16.mxu0 %v4103_v26 }
 0x15f   :  { %2068 = vmatprep.mubr.bf16.mxu1 %v4105_v27  ;;  %v1243_v6 = vpop.f32.mrf.mxu0 }
 0x160   :  { %v1516_v12 = vpop.f32.mrf.mxu1  ;;  %v4435_v40 = vadd.f32 %v1514_v55, %v1242_v54  ;;  %v1244_v62 = vadd.f32 %v1243_v6, %v4300_v45 }
 0x161   :  { %v1245_v22 = vpop.f32.mrf.mxu0 }
 0x162   :  { %v1518_v48 = vpop.f32.mrf.mxu1  ;;  %v4438_v49 = vadd.f32 %v1516_v12, %v1244_v62  ;;  %v1246_v10 = vadd.f32 %v1245_v22, %v4296_v44 }
 0x163   :  { %v1247_v11 = vpop.f32.mrf.mxu0 }
 0x164   :  { %v1520_v17 = vpop.f32.mrf.mxu1  ;;  %v4441_v52 = vadd.f32 %v1518_v48, %v1246_v10  ;;  %v1248_v26 = vadd.f32 %v1247_v11, %v4300_v45 }
 0x165   :  { %v1251_v47 = vpop.f32.mrf.mxu0  ;;  %1796 = vmatmul.mubr.bf16.gmra.mxu0 %v4111_v50 }
 0x166   :  { %v1524_v27 = vpop.f32.mrf.mxu1  ;;  %2069 = vmatmul.mubr.bf16.gmra.mxu1 %v4113_v51  ;;  %v4446_v55 = vadd.f32 %v1520_v17, %v1248_v26  ;;  %v1252_v54 = vadd.f32 %v1251_v47, %v4296_v44  ;;  %1805 = vmatprep.mubr.bf16.mxu0 %v4115_v56 }
 0x167   :  { %2078 = vmatprep.mubr.bf16.mxu1 %v4117_v57  ;;  %v1253_v6 = vpop.f32.mrf.mxu0 }
 0x168   :  { %v1526_v12 = vpop.f32.mrf.mxu1  ;;  %v4451_v62 = vadd.f32 %v1524_v27, %v1252_v54  ;;  %v1254_v22 = vadd.f32 %v1253_v6, %v4300_v45 }
 0x169   :  { %v1255_v48 = vpop.f32.mrf.mxu0 }
 0x16a   :  { %v1528_v10 = vpop.f32.mrf.mxu1  ;;  %v4454_v11 = vadd.f32 %v1526_v12, %v1254_v22  ;;  %v1256_v50 = vadd.f32 %v1255_v48, %v4296_v44 }
 0x16b   :  { %v1257_v51 = vpop.f32.mrf.mxu0 }
 0x16c   :  { %v1530_v17 = vpop.f32.mrf.mxu1  ;;  %v4457_v26 = vadd.f32 %v1528_v10, %v1256_v50  ;;  %v1258_v56 = vadd.f32 %v1257_v51, %v4300_v45 }
 0x16d   :  { %v1261_v47 = vpop.f32.mrf.mxu0  ;;  %1806 = vmatmul.mubr.bf16.gmra.mxu0 %v4123_v30 }
 0x16e   :  { %v1534_v57 = vpop.f32.mrf.mxu1  ;;  %2079 = vmatmul.mubr.bf16.gmra.mxu1 %v4125_v31  ;;  %v4462_v27 = vadd.f32 %v1530_v17, %v1258_v56  ;;  %v1262_v54 = vadd.f32 %v1261_v47, %v4296_v44  ;;  %1815 = vmatprep.mubr.bf16.mxu0 %v4127_v32 }
 0x16f   :  { %2088 = vmatprep.mubr.bf16.mxu1 %v4129_v33  ;;  %v1263_v6 = vpop.f32.mrf.mxu0 }
 0x170   :  { %v1536_v12 = vpop.f32.mrf.mxu1  ;;  %v4467_v22 = vadd.f32 %v1534_v57, %v1262_v54  ;;  %v1264_v48 = vadd.f32 %v1263_v6, %v4300_v45  ;;  %v5800_v6 = vld [vmem:[#allocation9_spill] sm:$0xff] }
 0x171   :  { %v1265_v10 = vpop.f32.mrf.mxu0 }
 0x172   :  { %v1538_v50 = vpop.f32.mrf.mxu1  ;;  %v4470_v51 = vadd.f32 %v1536_v12, %v1264_v48  ;;  %v1266_v30 = vadd.f32 %v1265_v10, %v4296_v44  ;;  %v5801_v12 = vld [vmem:[#allocation10_spill] sm:$0xff] }
 0x173   :  { %v1267_v31 = vpop.f32.mrf.mxu0 }
 0x174   :  { %v1540_v17 = vpop.f32.mrf.mxu1  ;;  %v4473_v56 = vadd.f32 %v1538_v50, %v1266_v30  ;;  %v1268_v32 = vadd.f32 %v1267_v31, %v4300_v45 }
 0x175   :  { %v1271_v47 = vpop.f32.mrf.mxu0  ;;  %1816 = vmatmul.mubr.bf16.gmra.mxu0 %v4135_v8 }
 0x176   :  { %v1544_v33 = vpop.f32.mrf.mxu1  ;;  %2089 = vmatmul.mubr.bf16.gmra.mxu1 %v4137_v9  ;;  %v4478_v57 = vadd.f32 %v1540_v17, %v1268_v32  ;;  %v1272_v54 = vadd.f32 %v1271_v47, %v4296_v44  ;;  %1825 = vmatprep.mubr.bf16.mxu0 %v5800_v6 }
 0x177   :  { %2098 = vmatprep.mubr.bf16.mxu1 %v5801_v12  ;;  %v1273_v48 = vpop.f32.mrf.mxu0 }
 0x178   :  { %v1546_v10 = vpop.f32.mrf.mxu1  ;;  %v4483_v50 = vadd.f32 %v1544_v33, %v1272_v54  ;;  %v1274_v30 = vadd.f32 %v1273_v48, %v4300_v45  ;;  %v5805_v33 = vld [vmem:[#allocation12_spill] sm:$0xff] }
 0x179   :  { %v1275_v31 = vpop.f32.mrf.mxu0 }
 0x17a   :  { %v1548_v35 = vpop.f32.mrf.mxu1  ;;  %v4486_v34 = vadd.f32 %v1546_v10, %v1274_v30  ;;  %v1276_v8 = vadd.f32 %v1275_v31, %v4296_v44  ;;  %v5807_v10 = vld [vmem:[#allocation13_spill] sm:$0xff]  ;;  %v5808_v30 = vld [vmem:[#allocation14_spill] sm:$0xff] }
 0x17b   :  { %v1277_v9 = vpop.f32.mrf.mxu0 }
 0x17c   :  { %5802 = vst [vmem:[#allocation9_spill] sm:$0xff] %v4486_v34  ;;  %v1550_v17 = vpop.f32.mrf.mxu1  ;;  %v4489_v32 = vadd.f32 %v1548_v35, %v1276_v8  ;;  %v1278_v47 = vadd.f32 %v1277_v9, %v4300_v45 }
 0x17d   :  { %v1281_v6 = vpop.f32.mrf.mxu0  ;;  %1826 = vmatmul.mubr.bf16.gmra.mxu0 %v5804_v29 }
 0x17e   :  { %5803 = vst [vmem:[#allocation10_spill] sm:$0xff] %v4489_v32  ;;  %v1554_v12 = vpop.f32.mrf.mxu1  ;;  %2099 = vmatmul.mubr.bf16.gmra.mxu1 %v5805_v33  ;;  %v4494_v54 = vadd.f32 %v1550_v17, %v1278_v47  ;;  %v1282_v48 = vadd.f32 %v1281_v6, %v4296_v44  ;;  %1835 = vmatprep.mubr.bf16.mxu0 %v5807_v10 }
 0x17f   :  { %2108 = vmatprep.mubr.bf16.mxu1 %v5808_v30  ;;  %v1283_v31 = vpop.f32.mrf.mxu0 }
 0x180   :  { %5806 = vst [vmem:[#allocation11_spill] sm:$0xff] %v4494_v54  ;;  %v1556_v28 = vpop.f32.mrf.mxu1  ;;  %v4499_v35 = vadd.f32 %v1554_v12, %v1282_v48  ;;  %v1284_v8 = vadd.f32 %v1283_v31, %v4300_v45  ;;  %v5812_v54 = vld [vmem:[#allocation15_spill] sm:$0xff]  ;;  %v5813_v12 = vld [vmem:[#allocation16_spill] sm:$0xff] }
 0x181   :  { %v1285_v9 = vpop.f32.mrf.mxu0 }
 0x182   :  { %5809 = vst [vmem:[#allocation12_spill] sm:$0xff] %v4499_v35  ;;  %v1558_v32 = vpop.f32.mrf.mxu1  ;;  %v4502_v34 = vadd.f32 %v1556_v28, %v1284_v8  ;;  %v1286_v29 = vadd.f32 %v1285_v9, %v4296_v44  ;;  %v5815_v28 = vld [vmem:[#allocation17_spill] sm:$0xff]  ;;  %v5816_v8 = vld [vmem:[#allocation18_spill] sm:$0xff] }
 0x183   :  { %v1287_v17 = vpop.f32.mrf.mxu0 }
 0x184   :  { %5810 = vst [vmem:[#allocation13_spill] sm:$0xff] %v4502_v34  ;;  %v1560_v47 = vpop.f32.mrf.mxu1  ;;  %v4505_v33 = vadd.f32 %v1558_v32, %v1286_v29  ;;  %v1288_v6 = vadd.f32 %v1287_v17, %v4300_v45 }
 0x185   :  { %v1291_v10 = vpop.f32.mrf.mxu0  ;;  %1836 = vmatmul.mubr.bf16.gmra.mxu0 %v5812_v54 }
 0x186   :  { %5811 = vst [vmem:[#allocation14_spill] sm:$0xff] %v4505_v33  ;;  %v1564_v30 = vpop.f32.mrf.mxu1  ;;  %2109 = vmatmul.mubr.bf16.gmra.mxu1 %v5813_v12  ;;  %v4510_v48 = vadd.f32 %v1560_v47, %v1288_v6  ;;  %v1292_v31 = vadd.f32 %v1291_v10, %v4296_v44  ;;  %1845 = vmatprep.mubr.bf16.mxu0 %v5815_v28 }
 0x187   :  { %2118 = vmatprep.mubr.bf16.mxu1 %v5816_v8  ;;  %v1293_v9 = vpop.f32.mrf.mxu0 }
 0x188   :  { %5814 = vst [vmem:[#allocation15_spill] sm:$0xff] %v4510_v48  ;;  %v1566_v34 = vpop.f32.mrf.mxu1  ;;  %v4515_v32 = vadd.f32 %v1564_v30, %v1292_v31  ;;  %v1294_v29 = vadd.f32 %v1293_v9, %v4300_v45  ;;  %v5817_v48 = vld [vmem:[#allocation19_spill] sm:$0xff]  ;;  %v5818_v30 = vld [vmem:[#allocation20_spill] sm:$0xff]  ;;  %v5819_v9 = vld [vmem:[#allocation21_spill] sm:$0xff] }
 0x189   :  { %v1295_v17 = vpop.f32.mrf.mxu0 }
 0x18a   :  { %v1568_v33 = vpop.f32.mrf.mxu1  ;;  %v4518_v35 = vadd.f32 %v1566_v34, %v1294_v29  ;;  %v1296_v54 = vadd.f32 %v1295_v17, %v4296_v44  ;;  %v5820_v29 = vld [vmem:[#allocation22_spill] sm:$0xff] }
 0x18b   :  { %v1297_v47 = vpop.f32.mrf.mxu0 }
 0x18c   :  { %v1570_v6 = vpop.f32.mrf.mxu1  ;;  %v4521_v12 = vadd.f32 %v1568_v33, %v1296_v54  ;;  %v1298_v10 = vadd.f32 %v1297_v47, %v4300_v45 }
 0x18d   :  { %v1301_v28 = vpop.f32.mrf.mxu0  ;;  %1846 = vmatmul.mubr.bf16.gmra.mxu0 %v5817_v48 }
 0x18e   :  { %v1574_v8 = vpop.f32.mrf.mxu1  ;;  %2119 = vmatmul.mubr.bf16.gmra.mxu1 %v5818_v30  ;;  %v4527_v31 = vadd.f32 %v1570_v6, %v1298_v10  ;;  %v1302_v34 = vadd.f32 %v1301_v28, %v4296_v44  ;;  %1855 = vmatprep.mubr.bf16.mxu0 %v5819_v9 }
 0x18f   :  { %2128 = vmatprep.mubr.bf16.mxu1 %v5820_v29  ;;  %v1303_v33 = vpop.f32.mrf.mxu0  ;;  %v5823_v29 = vld [vmem:[#allocation25_spill] sm:$0xff] }
 0x190   :  { %v1576_v17 = vpop.f32.mrf.mxu1  ;;  %v4534_v54 = vadd.f32 %v1574_v8, %v1302_v34  ;;  %v1304_v48 = vadd.f32 %v1303_v33, %v4300_v45  ;;  %v5821_v34 = vld [vmem:[#allocation23_spill] sm:$0xff] }
 0x191   :  { %v1305_v4 = vpop.f32.mrf.mxu0 }
 0x192   :  { %v1578_v47 = vpop.f32.mrf.mxu1  ;;  %v4539_v6 = vadd.f32 %v1576_v17, %v1304_v48  ;;  %v1306_v10 = vadd.f32 %v1305_v4, %v4296_v44 }
 0x193   :  { %v1307_v3 = vpop.f32.mrf.mxu0 }
 0x194   :  { %v1580_v28 = vpop.f32.mrf.mxu1  ;;  %v4544_v5 = vadd.f32 %v1578_v47, %v1306_v10  ;;  %v1308_v8 = vadd.f32 %v1307_v3, %v4300_v45  ;;  %v4566_v3 = vpop.eup %3526  ;;  %3558 = vtanh.f32 %v4371_v7 }
 0x195   :  { %v1311_v53 = vpop.f32.mrf.mxu0  ;;  %1856 = vmatmul.mubr.bf16.gmra.mxu0 %v5821_v34  ;;  %v5825_v34 = vld [vmem:[#allocation27_spill] sm:$0xff] }
 0x196   :  { %v1584_v30 = vpop.f32.mrf.mxu1  ;;  %2129 = vmatmul.mubr.bf16.gmra.mxu1 %v5822_v46  ;;  %v4551_v9 = vadd.f32 %v1580_v28, %v1308_v8  ;;  %v1312_v16 = vadd.f32 %v1311_v53, %v4296_v44  ;;  %1865 = vmatprep.mubr.bf16.mxu0 %v5823_v29  ;;  %v4569_v28 = vpop.eup %3528  ;;  %v5826_v46 = vld [vmem:[#allocation28_spill] sm:$0xff]  ;;  %v5827_v29 = vld [vmem:[#allocation29_spill] sm:$0xff]  ;;  %3560 = vtanh.f32 %v4374_v14 }
 0x197   :  { %2138 = vmatprep.mubr.bf16.mxu1 %v5824_v20  ;;  %v1313_v33 = vpop.f32.mrf.mxu0  ;;  %v4575_v53 = vpop.eup %3530  ;;  %v5828_v20 = vld [vmem:[#allocation30_spill] sm:$0xff]  ;;  %3562 = vtanh.f32 %v4377_v18 }
 0x198   :  { %v1586_v21 = vpop.f32.mrf.mxu1  ;;  %v4558_v17 = vadd.f32 %v1584_v30, %v1312_v16  ;;  %v1314_v48 = vadd.f32 %v1313_v33, %v4300_v45  ;;  %v4580_v59 = vpop.eup %3532  ;;  %3564 = vtanh.f32 %v4382_v19 }
 0x199   :  { %v1315_v2 = vpop.f32.mrf.mxu0  ;;  %v4588_v33 = vpop.eup %3534  ;;  %3566 = vtanh.f32 %v4387_v36 }
 0x19a   :  { %v1588_v4 = vpop.f32.mrf.mxu1  ;;  %v4563_v47 = vadd.f32 %v1586_v21, %v1314_v48  ;;  %v1316_v10 = vadd.f32 %v1315_v2, %v4296_v44  ;;  %v4591_v48 = vpop.eup %3536  ;;  %3568 = vtanh.f32 %v4390_v41 }
 0x19b   :  { %v1317_v37 = vpop.f32.mrf.mxu0 }
 0x19c   :  { %v1590_v38 = vpop.f32.mrf.mxu1  ;;  %v4572_v8 = vadd.f32 %v1588_v4, %v1316_v10  ;;  %v1318_v39 = vadd.f32 %v1317_v37, %v4300_v45  ;;  %v4597_v4 = vpop.eup %3538  ;;  %3570 = vtanh.f32 %v4393_v42 }
 0x19d   :  { %v1321_v15 = vpop.f32.mrf.mxu0  ;;  %1866 = vmatmul.mubr.bf16.gmra.mxu0 %v5825_v34 }
 0x19e   :  { %v1594_v30 = vpop.f32.mrf.mxu1  ;;  %2139 = vmatmul.mubr.bf16.gmra.mxu1 %v5826_v46  ;;  %v4583_v16 = vadd.f32 %v1590_v38, %v1318_v39  ;;  %v1322_v60 = vadd.f32 %v1321_v15, %v4296_v44  ;;  %1875 = vmatprep.mubr.bf16.mxu0 %v5827_v29  ;;  %v4600_v38 = vpop.eup %3540  ;;  %3572 = vtanh.f32 %v4398_v43 }
 0x19f   :  { %2148 = vmatprep.mubr.bf16.mxu1 %v5828_v20  ;;  %v1323_v61 = vpop.f32.mrf.mxu0  ;;  %v4606_v15 = vpop.eup %3542  ;;  %v5829_v20 = vld [vmem:[#allocation31_spill] sm:$0xff]  ;;  %3574 = vtanh.f32 %v4403_v58 }
 0x1a0   :  { %v1596_v21 = vpop.f32.mrf.mxu1  ;;  %v4594_v2 = vadd.f32 %v1594_v30, %v1322_v60  ;;  %v1324_v7 = vadd.f32 %v1323_v61, %v4300_v45  ;;  %v4609_v34 = vpop.eup %3544  ;;  %v5830_v61 = vld [vmem:[#allocation32_spill] sm:$0xff]  ;;  %3576 = vtanh.f32 %v4406_v63 }
 0x1a1   :  { %v1325_v10 = vpop.f32.mrf.mxu0  ;;  %v4615_v60 = vpop.eup %3546  ;;  %3578 = vtanh.f32 %v4409_v0 }
 0x1a2   :  { %v1598_v37 = vpop.f32.mrf.mxu1  ;;  %v4603_v14 = vadd.f32 %v1596_v21, %v1324_v7  ;;  %v1326_v39 = vadd.f32 %v1325_v10, %v4296_v44  ;;  %v4620_v41 = vpop.eup %3548  ;;  %v5831_v7 = vld [vmem:[#allocation33_spill] sm:$0xff]  ;;  %v5832_v10 = vld [vmem:[#allocation34_spill] sm:$0xff]  ;;  %3580 = vtanh.f32 %v4414_v1 }
 0x1a3   :  { %v1327_v18 = vpop.f32.mrf.mxu0 }
 0x1a4   :  { %v1600_v30 = vpop.f32.mrf.mxu1  ;;  %v4612_v19 = vadd.f32 %v1598_v37, %v1326_v39  ;;  %v1328_v46 = vadd.f32 %v1327_v18, %v4300_v45  ;;  %v4628_v37 = vpop.eup %3550  ;;  %3582 = vtanh.f32 %v4419_v13 }
 0x1a5   :  { %v1331_v36 = vpop.f32.mrf.mxu0  ;;  %1876 = vmatmul.mubr.bf16.gmra.mxu0 %v5829_v20  ;;  %v4631_v18 = vpop.eup %3552  ;;  %3584 = vtanh.f32 %v4422_v23 }
 0x1a6   :  { %v1604_v29 = vpop.f32.mrf.mxu1  ;;  %2149 = vmatmul.mubr.bf16.gmra.mxu1 %v5830_v61  ;;  %v4623_v21 = vadd.f32 %v1600_v30, %v1328_v46  ;;  %v1332_v42 = vadd.f32 %v1331_v36, %v4296_v44  ;;  %1885 = vmatprep.mubr.bf16.mxu0 %v5831_v7  ;;  %v4637_v30 = vpop.eup %3554  ;;  %3586 = vtanh.f32 %v4425_v24 }
 0x1a7   :  { %2158 = vmatprep.mubr.bf16.mxu1 %v5832_v10  ;;  %v1333_v43 = vpop.f32.mrf.mxu0  ;;  %v4640_v61 = vpop.eup %3556  ;;  %3588 = vtanh.f32 %v4430_v25 }
 0x1a8   :  { %v1606_v39 = vpop.f32.mrf.mxu1  ;;  %v4634_v20 = vadd.f32 %v1604_v29, %v1332_v42  ;;  %v1334_v58 = vadd.f32 %v1333_v43, %v4300_v45  ;;  %5833 = vst [vmem:[#allocation16_spill] sm:$0xff] %v4640_v61  ;;  %v4646_v10 = vpop.eup %3558  ;;  %3590 = vtanh.f32 %v4435_v40 }
 0x1a9   :  { %v1335_v46 = vpop.f32.mrf.mxu0  ;;  %v4649_v42 = vpop.eup %3560  ;;  %3592 = vtanh.f32 %v4438_v49 }
 0x1aa   :  { %v1608_v36 = vpop.f32.mrf.mxu1  ;;  %v4643_v63 = vadd.f32 %v1606_v39, %v1334_v58  ;;  %v1336_v7 = vadd.f32 %v1335_v46, %v4296_v44  ;;  %5834 = vst [vmem:[#allocation17_spill] sm:$0xff] %v4649_v42  ;;  %v4655_v61 = vpop.eup %3562  ;;  %v5836_v58 = vld [vmem:[#allocation35_spill] sm:$0xff]  ;;  %v5837_v46 = vld [vmem:[#allocation36_spill] sm:$0xff]  ;;  %3594 = vtanh.f32 %v4441_v52 }
 0x1ab   :  { %v1337_v0 = vpop.f32.mrf.mxu0  ;;  %5835 = vst [vmem:[#allocation18_spill] sm:$0xff] %v4655_v61  ;;  %v4660_v23 = vpop.eup %3564  ;;  %3596 = vtanh.f32 %v4446_v55 }
 0x1ac   :  { %v1610_v29 = vpop.f32.mrf.mxu1  ;;  %v4652_v1 = vadd.f32 %v1608_v36, %v1336_v7  ;;  %v1338_v43 = vadd.f32 %v1337_v0, %v4300_v45  ;;  %v5838_v36 = vld [vmem:[#allocation37_spill] sm:$0xff]  ;;  %v5839_v7 = vld [vmem:[#allocation38_spill] sm:$0xff]  ;;  %v4668_v0 = vpop.eup %3566  ;;  %3598 = vtanh.f32 %v4451_v62 }
 0x1ad   :  { %v1341_v13 = vpop.f32.mrf.mxu0  ;;  %1886 = vmatmul.mubr.bf16.gmra.mxu0 %v5836_v58  ;;  %v4671_v61 = vpop.eup %3568  ;;  %3600 = vtanh.f32 %v4454_v11 }
 0x1ae   :  { %v1614_v39 = vpop.f32.mrf.mxu1  ;;  %2159 = vmatmul.mubr.bf16.gmra.mxu1 %v5837_v46  ;;  %v4663_v42 = vadd.f32 %v1610_v29, %v1338_v43  ;;  %v1342_v24 = vadd.f32 %v1341_v13, %v4296_v44  ;;  %1895 = vmatprep.mubr.bf16.mxu0 %v5838_v36  ;;  %5840 = vst [vmem:[#allocation19_spill] sm:$0xff] %v4671_v61  ;;  %v4677_v29 = vpop.eup %3570  ;;  %3602 = vtanh.f32 %v4457_v26 }
 0x1af   :  { %2168 = vmatprep.mubr.bf16.mxu1 %v5839_v7  ;;  %v1343_v25 = vpop.f32.mrf.mxu0  ;;  %v4680_v36 = vpop.eup %3572  ;;  %3604 = vtanh.f32 %v4462_v27 }
 0x1b0   :  { %v1616_v58 = vpop.f32.mrf.mxu1  ;;  %v4674_v46 = vadd.f32 %v1614_v39, %v1342_v24  ;;  %v1344_v40 = vadd.f32 %v1343_v25, %v4300_v45  ;;  %5841 = vst [vmem:[#allocation20_spill] sm:$0xff] %v4680_v36  ;;  %v4686_v61 = vpop.eup %3574  ;;  %3606 = vtanh.f32 %v4467_v22 }
 0x1b1   :  { %v1345_v43 = vpop.f32.mrf.mxu0  ;;  %5842 = vst [vmem:[#allocation21_spill] sm:$0xff] %v4686_v61  ;;  %v4689_v24 = vpop.eup %3576  ;;  %3608 = vtanh.f32 %v4470_v51 }
 0x1b2   :  { %v1618_v13 = vpop.f32.mrf.mxu1  ;;  %v4683_v49 = vadd.f32 %v1616_v58, %v1344_v40  ;;  %v1346_v7 = vadd.f32 %v1345_v43, %v4296_v44  ;;  %5843 = vst [vmem:[#allocation22_spill] sm:$0xff] %v4689_v24  ;;  %v4695_v36 = vpop.eup %3578  ;;  %v5845_v40 = vld [vmem:[#allocation39_spill] sm:$0xff]  ;;  %v5846_v43 = vld [vmem:[#allocation40_spill] sm:$0xff]  ;;  %3610 = vtanh.f32 %v4473_v56  ;;  %v5855_v56 = vld [vmem:[#allocation9_spill] sm:$0xff] }
 0x1b3   :  { %v1347_v52 = vpop.f32.mrf.mxu0  ;;  %5844 = vst [vmem:[#allocation23_spill] sm:$0xff] %v4695_v36  ;;  %v4700_v11 = vpop.eup %3580  ;;  %3612 = vtanh.f32 %v4478_v57 }
 0x1b4   :  { %v1620_v39 = vpop.f32.mrf.mxu1  ;;  %v4692_v55 = vadd.f32 %v1618_v13, %v1346_v7  ;;  %v1348_v25 = vadd.f32 %v1347_v52, %v4300_v45  ;;  %5847 = vst [vmem:[#allocation24_spill] sm:$0xff] %v4700_v11  ;;  %v5848_v13 = vld [vmem:[#allocation41_spill] sm:$0xff]  ;;  %v5849_v7 = vld [vmem:[#allocation42_spill] sm:$0xff]  ;;  %v4708_v52 = vpop.eup %3582  ;;  %3614 = vtanh.f32 %v4483_v50  ;;  %v5859_v50 = vld [vmem:[#allocation11_spill] sm:$0xff] }
 0x1b5   :  { %v1351_v62 = vpop.f32.mrf.mxu0  ;;  %1896 = vmatmul.mubr.bf16.gmra.mxu0 %v5845_v40  ;;  %5850 = vst [vmem:[#allocation25_spill] sm:$0xff] %v4708_v52  ;;  %v4711_v36 = vpop.eup %3584  ;;  %3616 = vtanh.f32 %v5855_v56  ;;  %v5863_v11 = vld [vmem:[#allocation12_spill] sm:$0xff] }
 0x1b6   :  { %v1624_v58 = vpop.f32.mrf.mxu1  ;;  %2169 = vmatmul.mubr.bf16.gmra.mxu1 %v5846_v43  ;;  %v4703_v24 = vadd.f32 %v1620_v39, %v1348_v25  ;;  %v1352_v26 = vadd.f32 %v1351_v62, %v4296_v44  ;;  %1905 = vmatprep.mubr.bf16.mxu0 %v5848_v13  ;;  %5851 = vst [vmem:[#allocation26_spill] sm:$0xff] %v4711_v36  ;;  %v4717_v39 = vpop.eup %3586 }
 0x1b7   :  { %2178 = vmatprep.mubr.bf16.mxu1 %v5849_v7  ;;  %v1353_v27 = vpop.f32.mrf.mxu0  ;;  %5852 = vst [vmem:[#allocation27_spill] sm:$0xff] %v4717_v39  ;;  %v4720_v13 = vpop.eup %3588  ;;  %v5857_v39 = vld [vmem:[#allocation10_spill] sm:$0xff] }
 0x1b8   :  { %v1626_v40 = vpop.f32.mrf.mxu1  ;;  %v4714_v43 = vadd.f32 %v1624_v58, %v1352_v26  ;;  %v1354_v22 = vadd.f32 %v1353_v27, %v4300_v45  ;;  %5853 = vst [vmem:[#allocation28_spill] sm:$0xff] %v4720_v13  ;;  %v4726_v36 = vpop.eup %3590  ;;  %3618 = vtanh.f32 %v5857_v39 }
 0x1b9   :  { %v1355_v25 = vpop.f32.mrf.mxu0  ;;  %5854 = vst [vmem:[#allocation29_spill] sm:$0xff] %v4726_v36  ;;  %v4729_v27 = vpop.eup %3592  ;;  %3620 = vtanh.f32 %v5859_v50  ;;  %v5861_v36 = vld [vmem:[#allocation44_spill] sm:$0xff]  ;;  %v5867_v50 = vld [vmem:[#allocation13_spill] sm:$0xff] }
 0x1ba   :  { %v1628_v62 = vpop.f32.mrf.mxu1  ;;  %v4723_v51 = vadd.f32 %v1626_v40, %v1354_v22  ;;  %v1356_v7 = vadd.f32 %v1355_v25, %v4296_v44  ;;  %5856 = vst [vmem:[#allocation30_spill] sm:$0xff] %v4729_v27  ;;  %v4735_v52 = vpop.eup %3594  ;;  %v5860_v25 = vld [vmem:[#allocation43_spill] sm:$0xff]  ;;  %3622 = vtanh.f32 %v5863_v11 }
 0x1bb   :  { %v1357_v58 = vpop.f32.mrf.mxu0  ;;  %5858 = vst [vmem:[#allocation31_spill] sm:$0xff] %v4735_v52  ;;  %v4740_v56 = vpop.eup %3596  ;;  %3624 = vtanh.f32 %v5867_v50 }
 0x1bc   :  { %v1630_v26 = vpop.f32.mrf.mxu1  ;;  %v4732_v57 = vadd.f32 %v1628_v62, %v1356_v7  ;;  %v1358_v13 = vadd.f32 %v1357_v58, %v4300_v45  ;;  %5862 = vst [vmem:[#allocation32_spill] sm:$0xff] %v4740_v56  ;;  %v5864_v62 = vld [vmem:[#allocation45_spill] sm:$0xff]  ;;  %v5865_v7 = vld [vmem:[#allocation46_spill] sm:$0xff]  ;;  %v4748_v58 = vpop.eup %3598 }
 0x1bd   :  { %v1361_v40 = vpop.f32.mrf.mxu0  ;;  %1906 = vmatmul.mubr.bf16.gmra.mxu0 %v5860_v25  ;;  %5866 = vst [vmem:[#allocation33_spill] sm:$0xff] %v4748_v58  ;;  %v4751_v61 = vpop.eup %3600 }
 0x1be   :  { %v1634_v22 = vpop.f32.mrf.mxu1  ;;  %2179 = vmatmul.mubr.bf16.gmra.mxu1 %v5861_v36  ;;  %v4743_v27 = vadd.f32 %v1630_v26, %v1358_v13  ;;  %v1362_v39 = vadd.f32 %v1361_v40, %v4296_v44  ;;  %1915 = vmatprep.mubr.bf16.mxu0 %v5864_v62  ;;  %5868 = vst [vmem:[#allocation34_spill] sm:$0xff] %v4751_v61  ;;  %v5869_v36 = vld [vmem:[#allocation14_spill] sm:$0xff]  ;;  %v4757_v13 = vpop.eup %3602  ;;  %v5870_v26 = vld [vmem:[#allocation15_spill] sm:$0xff] }
 0x1bf   :  { %2188 = vmatprep.mubr.bf16.mxu1 %v5865_v7  ;;  %v1363_v52 = vpop.f32.mrf.mxu0  ;;  %3626 = vtanh.f32 %v5869_v36  ;;  %v4760_v7 = vpop.eup %3604 }
 0x1c0   :  { %v1636_v25 = vpop.f32.mrf.mxu1  ;;  %v4754_v56 = vadd.f32 %v1634_v22, %v1362_v39  ;;  %v1364_v11 = vadd.f32 %v1363_v52, %v4300_v45  ;;  %3628 = vtanh.f32 %v5870_v26  ;;  %5871 = vst [vmem:[#allocation35_spill] sm:$0xff] %v4760_v7  ;;  %v4766_v58 = vpop.eup %3606 }
 0x1c1   :  { %v1365_v40 = vpop.f32.mrf.mxu0  ;;  %3630 = vtanh.f32 %v4515_v32  ;;  %v4769_v39 = vpop.eup %3608 }
 0x1c2   :  { %v1638_v62 = vpop.f32.mrf.mxu1  ;;  %v4763_v50 = vadd.f32 %v1636_v25, %v1364_v11  ;;  %v1366_v61 = vadd.f32 %v1365_v40, %v4296_v44  ;;  %3632 = vtanh.f32 %v4518_v35  ;;  %5872 = vst [vmem:[#allocation36_spill] sm:$0xff] %v4769_v39  ;;  %v4775_v7 = vpop.eup %3610  ;;  %v5874_v11 = vld [vmem:[#allocation47_spill] sm:$0xff]  ;;  %v5875_v40 = vld [vmem:[#allocation48_spill] sm:$0xff] }
 0x1c3   :  { %v1367_v22 = vpop.f32.mrf.mxu0  ;;  %3634 = vtanh.f32 %v4521_v12  ;;  %5873 = vst [vmem:[#allocation37_spill] sm:$0xff] %v4775_v7  ;;  %v4780_v35 = vpop.eup %3612 }
 0x1c4   :  { %v1640_v52 = vpop.f32.mrf.mxu1  ;;  %v4772_v36 = vadd.f32 %v1638_v62, %v1366_v61  ;;  %v1368_v26 = vadd.f32 %v1367_v22, %v4300_v45  ;;  %3636 = vtanh.f32 %v4527_v31  ;;  %v5876_v61 = vld [vmem:[#allocation49_spill] sm:$0xff]  ;;  %v5877_v62 = vld [vmem:[#allocation50_spill] sm:$0xff]  ;;  %v4788_v22 = vpop.eup %3614 }
 0x1c5   :  { %v1371_v32 = vpop.f32.mrf.mxu0  ;;  %1916 = vmatmul.mubr.bf16.gmra.mxu0 %v5874_v11  ;;  %3638 = vtanh.f32 %v4534_v54  ;;  %v4791_v7 = vpop.eup %3616 }
 0x1c6   :  { %v1644_v25 = vpop.f32.mrf.mxu1  ;;  %2189 = vmatmul.mubr.bf16.gmra.mxu1 %v5875_v40  ;;  %v4783_v39 = vadd.f32 %v1640_v52, %v1368_v26  ;;  %v1372_v12 = vadd.f32 %v1371_v32, %v4296_v44  ;;  %1925 = vmatprep.mubr.bf16.mxu0 %v5876_v61  ;;  %3640 = vtanh.f32 %v4539_v6  ;;  %5878 = vst [vmem:[#allocation38_spill] sm:$0xff] %v4791_v7  ;;  %v4797_v52 = vpop.eup %3618 }
 0x1c7   :  { %2198 = vmatprep.mubr.bf16.mxu1 %v5877_v62  ;;  %v1373_v31 = vpop.f32.mrf.mxu0  ;;  %3642 = vtanh.f32 %v4544_v5  ;;  %v4800_v61 = vpop.eup %3620 }
 0x1c8   :  { %v1646_v11 = vpop.f32.mrf.mxu1  ;;  %v4794_v40 = vadd.f32 %v1644_v25, %v1372_v12  ;;  %v1374_v54 = vadd.f32 %v1373_v31, %v4300_v45  ;;  %3644 = vtanh.f32 %v4551_v9  ;;  %5879 = vst [vmem:[#allocation39_spill] sm:$0xff] %v4800_v61  ;;  %v4806_v7 = vpop.eup %3622 }
 0x1c9   :  { %v1375_v26 = vpop.f32.mrf.mxu0  ;;  %3646 = vtanh.f32 %v4558_v17  ;;  %v4809_v12 = vpop.eup %3624 }
 0x1ca   :  { %v1648_v32 = vpop.f32.mrf.mxu1  ;;  %v4803_v6 = vadd.f32 %v1646_v11, %v1374_v54  ;;  %v1376_v62 = vadd.f32 %v1375_v26, %v4296_v44  ;;  %3648 = vtanh.f32 %v4563_v47  ;;  %5880 = vst [vmem:[#allocation40_spill] sm:$0xff] %v4809_v12  ;;  %v5882_v54 = vld [vmem:[#allocation51_spill] sm:$0xff]  ;;  %v5883_v26 = vld [vmem:[#allocation52_spill] sm:$0xff] }
 0x1cb   :  { %v1377_v5 = vpop.f32.mrf.mxu0  ;;  %3650 = vtanh.f32 %v4572_v8 }
 0x1cc   :  { %v1650_v25 = vpop.f32.mrf.mxu1  ;;  %v4812_v9 = vadd.f32 %v1648_v32, %v1376_v62  ;;  %v1378_v31 = vadd.f32 %v1377_v5, %v4300_v45  ;;  %v4815_v61 = vpop.eup %3626  ;;  %3652 = vtanh.f32 %v4583_v16  ;;  %v5884_v32 = vld [vmem:[#allocation53_spill] sm:$0xff]  ;;  %v5885_v62 = vld [vmem:[#allocation54_spill] sm:$0xff] }
 0x1cd   :  { %5881 = vst [vmem:[#allocation41_spill] sm:$0xff] %v4815_v61  ;;  %v1381_v17 = vpop.f32.mrf.mxu0  ;;  %1926 = vmatmul.mubr.bf16.gmra.mxu0 %v5882_v54  ;;  %v4820_v47 = vpop.eup %3628  ;;  %3654 = vtanh.f32 %v4594_v2 }
 0x1ce   :  { %v1654_v11 = vpop.f32.mrf.mxu1  ;;  %2199 = vmatmul.mubr.bf16.gmra.mxu1 %v5883_v26  ;;  %v4823_v12 = vadd.f32 %v1650_v25, %v1378_v31  ;;  %v1382_v8 = vadd.f32 %v1381_v17, %v4296_v44  ;;  %1935 = vmatprep.mubr.bf16.mxu0 %v5884_v32  ;;  %v4828_v5 = vpop.eup %3630  ;;  %3656 = vtanh.f32 %v4603_v14 }
 0x1cf   :  { %2208 = vmatprep.mubr.bf16.mxu1 %v5885_v62  ;;  %v1383_v16 = vpop.f32.mrf.mxu0  ;;  %v4831_v61 = vpop.eup %3632  ;;  %3658 = vtanh.f32 %v4612_v19 }
 0x1d0   :  { %v1656_v54 = vpop.f32.mrf.mxu1  ;;  %5886 = vst [vmem:[#allocation42_spill] sm:$0xff] %v4831_v61  ;;  %v4834_v26 = vadd.f32 %v1654_v11, %v1382_v8  ;;  %v1384_v2 = vadd.f32 %v1383_v16, %v4300_v45  ;;  %v4837_v25 = vpop.eup %3634  ;;  %3660 = vtanh.f32 %v4623_v21 }
 0x1d1   :  { %v1385_v31 = vpop.f32.mrf.mxu0  ;;  %v4840_v32 = vpop.eup %3636  ;;  %3662 = vtanh.f32 %v4634_v20 }
 0x1d2   :  { %v1658_v17 = vpop.f32.mrf.mxu1  ;;  %5887 = vst [vmem:[#allocation9_spill] sm:$0xff] %v4840_v32  ;;  %v4843_v14 = vadd.f32 %v1656_v54, %v1384_v2  ;;  %v1386_v62 = vadd.f32 %v1385_v31, %v4296_v44  ;;  %v4846_v61 = vpop.eup %3638  ;;  %3664 = vtanh.f32 %v4643_v63  ;;  %v5891_v2 = vld [vmem:[#allocation55_spill] sm:$0xff]  ;;  %v5892_v31 = vld [vmem:[#allocation56_spill] sm:$0xff] }
 0x1d3   :  { %5888 = vst [vmem:[#allocation10_spill] sm:$0xff] %v4846_v61  ;;  %v1387_v19 = vpop.f32.mrf.mxu0  ;;  %v4849_v8 = vpop.eup %3640  ;;  %3666 = vtanh.f32 %v4652_v1 }
 0x1d4   :  { %v1660_v11 = vpop.f32.mrf.mxu1  ;;  %5889 = vst [vmem:[#allocation11_spill] sm:$0xff] %v4849_v8  ;;  %v4852_v21 = vadd.f32 %v1658_v17, %v1386_v62  ;;  %v1388_v16 = vadd.f32 %v1387_v19, %v4300_v45  ;;  %v4855_v32 = vpop.eup %3642  ;;  %3668 = vtanh.f32 %v4663_v42  ;;  %v5893_v17 = vld [vmem:[#allocation57_spill] sm:$0xff] }
 0x1d5   :  { %5890 = vst [vmem:[#allocation43_spill] sm:$0xff] %v4855_v32  ;;  %v1391_v20 = vpop.f32.mrf.mxu0  ;;  %1936 = vmatmul.mubr.bf16.gmra.mxu0 %v5891_v2  ;;  %v4860_v63 = vpop.eup %3644  ;;  %3670 = vtanh.f32 %v4674_v46  ;;  %v477_v62 = vsub.s32 2, %v5893_v17 }
 0x1d6   :  { %v1664_v54 = vpop.f32.mrf.mxu1  ;;  %2209 = vmatmul.mubr.bf16.gmra.mxu1 %v5892_v31  ;;  %v4863_v8 = vadd.f32 %v1660_v11, %v1388_v16  ;;  %v1392_v1 = vadd.f32 %v1391_v20, %v4296_v44  ;;  %v4867_v19 = vpop.eup %3646  ;;  %3672 = vtanh.f32 %v4683_v49  ;;  %v481_v11 = vsub.s32 3, %v5893_v17 }
 0x1d7   :  { %5894 = vst [vmem:[#allocation44_spill] sm:$0xff] %v4867_v19  ;;  %v1393_v42 = vpop.f32.mrf.mxu0  ;;  %v4870_v61 = vpop.eup %3648  ;;  %3674 = vtanh.f32 %v4692_v55 }
 0x1d8   :  { %v1666_v32 = vpop.f32.mrf.mxu1  ;;  %5895 = vst [vmem:[#allocation12_spill] sm:$0xff] %v4870_v61  ;;  %v4873_v2 = vadd.f32 %v1664_v54, %v1392_v1  ;;  %v1394_v46 = vadd.f32 %v1393_v42, %v4300_v45  ;;  %v4877_v16 = vpop.eup %3650  ;;  %3676 = vtanh.f32 %v4703_v24  ;;  %v3910_v54 = vld [vmem:[%s5695_s2] sm:$0xf] }
 0x1d9   :  { %5896 = vst [vmem:[#allocation45_spill] sm:$0xff] %v4877_v16  ;;  %v1395_v20 = vpop.f32.mrf.mxu0  ;;  %v4880_v19 = vpop.eup %3652  ;;  %3678 = vtanh.f32 %v4714_v43  ;;  %v4889_v1 = vrot.slane %v3910_v54, %v477_v62 }
 0x1da   :  { %v1668_v31 = vpop.f32.mrf.mxu1  ;;  %v4883_v49 = vadd.f32 %v1666_v32, %v1394_v46  ;;  %v1396_v55 = vadd.f32 %v1395_v20, %v4296_v44  ;;  %v4891_v42 = vpop.eup %3654  ;;  %3680 = vtanh.f32 %v4723_v51  ;;  %v4900_v32 = vrot.slane %v3910_v54, %v481_v11 }
 0x1db   :  { %5897 = vst [vmem:[#allocation46_spill] sm:$0xff] %v4891_v42  ;;  %v1397_v24 = vpop.f32.mrf.mxu0  ;;  %v4894_v61 = vpop.eup %3656  ;;  %3682 = vtanh.f32 %v4732_v57 }
 0x1dc   :  { %v1670_v16 = vpop.f32.mrf.mxu1  ;;  %v4897_v43 = vadd.f32 %v1668_v31, %v1396_v55  ;;  %v1398_v44 = vadd.f32 %v1397_v24, %v4300_v45  ;;  %v4902_v46 = vpop.eup %3658  ;;  %3684 = vtanh.f32 %v4743_v27 }
 0x1dd   :  { %v1707_v62 = vpop.f32.mrf.mxu0  ;;  %v4905_v42 = vpop.eup %3660  ;;  %3686 = vtanh.f32 %v4754_v56 }
 0x1de   :  { %v1980_v20 = vpop.f32.mrf.mxu1  ;;  %v4908_v51 = vadd.f32 %v1670_v16, %v1398_v44  ;;  %v1708_v57 = vadd.f32 %v1707_v62, %v4889_v1  ;;  %v4911_v31 = vpop.eup %3662  ;;  %3688 = vtanh.f32 %v4763_v50 }
 0x1df   :  { %5898 = vst [vmem:[#allocation13_spill] sm:$0xff] %v4911_v31  ;;  %v1709_v45 = vpop.f32.mrf.mxu0  ;;  %v4914_v55 = vpop.eup %3664  ;;  %3690 = vtanh.f32 %v4772_v36 }
 0x1e0   :  { %v1982_v11 = vpop.f32.mrf.mxu1  ;;  %5899 = vst [vmem:[#allocation14_spill] sm:$0xff] %v4914_v55  ;;  %v1981_v27 = vadd.f32 %v1980_v20, %v1708_v57  ;;  %v1710_v54 = vadd.f32 %v1709_v45, %v4900_v32  ;;  %v4918_v24 = vpop.eup %3666  ;;  %3692 = vtanh.f32 %v4783_v39 }
 0x1e1   :  { %5900 = vst [vmem:[#allocation15_spill] sm:$0xff] %v4918_v24  ;;  %v1711_v56 = vpop.f32.mrf.mxu0  ;;  %v4921_v44 = vpop.eup %3668  ;;  %3694 = vtanh.f32 %v4794_v40 }
 0x1e2   :  { %v1984_v16 = vpop.f32.mrf.mxu1  ;;  %5901 = vst [vmem:[#allocation47_spill] sm:$0xff] %v4921_v44  ;;  %v2315_v50 = vmul.f32 0.5, %v1981_v27  ;;  %v1983_v62 = vadd.f32 %v1982_v11, %v1710_v54  ;;  %v1712_v31 = vadd.f32 %v1711_v56, %v4889_v1  ;;  %v4925_v55 = vpop.eup %3670  ;;  %3696 = vtanh.f32 %v4803_v6 }
 0x1e3   :  { %5902 = vst [vmem:[#allocation48_spill] sm:$0xff] %v4925_v55  ;;  %v1713_v36 = vpop.f32.mrf.mxu0  ;;  %v4928_v57 = vpop.eup %3672 }
 0x1e4   :  { %v1986_v20 = vpop.f32.mrf.mxu1  ;;  %3698 = vtanh.f32 %v2315_v50  ;;  %v2316_v39 = vmul.f32 0.5, %v1983_v62  ;;  %v1985_v45 = vadd.f32 %v1984_v16, %v1712_v31  ;;  %v1714_v24 = vadd.f32 %v1713_v36, %v4900_v32  ;;  %v4931_v44 = vpop.eup %3674 }
 0x1e5   :  { %5903 = vst [vmem:[#allocation49_spill] sm:$0xff] %v4931_v44  ;;  %3700 = vtanh.f32 %v4812_v9  ;;  %v1717_v40 = vpop.f32.mrf.mxu0  ;;  %v4934_v27 = vpop.eup %3676 }
 0x1e6   :  { %v1990_v11 = vpop.f32.mrf.mxu1  ;;  %3702 = vtanh.f32 %v2316_v39  ;;  %v2317_v54 = vmul.f32 0.5, %v1985_v45  ;;  %v1987_v6 = vadd.f32 %v1986_v20, %v1714_v24  ;;  %v1718_v56 = vadd.f32 %v1717_v40, %v4889_v1  ;;  %v4937_v55 = vpop.eup %3678 }
 0x1e7   :  { %5904 = vst [vmem:[#allocation50_spill] sm:$0xff] %v4937_v55  ;;  %3704 = vtanh.f32 %v4823_v12  ;;  %v1719_v31 = vpop.f32.mrf.mxu0  ;;  %v4940_v50 = vpop.eup %3680 }
 0x1e8   :  { %v1992_v16 = vpop.f32.mrf.mxu1  ;;  %5905 = vst [vmem:[#allocation51_spill] sm:$0xff] %v4940_v50  ;;  %3706 = vtanh.f32 %v2317_v54  ;;  %v2318_v62 = vmul.f32 0.5, %v1987_v6  ;;  %v1991_v9 = vadd.f32 %v1990_v11, %v1718_v56  ;;  %v1720_v36 = vadd.f32 %v1719_v31, %v4900_v32  ;;  %v4943_v44 = vpop.eup %3682 }
 0x1e9   :  { %5906 = vst [vmem:[#allocation52_spill] sm:$0xff] %v4943_v44  ;;  %3708 = vtanh.f32 %v4834_v26  ;;  %v1721_v24 = vpop.f32.mrf.mxu0  ;;  %v4946_v39 = vpop.eup %3684 }
 0x1ea   :  { %v1994_v20 = vpop.f32.mrf.mxu1  ;;  %5907 = vst [vmem:[#allocation53_spill] sm:$0xff] %v4946_v39  ;;  %3710 = vtanh.f32 %v2318_v62  ;;  %v2319_v45 = vmul.f32 0.5, %v1991_v9  ;;  %v1993_v12 = vadd.f32 %v1992_v16, %v1720_v36  ;;  %v1722_v40 = vadd.f32 %v1721_v24, %v4889_v1  ;;  %v4949_v55 = vpop.eup %3686 }
 0x1eb   :  { %5908 = vst [vmem:[#allocation54_spill] sm:$0xff] %v4949_v55  ;;  %3712 = vtanh.f32 %v4843_v14  ;;  %v1723_v11 = vpop.f32.mrf.mxu0  ;;  %v4952_v6 = vpop.eup %3688 }
 0x1ec   :  { %v1996_v54 = vpop.f32.mrf.mxu1  ;;  %5909 = vst [vmem:[#allocation55_spill] sm:$0xff] %v4952_v6  ;;  %3714 = vtanh.f32 %v2319_v45  ;;  %v2320_v56 = vmul.f32 0.5, %v1993_v12  ;;  %v1995_v26 = vadd.f32 %v1994_v20, %v1722_v40  ;;  %v1724_v31 = vadd.f32 %v1723_v11, %v4900_v32  ;;  %v4955_v44 = vpop.eup %3690 }
 0x1ed   :  { %5910 = vst [vmem:[#allocation56_spill] sm:$0xff] %v4955_v44  ;;  %3716 = vtanh.f32 %v4852_v21  ;;  %v1727_v16 = vpop.f32.mrf.mxu0  ;;  %v4958_v9 = vpop.eup %3692 }
 0x1ee   :  { %v2000_v62 = vpop.f32.mrf.mxu1  ;;  %5911 = vst [vmem:[#allocation57_spill] sm:$0xff] %v4958_v9  ;;  %3718 = vtanh.f32 %v2320_v56  ;;  %v2321_v36 = vmul.f32 0.5, %v1995_v26  ;;  %v1997_v14 = vadd.f32 %v1996_v54, %v1724_v31  ;;  %v1728_v24 = vadd.f32 %v1727_v16, %v4889_v1  ;;  %v4961_v55 = vpop.eup %3694  ;;  %v2795_v56 = vld [vmem:[%s5696_s3] sm:$0x3] }
 0x1ef   :  { %5912 = vst [vmem:[#allocation58_spill] sm:$0xff] %v4961_v55  ;;  %3720 = vtanh.f32 %v4863_v8  ;;  %v1729_v20 = vpop.f32.mrf.mxu0  ;;  %v4964_v12 = vpop.eup %3696 }
 0x1f0   :  { %v2002_v45 = vpop.f32.mrf.mxu1  ;;  %5913 = vst [vmem:[#allocation59_spill] sm:$0xff] %v4964_v12  ;;  %3722 = vtanh.f32 %v2321_v36  ;;  %v2322_v40 = vmul.f32 0.5, %v1997_v14  ;;  %v2001_v21 = vadd.f32 %v2000_v62, %v1728_v24  ;;  %v1730_v11 = vadd.f32 %v1729_v20, %v4900_v32 }
 0x1f1   :  { %v3699_v54 = vpop.eup %3698  ;;  %3724 = vtanh.f32 %v4873_v2  ;;  %v1731_v26 = vpop.f32.mrf.mxu0  ;;  %v5915_v20 = vsub.s32 0, %v5893_v17 }
 0x1f2   :  { %v2004_v31 = vpop.f32.mrf.mxu1  ;;  %v4971_v16 = vpop.eup %3700  ;;  %v2507_v8 = vadd.f32 1.0, %v3699_v54  ;;  %3726 = vtanh.f32 %v2322_v40  ;;  %v2323_v55 = vmul.f32 0.5, %v2001_v21  ;;  %v2003_v12 = vadd.f32 %v2002_v45, %v1730_v11 }
 0x1f3   :  { %5914 = vst [vmem:[#allocation60_spill] sm:$0xff] %v4971_v16  ;;  %v3703_v36 = vpop.eup %3702  ;;  %3728 = vtanh.f32 %v4883_v49  ;;  %v1732_v62 = vadd.f32 %v1731_v26, %v4889_v1  ;;  %v1733_v14 = vpop.f32.mrf.mxu0  ;;  %v4977_v9 = vrot.slane %v2795_v56, %v5915_v20  ;;  %v5917_v26 = vsub.s32 1, %v5893_v17 }
 0x1f4   :  { %v2006_v24 = vpop.f32.mrf.mxu1  ;;  %v4979_v2 = vpop.eup %3704  ;;  %v2603_v44 = vmul.f32 0.5, %v2507_v8  ;;  %v2508_v6 = vadd.f32 1.0, %v3703_v36  ;;  %3730 = vtanh.f32 %v2323_v55  ;;  %v2324_v54 = vmul.f32 0.5, %v2003_v12 }
 0x1f5   :  { %5916 = vst [vmem:[#allocation61_spill] sm:$0xff] %v4979_v2  ;;  %v3707_v40 = vpop.eup %3706  ;;  %3732 = vtanh.f32 %v4897_v43  ;;  %v2005_v45 = vadd.f32 %v2004_v31, %v1732_v62  ;;  %v1734_v49 = vadd.f32 %v1733_v14, %v4900_v32  ;;  %v1737_v21 = vpop.f32.mrf.mxu0  ;;  %v4985_v16 = vrot.slane %v2795_v56, %v5917_v26 }
 0x1f6   :  { %v2010_v11 = vpop.f32.mrf.mxu1  ;;  %v4987_v20 = vpop.eup %3708  ;;  %v2604_v39 = vmul.f32 0.5, %v2508_v6  ;;  %v2509_v2 = vadd.f32 1.0, %v3707_v40  ;;  %3734 = vtanh.f32 %v2324_v54  ;;  %v1738_v55 = vadd.f32 %v1737_v21, %v4889_v1 }
 0x1f7   :  { %5918 = vst [vmem:[#allocation62_spill] sm:$0xff] %v4987_v20  ;;  %v3711_v12 = vpop.eup %3710  ;;  %3736 = vtanh.f32 %v4908_v51  ;;  %v2325_v43 = vmul.f32 0.5, %v2005_v45  ;;  %v2007_v31 = vadd.f32 %v2006_v24, %v1734_v49  ;;  %v1739_v8 = vpop.f32.mrf.mxu0  ;;  %v2699_v62 = vmul.f32 %v4566_v3, %v2603_v44 }
 0x1f8   :  { %v2012_v36 = vpop.f32.mrf.mxu1  ;;  %v4992_v14 = vpop.eup %3712  ;;  %v2605_v17 = vmul.f32 0.5, %v2509_v2  ;;  %v2510_v56 = vadd.f32 1.0, %v3711_v12  ;;  %v2011_v26 = vadd.f32 %v2010_v11, %v1738_v55  ;;  %v1740_v6 = vadd.f32 %v1739_v8, %v4900_v32 }
 0x1f9   :  { %5919 = vst [vmem:[#allocation63_spill] sm:$0xff] %v4992_v14  ;;  %v3715_v40 = vpop.eup %3714  ;;  %3738 = vtanh.f32 %v2325_v43  ;;  %v2326_v54 = vmul.f32 0.5, %v2007_v31  ;;  %v1741_v21 = vpop.f32.mrf.mxu0  ;;  %v2700_v51 = vmul.f32 %v4569_v28, %v2604_v39  ;;  %v2807_v24 = vmul.f32 %v4977_v9, %v2699_v62 }
 0x1fa   :  { %v2014_v20 = vpop.f32.mrf.mxu1  ;;  %v4997_v45 = vpop.eup %3716  ;;  %v2606_v49 = vmul.f32 0.5, %v2510_v56  ;;  %v2511_v3 = vadd.f32 1.0, %v3715_v40  ;;  %v2327_v44 = vmul.f32 0.5, %v2011_v26  ;;  %v2013_v14 = vadd.f32 %v2012_v36, %v1740_v6 }
 0x1fb   :  { %5920 = vst [vmem:[#allocation64_spill] sm:$0xff] %v4997_v45  ;;  %v3719_v2 = vpop.eup %3718  ;;  %3740 = vtanh.f32 %v2326_v54  ;;  %v1742_v11 = vadd.f32 %v1741_v21, %v4889_v1  ;;  %v1743_v55 = vpop.f32.mrf.mxu0  ;;  %v2808_v43 = vmul.f32 %v4985_v16, %v2700_v51  ;;  %v2701_v31 = vmul.f32 %v4575_v53, %v2605_v17 }
 0x1fc   :  { %v2016_v12 = vpop.f32.mrf.mxu1  ;;  %v5002_v8 = vpop.eup %3720  ;;  %v2607_v28 = vmul.f32 0.5, %v2511_v3  ;;  %v2512_v39 = vadd.f32 1.0, %v3719_v2  ;;  %3742 = vtanh.f32 %v2327_v44  ;;  %v2328_v62 = vmul.f32 0.5, %v2013_v14 }
 0x1fd   :  { %v3723_v56 = vpop.eup %3722  ;;  %v2015_v40 = vadd.f32 %v2014_v20, %v1742_v11  ;;  %v1744_v36 = vadd.f32 %v1743_v55, %v4900_v32  ;;  %v1747_v26 = vpop.f32.mrf.mxu0  ;;  %v2903_v54 = vadd.f32 %v2808_v43, %v2807_v24  ;;  %v2702_v21 = vmul.f32 %v4580_v59, %v2606_v49 }
 0x1fe   :  { %v2020_v6 = vpop.f32.mrf.mxu1  ;;  %v5006_v45 = vpop.eup %3724  ;;  %v2608_v51 = vmul.f32 0.5, %v2512_v39  ;;  %v2513_v50 = vadd.f32 1.0, %v3723_v56  ;;  %3744 = vtanh.f32 %v2328_v62  ;;  %v1748_v53 = vadd.f32 %v1747_v26, %v4889_v1 }
 0x1ff   :  { %5921 = vst [vmem:[#allocation65_spill] sm:$0xff] %v5006_v45  ;;  %v3727_v17 = vpop.eup %3726  ;;  %v2329_v3 = vmul.f32 0.5, %v2015_v40  ;;  %v2017_v44 = vadd.f32 %v2016_v12, %v1744_v36  ;;  %2904 = vadd.xlane.f32.xlu0 %v2903_v54  ;;  %v1749_v14 = vpop.f32.mrf.mxu0  ;;  %v2809_v2 = vmul.f32 %v4977_v9, %v2701_v31  ;;  %v2810_v11 = vmul.f32 %v4985_v16, %v2702_v21 }
 0x200   :  { %v2022_v20 = vpop.f32.mrf.mxu1  ;;  %v5011_v24 = vpop.eup %3728  ;;  %v2609_v59 = vmul.f32 0.5, %v2513_v50  ;;  %v2514_v49 = vadd.f32 1.0, %v3727_v17  ;;  %v2021_v55 = vadd.f32 %v2020_v6, %v1748_v53  ;;  %v1750_v43 = vadd.f32 %v1749_v14, %v4900_v32 }
 0x201   :  { %5922 = vst [vmem:[#allocation66_spill] sm:$0xff] %v5011_v24  ;;  %v3731_v39 = vpop.eup %3730  ;;  %3746 = vtanh.f32 %v2329_v3  ;;  %v2330_v62 = vmul.f32 0.5, %v2017_v44  ;;  %v1751_v56 = vpop.f32.mrf.mxu0  ;;  %v2906_v12 = vadd.f32 %v2810_v11, %v2809_v2  ;;  %v2703_v36 = vmul.f32 %v4588_v33, %v2607_v28 }
 0x202   :  { %v2024_v40 = vpop.f32.mrf.mxu1  ;;  %v5015_v26 = vpop.eup %3732  ;;  %v2610_v31 = vmul.f32 0.5, %v2514_v49  ;;  %v2515_v54 = vadd.f32 1.0, %v3731_v39  ;;  %v2331_v21 = vmul.f32 0.5, %v2021_v55  ;;  %v2023_v45 = vadd.f32 %v2022_v20, %v1750_v43 }
 0x203   :  { %v3735_v24 = vpop.eup %3734  ;;  %3748 = vtanh.f32 %v2330_v62  ;;  %v1752_v50 = vadd.f32 %v1751_v56, %v4889_v1  ;;  %2907 = vadd.xlane.f32.xlu0 %v2906_v12  ;;  %v1753_v6 = vpop.f32.mrf.mxu0  ;;  %v2704_v17 = vmul.f32 %v4591_v48, %v2608_v51  ;;  %v2811_v3 = vmul.f32 %v4977_v9, %v2703_v36 }
 0x204   :  { %v2026_v53 = vpop.f32.mrf.mxu1  ;;  %v5020_v44 = vpop.eup %3736  ;;  %v2611_v33 = vmul.f32 0.5, %v2515_v54  ;;  %v2516_v28 = vadd.f32 1.0, %v3735_v24  ;;  %3750 = vtanh.f32 %v2331_v21  ;;  %v2332_v14 = vmul.f32 0.5, %v2023_v45 }
 0x205   :  { %v2025_v2 = vadd.f32 %v2024_v40, %v1752_v50  ;;  %v1754_v20 = vadd.f32 %v1753_v6, %v4900_v32  ;;  %v1757_v11 = vpop.f32.mrf.mxu0  ;;  %v2812_v55 = vmul.f32 %v4985_v16, %v2704_v17  ;;  %v2705_v43 = vmul.f32 %v4597_v4, %v2609_v59 }
 0x206   :  { %v2030_v49 = vpop.f32.mrf.mxu1  ;;  %v3739_v39 = vpop.eup %3738  ;;  %v2612_v62 = vmul.f32 0.5, %v2516_v28  ;;  %3752 = vtanh.f32 %v2332_v14  ;;  %v1758_v48 = vadd.f32 %v1757_v11, %v4889_v1  ;;  %v2706_v51 = vmul.f32 %v4600_v38, %v2610_v31 }
 0x207   :  { %v2517_v56 = vadd.f32 1.0, %v3739_v39  ;;  %v2333_v24 = vmul.f32 0.5, %v2025_v2  ;;  %v2027_v12 = vadd.f32 %v2026_v53, %v1754_v20  ;;  %v2909_v45 = vadd.f32 %v2812_v55, %v2811_v3  ;;  %v1759_v40 = vpop.f32.mrf.mxu0 }
 0x208   :  { %v2032_v36 = vpop.f32.mrf.mxu1  ;;  %v3741_v54 = vpop.eup %3740  ;;  %v2031_v21 = vadd.f32 %v2030_v49, %v1758_v48  ;;  %v1760_v50 = vadd.f32 %v1759_v40, %v4900_v32  ;;  %v2813_v6 = vmul.f32 %v4977_v9, %v2705_v43  ;;  %v2814_v4 = vmul.f32 %v4985_v16, %v2706_v51 }
 0x209   :  { %v3743_v59 = vpop.eup %3742  ;;  %v2613_v17 = vmul.f32 0.5, %v2517_v56  ;;  %v2518_v28 = vadd.f32 1.0, %v3741_v54  ;;  %3754 = vtanh.f32 %v2333_v24  ;;  %v2334_v14 = vmul.f32 0.5, %v2027_v12  ;;  %2910 = vadd.xlane.f32.xlu1 %v2909_v45  ;;  %v1761_v38 = vpop.f32.mrf.mxu0 }
 0x20a   :  { %v2034_v31 = vpop.f32.mrf.mxu1  ;;  %v2519_v53 = vadd.f32 1.0, %v3743_v59  ;;  %v2335_v3 = vmul.f32 0.5, %v2031_v21  ;;  %v2033_v2 = vadd.f32 %v2032_v36, %v1760_v50  ;;  %v1762_v20 = vadd.f32 %v1761_v38, %v4889_v1 }
 0x20b   :  { %v3745_v11 = vpop.eup %3744  ;;  %v2614_v49 = vmul.f32 0.5, %v2518_v28  ;;  %3756 = vtanh.f32 %v2334_v14  ;;  %v2912_v55 = vadd.f32 %v2814_v4, %v2813_v6  ;;  %v1763_v43 = vpop.f32.mrf.mxu0  ;;  %v2707_v48 = vmul.f32 %v4606_v15, %v2611_v33 }
 0x20c   :  { %v2036_v39 = vpop.f32.mrf.mxu1  ;;  %v2615_v51 = vmul.f32 0.5, %v2519_v53  ;;  %v2520_v56 = vadd.f32 1.0, %v3745_v11  ;;  %3758 = vtanh.f32 %v2335_v3  ;;  %v2336_v24 = vmul.f32 0.5, %v2033_v2 }
 0x20d   :  { %v2035_v12 = vadd.f32 %v2034_v31, %v1762_v20  ;;  %2913 = vadd.xlane.f32.xlu1 %v2912_v55  ;;  %v1764_v45 = vadd.f32 %v1763_v43, %v4900_v32  ;;  %v1767_v40 = vpop.f32.mrf.mxu0  ;;  %v2708_v54 = vmul.f32 %v4609_v34, %v2612_v62  ;;  %v2815_v21 = vmul.f32 %v4977_v9, %v2707_v48 }
 0x20e   :  { %v2040_v36 = vpop.f32.mrf.mxu1  ;;  %v3747_v50 = vpop.eup %3746  ;;  %v2616_v6 = vmul.f32 0.5, %v2520_v56  ;;  %3760 = vtanh.f32 %v2336_v24  ;;  %v1768_v4 = vadd.f32 %v1767_v40, %v4889_v1  ;;  %v2709_v15 = vmul.f32 %v4615_v60, %v2613_v17 }
 0x20f   :  { %v2521_v33 = vadd.f32 1.0, %v3747_v50  ;;  %v2337_v59 = vmul.f32 0.5, %v2035_v12  ;;  %v2037_v28 = vadd.f32 %v2036_v39, %v1764_v45  ;;  %v2816_v14 = vmul.f32 %v4985_v16, %v2708_v54  ;;  %v1769_v38 = vpop.f32.mrf.mxu0 }
 0x210   :  { %v2042_v31 = vpop.f32.mrf.mxu1  ;;  %v3749_v53 = vpop.eup %3748  ;;  %v2041_v3 = vadd.f32 %v2040_v36, %v1768_v4  ;;  %v1770_v34 = vadd.f32 %v1769_v38, %v4900_v32  ;;  %v2710_v62 = vmul.f32 %v4620_v41, %v2614_v49  ;;  %v2817_v2 = vmul.f32 %v4977_v9, %v2709_v15 }
 0x211   :  { %v3751_v20 = vpop.eup %3750  ;;  %v2617_v11 = vmul.f32 0.5, %v2521_v33  ;;  %v2522_v55 = vadd.f32 1.0, %v3749_v53  ;;  %3762 = vtanh.f32 %v2337_v59  ;;  %v2338_v60 = vmul.f32 0.5, %v2037_v28  ;;  %v1771_v17 = vpop.f32.mrf.mxu0 }
 0x212   :  { %v2044_v43 = vpop.f32.mrf.mxu1  ;;  %v2523_v39 = vadd.f32 1.0, %v3751_v20  ;;  %v2339_v48 = vmul.f32 0.5, %v2041_v3  ;;  %v2915_v56 = vadd.f32 %v2816_v14, %v2815_v21  ;;  %v2043_v24 = vadd.f32 %v2042_v31, %v1770_v34 }
 0x213   :  { %v3753_v12 = vpop.eup %3752  ;;  %v2618_v45 = vmul.f32 0.5, %v2522_v55  ;;  %3764 = vtanh.f32 %v2338_v60  ;;  %v1772_v40 = vadd.f32 %v1771_v17, %v4889_v1  ;;  %v2818_v41 = vmul.f32 %v4985_v16, %v2710_v62  ;;  %v1773_v49 = vpop.f32.mrf.mxu0 }
 0x214   :  { %v2046_v36 = vpop.f32.mrf.mxu1  ;;  %v2619_v54 = vmul.f32 0.5, %v2523_v39  ;;  %v2524_v50 = vadd.f32 1.0, %v3753_v12  ;;  %3766 = vtanh.f32 %v2339_v48  ;;  %2916 = vadd.xlane.f32.xlu0 %v2915_v56  ;;  %v2340_v4 = vmul.f32 0.5, %v2043_v24 }
 0x215   :  { %v2045_v15 = vadd.f32 %v2044_v43, %v1772_v40  ;;  %v2918_v33 = vadd.f32 %v2818_v41, %v2817_v2  ;;  %v1774_v59 = vadd.f32 %v1773_v49, %v4900_v32  ;;  %v1777_v21 = vpop.f32.mrf.mxu0  ;;  %v2711_v14 = vmul.f32 %v4628_v37, %v2615_v51 }
 0x216   :  { %v2050_v28 = vpop.f32.mrf.mxu1  ;;  %v3755_v38 = vpop.eup %3754  ;;  %v2620_v31 = vmul.f32 0.5, %v2524_v50  ;;  %3768 = vtanh.f32 %v2340_v4  ;;  %v1778_v53 = vadd.f32 %v1777_v21, %v4889_v1  ;;  %v2712_v3 = vmul.f32 %v4631_v18, %v2616_v6 }
 0x217   :  { %v2525_v34 = vadd.f32 1.0, %v3755_v38  ;;  %v2341_v62 = vmul.f32 0.5, %v2045_v15  ;;  %2919 = vadd.xlane.f32.xlu1 %v2918_v33  ;;  %v2047_v20 = vadd.f32 %v2046_v36, %v1774_v59  ;;  %v2819_v55 = vmul.f32 %v4977_v9, %v2711_v14  ;;  %v1779_v2 = vpop.f32.mrf.mxu0  ;;  %v5923_v33 = vld [vmem:[#allocation16_spill] sm:$0xff] }
 0x218   :  { %v2052_v60 = vpop.f32.mrf.mxu1  ;;  %v3757_v17 = vpop.eup %3756  ;;  %v2051_v43 = vadd.f32 %v2050_v28, %v1778_v53  ;;  %v2820_v39 = vmul.f32 %v4985_v16, %v2712_v3  ;;  %v1780_v37 = vadd.f32 %v1779_v2, %v4900_v32  ;;  %v2713_v51 = vmul.f32 %v4637_v30, %v2617_v11 }
 0x219   :  { %v3759_v48 = vpop.eup %3758  ;;  %v2621_v56 = vmul.f32 0.5, %v2525_v34  ;;  %v2526_v24 = vadd.f32 1.0, %v3757_v17  ;;  %3770 = vtanh.f32 %v2341_v62  ;;  %v2342_v18 = vmul.f32 0.5, %v2047_v20  ;;  %v1781_v6 = vpop.f32.mrf.mxu0 }
 0x21a   :  { %v2054_v12 = vpop.f32.mrf.mxu1  ;;  %v2527_v40 = vadd.f32 1.0, %v3759_v48  ;;  %v2343_v41 = vmul.f32 0.5, %v2051_v43  ;;  %v2921_v49 = vadd.f32 %v2820_v39, %v2819_v55  ;;  %v2053_v36 = vadd.f32 %v2052_v60, %v1780_v37 }
 0x21b   :  { %v3761_v50 = vpop.eup %3760  ;;  %v2622_v4 = vmul.f32 0.5, %v2526_v24  ;;  %3772 = vtanh.f32 %v2342_v18  ;;  %v1782_v15 = vadd.f32 %v1781_v6, %v4889_v1  ;;  %v2714_v59 = vmul.f32 %v5923_v33, %v2618_v45  ;;  %v1783_v21 = vpop.f32.mrf.mxu0  ;;  %v5924_v6 = vld [vmem:[#allocation17_spill] sm:$0xff] }
 0x21c   :  { %v2056_v30 = vpop.f32.mrf.mxu1  ;;  %v2623_v11 = vmul.f32 0.5, %v2527_v40  ;;  %v2528_v28 = vadd.f32 1.0, %v3761_v50  ;;  %3774 = vtanh.f32 %v2343_v41  ;;  %2922 = vadd.xlane.f32.xlu0 %v2921_v49  ;;  %v2344_v14 = vmul.f32 0.5, %v2053_v36 }
 0x21d   :  { %v2055_v38 = vadd.f32 %v2054_v12, %v1782_v15  ;;  %v2821_v53 = vmul.f32 %v4977_v9, %v2713_v51  ;;  %v2822_v3 = vmul.f32 %v4985_v16, %v2714_v59  ;;  %v1784_v34 = vadd.f32 %v1783_v21, %v4900_v32  ;;  %v1787_v62 = vpop.f32.mrf.mxu0 }
 0x21e   :  { %v2060_v20 = vpop.f32.mrf.mxu1  ;;  %v3763_v55 = vpop.eup %3762  ;;  %v2624_v2 = vmul.f32 0.5, %v2528_v28  ;;  %3776 = vtanh.f32 %v2344_v14  ;;  %v1788_v45 = vadd.f32 %v1787_v62, %v4889_v1  ;;  %v2715_v60 = vmul.f32 %v4646_v10, %v2619_v54 }
 0x21f   :  { %v2529_v17 = vadd.f32 1.0, %v3763_v55  ;;  %v2345_v43 = vmul.f32 0.5, %v2055_v38  ;;  %v2924_v39 = vadd.f32 %v2822_v3, %v2821_v53  ;;  %v2057_v37 = vadd.f32 %v2056_v30, %v1784_v34  ;;  %v1789_v48 = vpop.f32.mrf.mxu0  ;;  %v5925_v38 = vld [vmem:[#allocation18_spill] sm:$0xff] }
 0x220   :  { %v2062_v24 = vpop.f32.mrf.mxu1  ;;  %v3765_v51 = vpop.eup %3764  ;;  %v2061_v18 = vadd.f32 %v2060_v20, %v1788_v45  ;;  %v2716_v12 = vmul.f32 %v5924_v6, %v2620_v31  ;;  %v2823_v40 = vmul.f32 %v4977_v9, %v2715_v60  ;;  %v1790_v41 = vadd.f32 %v1789_v48, %v4900_v32 }
 0x221   :  { %v3767_v49 = vpop.eup %3766  ;;  %v2625_v36 = vmul.f32 0.5, %v2529_v17  ;;  %v2530_v50 = vadd.f32 1.0, %v3765_v51  ;;  %3778 = vtanh.f32 %v2345_v43  ;;  %2925 = vadd.xlane.f32.xlu1 %v2924_v39  ;;  %v2346_v10 = vmul.f32 0.5, %v2057_v37  ;;  %v1791_v54 = vpop.f32.mrf.mxu0 }
 0x222   :  { %v2064_v15 = vpop.f32.mrf.mxu1  ;;  %v2531_v33 = vadd.f32 1.0, %v3767_v49  ;;  %v2347_v59 = vmul.f32 0.5, %v2061_v18  ;;  %v2824_v21 = vmul.f32 %v4985_v16, %v2716_v12  ;;  %v2063_v30 = vadd.f32 %v2062_v24, %v1790_v41 }
 0x223   :  { %v3769_v28 = vpop.eup %3768  ;;  %v2626_v14 = vmul.f32 0.5, %v2530_v50  ;;  %3780 = vtanh.f32 %v2346_v10  ;;  %v1792_v31 = vadd.f32 %v1791_v54, %v4889_v1  ;;  %v2717_v53 = vmul.f32 %v5925_v38, %v2621_v56  ;;  %v1793_v3 = vpop.f32.mrf.mxu0  ;;  %v5926_v10 = vld [vmem:[#allocation19_spill] sm:$0xff] }
 0x224   :  { %v2066_v34 = vpop.f32.mrf.mxu1  ;;  %v5064_v62 = vmul.f32 0.5, %v2531_v33  ;;  %v2532_v20 = vadd.f32 1.0, %v3769_v28  ;;  %3782 = vtanh.f32 %v2347_v59  ;;  %v2927_v55 = vadd.f32 %v2824_v21, %v2823_v40 }
 0x225   :  { %v2348_v45 = vmul.f32 0.5, %v2063_v30  ;;  %v2065_v60 = vadd.f32 %v2064_v15, %v1792_v31  ;;  %v2718_v17 = vmul.f32 %v4660_v23, %v2622_v4  ;;  %v2825_v43 = vmul.f32 %v4977_v9, %v2717_v53  ;;  %v1797_v39 = vpop.f32.mrf.mxu0 }
 0x226   :  { %v2070_v37 = vpop.f32.mrf.mxu1  ;;  %v3771_v48 = vpop.eup %3770  ;;  %v2628_v24 = vmul.f32 0.5, %v2532_v20  ;;  %2928 = vadd.xlane.f32.xlu0 %v2927_v55  ;;  %v1794_v56 = vadd.f32 %v1793_v3, %v4900_v32  ;;  %v1798_v51 = vadd.f32 %v1797_v39, %v4889_v1  ;;  %v2719_v18 = vmul.f32 %v4668_v0, %v2623_v11 }
 0x227   :  { %v2533_v6 = vadd.f32 1.0, %v3771_v48  ;;  %3784 = vtanh.f32 %v2348_v45  ;;  %v2349_v12 = vmul.f32 0.5, %v2065_v60  ;;  %v2826_v40 = vmul.f32 %v4985_v16, %v2718_v17  ;;  %v1799_v41 = vpop.f32.mrf.mxu0 }
 0x228   :  { %v2072_v23 = vpop.f32.mrf.mxu1  ;;  %v3773_v4 = vpop.eup %3772  ;;  %v2067_v49 = vadd.f32 %v2066_v34, %v1794_v56  ;;  %v2071_v50 = vadd.f32 %v2070_v37, %v1798_v51  ;;  %v2720_v54 = vmul.f32 %v5926_v10, %v2624_v2  ;;  %v2827_v15 = vmul.f32 %v4977_v9, %v2719_v18  ;;  %v5927_v56 = vld [vmem:[#allocation20_spill] sm:$0xff] }
 0x229   :  { %v3775_v33 = vpop.eup %3774  ;;  %v5074_v59 = vmul.f32 0.5, %v2533_v6  ;;  %v2534_v21 = vadd.f32 1.0, %v3773_v4  ;;  %3786 = vtanh.f32 %v2349_v12  ;;  %v2930_v0 = vadd.f32 %v2826_v40, %v2825_v43  ;;  %v1801_v11 = vpop.f32.mrf.mxu0 }
 0x22a   :  { %v2074_v30 = vpop.f32.mrf.mxu1  ;;  %v2535_v28 = vadd.f32 1.0, %v3775_v33  ;;  %v2350_v31 = vmul.f32 0.5, %v2067_v49  ;;  %v2351_v38 = vmul.f32 0.5, %v2071_v50  ;;  %v2828_v53 = vmul.f32 %v4985_v16, %v2720_v54 }
 0x22b   :  { %v3777_v3 = vpop.eup %3776  ;;  %v5077_v34 = vmul.f32 0.5, %v2534_v21  ;;  %2931 = vadd.xlane.f32.xlu1 %v2930_v0  ;;  %v1800_v2 = vadd.f32 %v1799_v41, %v4900_v32  ;;  %v1802_v20 = vadd.f32 %v1801_v11, %v4889_v1  ;;  %v2721_v55 = vmul.f32 %v4677_v29, %v2625_v36  ;;  %v1803_v45 = vpop.f32.mrf.mxu0  ;;  %v5928_v21 = vld [vmem:[#allocation21_spill] sm:$0xff]  ;;  %v5929_v11 = vld [vmem:[#allocation22_spill] sm:$0xff] }
 0x22c   :  { %v2076_v60 = vpop.f32.mrf.mxu1  ;;  %v5082_v17 = vmul.f32 0.5, %v2535_v28  ;;  %v2536_v43 = vadd.f32 1.0, %v3777_v3  ;;  %3788 = vtanh.f32 %v2350_v31  ;;  %v2933_v39 = vadd.f32 %v2828_v53, %v2827_v15 }
 0x22d   :  { %3790 = vtanh.f32 %v2351_v38  ;;  %v2073_v37 = vadd.f32 %v2072_v23, %v1800_v2  ;;  %v2075_v48 = vadd.f32 %v2074_v30, %v1802_v20  ;;  %v2722_v51 = vmul.f32 %v5927_v56, %v2626_v14  ;;  %v1807_v18 = vpop.f32.mrf.mxu0 }
 0x22e   :  { %v2080_v6 = vpop.f32.mrf.mxu1  ;;  %v3779_v12 = vpop.eup %3778  ;;  %v5085_v40 = vmul.f32 0.5, %v2536_v43  ;;  %2934 = vadd.xlane.f32.xlu0 %v2933_v39  ;;  %v2829_v29 = vmul.f32 %v4977_v9, %v2721_v55  ;;  %v1804_v36 = vadd.f32 %v1803_v45, %v4900_v32  ;;  %v1808_v41 = vadd.f32 %v1807_v18, %v4889_v1  ;;  %v5930_v18 = vld [vmem:[#allocation23_spill] sm:$0xff] }
 0x22f   :  { %v2537_v4 = vadd.f32 1.0, %v3779_v12  ;;  %v2352_v49 = vmul.f32 0.5, %v2073_v37  ;;  %v2353_v50 = vmul.f32 0.5, %v2075_v48  ;;  %v2830_v23 = vmul.f32 %v4985_v16, %v2722_v51  ;;  %v1809_v10 = vpop.f32.mrf.mxu0 }
 0x230   :  { %v2082_v54 = vpop.f32.mrf.mxu1  ;;  %v3781_v14 = vpop.eup %3780  ;;  %v2077_v15 = vadd.f32 %v2076_v60, %v1804_v36  ;;  %v2081_v33 = vadd.f32 %v2080_v6, %v1808_v41  ;;  %v2723_v0 = vmul.f32 %v5928_v21, %v5064_v62  ;;  %v2724_v30 = vmul.f32 %v5929_v11, %v2628_v24 }
 0x231   :  { %v3783_v28 = vpop.eup %3782  ;;  %v5094_v31 = vmul.f32 0.5, %v2537_v4  ;;  %v2538_v38 = vadd.f32 1.0, %v3781_v14  ;;  %3792 = vtanh.f32 %v2352_v49  ;;  %v2936_v53 = vadd.f32 %v2830_v23, %v2829_v29  ;;  %v1811_v3 = vpop.f32.mrf.mxu0  ;;  %v5931_v23 = vld [vmem:[#allocation24_spill] sm:$0xff] }
 0x232   :  { %v2084_v2 = vpop.f32.mrf.mxu1  ;;  %v2539_v20 = vadd.f32 1.0, %v3783_v28  ;;  %3794 = vtanh.f32 %v2353_v50  ;;  %v2354_v55 = vmul.f32 0.5, %v2077_v15  ;;  %v2355_v45 = vmul.f32 0.5, %v2081_v33 }
 0x233   :  { %v5096_v43 = vmul.f32 0.5, %v2538_v38  ;;  %2937 = vadd.xlane.f32.xlu1 %v2936_v53  ;;  %v2831_v60 = vmul.f32 %v4977_v9, %v2723_v0  ;;  %v2832_v62 = vmul.f32 %v4985_v16, %v2724_v30  ;;  %v1810_v24 = vadd.f32 %v1809_v10, %v4900_v32  ;;  %v1813_v39 = vpop.f32.mrf.mxu0  ;;  %v5932_v53 = vld [vmem:[#allocation25_spill] sm:$0xff] }
 0x234   :  { %v2086_v37 = vpop.f32.mrf.mxu1  ;;  %v3785_v48 = vpop.eup %3784  ;;  %v5101_v56 = vmul.f32 0.5, %v2539_v20  ;;  %3796 = vtanh.f32 %v2354_v55  ;;  %v1812_v51 = vadd.f32 %v1811_v3, %v4889_v1  ;;  %v2725_v6 = vmul.f32 %v5930_v18, %v5074_v59  ;;  %v5933_v55 = vld [vmem:[#allocation26_spill] sm:$0xff] }
 0x235   :  { %v2540_v12 = vadd.f32 1.0, %v3785_v48  ;;  %3798 = vtanh.f32 %v2355_v45  ;;  %v2939_v29 = vadd.f32 %v2832_v62, %v2831_v60  ;;  %v2083_v36 = vadd.f32 %v2082_v54, %v1810_v24  ;;  %v1817_v41 = vpop.f32.mrf.mxu0 }
 0x236   :  { %v2090_v4 = vpop.f32.mrf.mxu1  ;;  %v3787_v49 = vpop.eup %3786  ;;  %v2085_v50 = vadd.f32 %v2084_v2, %v1812_v51  ;;  %v2726_v10 = vmul.f32 %v5931_v23, %v5077_v34  ;;  %v2833_v14 = vmul.f32 %v4977_v9, %v2725_v6  ;;  %v1814_v15 = vadd.f32 %v1813_v39, %v4900_v32 }
 0x237   :  { %v2636_v33 = vmul.f32 0.5, %v2540_v12  ;;  %v2541_v21 = vadd.f32 1.0, %v3787_v49  ;;  %2940 = vadd.xlane.f32.xlu0 %v2939_v29  ;;  %v2356_v0 = vmul.f32 0.5, %v2083_v36  ;;  %v1818_v59 = vadd.f32 %v1817_v41, %v4889_v1  ;;  %v1819_v11 = vpop.f32.mrf.mxu0 }
 0x238   :  { %v2092_v30 = vpop.f32.mrf.mxu1  ;;  %v2357_v54 = vmul.f32 0.5, %v2085_v50  ;;  %v2834_v28 = vmul.f32 %v4985_v16, %v2726_v10  ;;  %v2087_v38 = vadd.f32 %v2086_v37, %v1814_v15  ;;  %v2727_v3 = vmul.f32 %v5932_v53, %v5082_v17  ;;  %v5934_v50 = vld [vmem:[#allocation27_spill] sm:$0xff] }
 0x239   :  { %v3789_v34 = vpop.eup %3788  ;;  %v5114_v2 = vmul.f32 0.5, %v2541_v21  ;;  %3800 = vtanh.f32 %v2356_v0  ;;  %v2091_v20 = vadd.f32 %v2090_v4, %v1818_v59  ;;  %v2728_v45 = vmul.f32 %v5933_v55, %v5085_v40  ;;  %v1821_v60 = vpop.f32.mrf.mxu0  ;;  %v5935_v59 = vld [vmem:[#allocation28_spill] sm:$0xff] }
 0x23a   :  { %v2094_v62 = vpop.f32.mrf.mxu1  ;;  %v3791_v24 = vpop.eup %3790  ;;  %v2542_v39 = vadd.f32 1.0, %v3789_v34  ;;  %3802 = vtanh.f32 %v2357_v54  ;;  %v2942_v48 = vadd.f32 %v2834_v28, %v2833_v14  ;;  %v2358_v51 = vmul.f32 0.5, %v2087_v38  ;;  %v5936_v34 = vld [vmem:[#allocation29_spill] sm:$0xff] }
 0x23b   :  { %v2543_v18 = vadd.f32 1.0, %v3791_v24  ;;  %v2359_v37 = vmul.f32 0.5, %v2091_v20  ;;  %v2835_v6 = vmul.f32 %v4977_v9, %v2727_v3  ;;  %v2836_v17 = vmul.f32 %v4985_v16, %v2728_v45  ;;  %v1823_v12 = vpop.f32.mrf.mxu0 }
 0x23c   :  { %v2096_v29 = vpop.f32.mrf.mxu1  ;;  %v2638_v36 = vmul.f32 0.5, %v2542_v39  ;;  %2943 = vadd.xlane.f32.xlu1 %v2942_v48  ;;  %3804 = vtanh.f32 %v2358_v51  ;;  %v1820_v40 = vadd.f32 %v1819_v11, %v4900_v32  ;;  %v1822_v41 = vadd.f32 %v1821_v60, %v4889_v1  ;;  %v5937_v51 = vld [vmem:[#allocation30_spill] sm:$0xff] }
 0x23d   :  { %v5122_v4 = vmul.f32 0.5, %v2543_v18  ;;  %3806 = vtanh.f32 %v2359_v37  ;;  %v2945_v49 = vadd.f32 %v2836_v17, %v2835_v6  ;;  %v2729_v23 = vmul.f32 %v5934_v50, %v5094_v31  ;;  %v1827_v10 = vpop.f32.mrf.mxu0 }
 0x23e   :  { %v2100_v14 = vpop.f32.mrf.mxu1  ;;  %v3793_v15 = vpop.eup %3792  ;;  %v2093_v21 = vadd.f32 %v2092_v30, %v1820_v40  ;;  %v2095_v0 = vadd.f32 %v2094_v62, %v1822_v41  ;;  %v2730_v54 = vmul.f32 %v5935_v59, %v5096_v43  ;;  %v1824_v28 = vadd.f32 %v1823_v12, %v4900_v32  ;;  %v5938_v59 = vld [vmem:[#allocation31_spill] sm:$0xff] }
 0x23f   :  { %v3795_v11 = vpop.eup %3794  ;;  %v2544_v38 = vadd.f32 1.0, %v3793_v15  ;;  %2946 = vadd.xlane.f32.xlu0 %v2945_v49  ;;  %v2837_v53 = vmul.f32 %v4977_v9, %v2729_v23  ;;  %v1828_v3 = vadd.f32 %v1827_v10, %v4889_v1  ;;  %v2731_v31 = vmul.f32 %v5936_v34, %v5101_v56  ;;  %v1829_v20 = vpop.f32.mrf.mxu0  ;;  %v5939_v34 = vld [vmem:[#allocation32_spill] sm:$0xff] }
 0x240   :  { %v2102_v55 = vpop.f32.mrf.mxu1  ;;  %v2545_v45 = vadd.f32 1.0, %v3795_v11  ;;  %v2360_v30 = vmul.f32 0.5, %v2093_v21  ;;  %v2361_v60 = vmul.f32 0.5, %v2095_v0  ;;  %v2838_v62 = vmul.f32 %v4985_v16, %v2730_v54 }
 0x241   :  { %v3797_v43 = vpop.eup %3796  ;;  %v5134_v24 = vmul.f32 0.5, %v2544_v38  ;;  %v2097_v39 = vadd.f32 %v2096_v29, %v1824_v28  ;;  %v2101_v48 = vadd.f32 %v2100_v14, %v1828_v3  ;;  %v2732_v18 = vmul.f32 %v5937_v51, %v2636_v33  ;;  %v1831_v37 = vpop.f32.mrf.mxu0 }
 0x242   :  { %v2104_v6 = vpop.f32.mrf.mxu1  ;;  %v3799_v17 = vpop.eup %3798  ;;  %v5137_v12 = vmul.f32 0.5, %v2545_v45  ;;  %v2546_v56 = vadd.f32 1.0, %v3797_v43  ;;  %3808 = vtanh.f32 %v2360_v30  ;;  %v2948_v40 = vadd.f32 %v2838_v62, %v2837_v53 }
 0x243   :  { %v2547_v41 = vadd.f32 1.0, %v3799_v17  ;;  %3810 = vtanh.f32 %v2361_v60  ;;  %v2362_v49 = vmul.f32 0.5, %v2097_v39  ;;  %v2363_v50 = vmul.f32 0.5, %v2101_v48  ;;  %v1833_v23 = vpop.f32.mrf.mxu0 }
 0x244   :  { %v2106_v10 = vpop.f32.mrf.mxu1  ;;  %v2642_v15 = vmul.f32 0.5, %v2546_v56  ;;  %2949 = vadd.xlane.f32.xlu1 %v2948_v40  ;;  %v2839_v29 = vmul.f32 %v4977_v9, %v2731_v31  ;;  %v2840_v33 = vmul.f32 %v4985_v16, %v2732_v18  ;;  %v1830_v14 = vadd.f32 %v1829_v20, %v4900_v32 }
 0x245   :  { %v5142_v21 = vmul.f32 0.5, %v2547_v41  ;;  %3812 = vtanh.f32 %v2362_v49  ;;  %v1832_v0 = vadd.f32 %v1831_v37, %v4889_v1  ;;  %v2733_v54 = vmul.f32 %v5938_v59, %v5114_v2  ;;  %v1837_v28 = vpop.f32.mrf.mxu0 }
 0x246   :  { %v2110_v11 = vpop.f32.mrf.mxu1  ;;  %v3801_v38 = vpop.eup %3800  ;;  %3814 = vtanh.f32 %v2363_v50  ;;  %v2951_v53 = vadd.f32 %v2840_v33, %v2839_v29  ;;  %v2103_v3 = vadd.f32 %v2102_v55, %v1830_v14  ;;  %v2734_v31 = vmul.f32 %v5939_v34, %v2638_v36 }
 0x247   :  { %v3803_v45 = vpop.eup %3802  ;;  %v2548_v30 = vadd.f32 1.0, %v3801_v38  ;;  %v2105_v60 = vadd.f32 %v2104_v6, %v1832_v0  ;;  %v2841_v20 = vmul.f32 %v4977_v9, %v2733_v54  ;;  %v1834_v62 = vadd.f32 %v1833_v23, %v4900_v32  ;;  %v1839_v43 = vpop.f32.mrf.mxu0  ;;  %v5940_v6 = vld [vmem:[#allocation33_spill] sm:$0xff] }
 0x248   :  { %v2112_v39 = vpop.f32.mrf.mxu1  ;;  %v2549_v48 = vadd.f32 1.0, %v3803_v45  ;;  %2952 = vadd.xlane.f32.xlu0 %v2951_v53  ;;  %v2364_v2 = vmul.f32 0.5, %v2103_v3  ;;  %v2842_v51 = vmul.f32 %v4985_v16, %v2734_v31  ;;  %v1838_v18 = vadd.f32 %v1837_v28, %v4889_v1 }
 0x249   :  { %v3805_v37 = vpop.eup %3804  ;;  %v5152_v55 = vmul.f32 0.5, %v2548_v30  ;;  %v2365_v36 = vmul.f32 0.5, %v2105_v60  ;;  %v2107_v17 = vadd.f32 %v2106_v10, %v1834_v62  ;;  %v2735_v56 = vmul.f32 %v5940_v6, %v5122_v4  ;;  %v1841_v40 = vpop.f32.mrf.mxu0  ;;  %v5941_v10 = vld [vmem:[#allocation34_spill] sm:$0xff]  ;;  %v5942_v62 = vld [vmem:[#allocation35_spill] sm:$0xff] }
 0x24a   :  { %v2114_v41 = vpop.f32.mrf.mxu1  ;;  %v3807_v49 = vpop.eup %3806  ;;  %v5156_v50 = vmul.f32 0.5, %v2549_v48  ;;  %v2550_v23 = vadd.f32 1.0, %v3805_v37  ;;  %3816 = vtanh.f32 %v2364_v2  ;;  %v2954_v29 = vadd.f32 %v2842_v51, %v2841_v20 }
 0x24b   :  { %v2551_v33 = vadd.f32 1.0, %v3807_v49  ;;  %3818 = vtanh.f32 %v2365_v36  ;;  %v2366_v14 = vmul.f32 0.5, %v2107_v17  ;;  %v2111_v0 = vadd.f32 %v2110_v11, %v1838_v18  ;;  %v1843_v59 = vpop.f32.mrf.mxu0 }
 0x24c   :  { %v2116_v54 = vpop.f32.mrf.mxu1  ;;  %v5158_v28 = vmul.f32 0.5, %v2550_v23  ;;  %2955 = vadd.xlane.f32.xlu1 %v2954_v29  ;;  %v2736_v4 = vmul.f32 %v5941_v10, %v5134_v24  ;;  %v2843_v38 = vmul.f32 %v4977_v9, %v2735_v56  ;;  %v1840_v53 = vadd.f32 %v1839_v43, %v4900_v32 }
 0x24d   :  { %v5164_v3 = vmul.f32 0.5, %v2551_v33  ;;  %3820 = vtanh.f32 %v2366_v14  ;;  %v2367_v34 = vmul.f32 0.5, %v2111_v0  ;;  %v1842_v31 = vadd.f32 %v1841_v40, %v4889_v1  ;;  %v1847_v45 = vpop.f32.mrf.mxu0 }
 0x24e   :  { %v2120_v11 = vpop.f32.mrf.mxu1  ;;  %v2844_v30 = vmul.f32 %v4985_v16, %v2736_v4  ;;  %v2113_v60 = vadd.f32 %v2112_v39, %v1840_v53  ;;  %v2737_v20 = vmul.f32 %v4757_v13, %v5137_v12  ;;  %v2738_v24 = vmul.f32 %v5942_v62, %v2642_v15 }
 0x24f   :  { %v3809_v48 = vpop.eup %3808  ;;  %3822 = vtanh.f32 %v2367_v34  ;;  %v2115_v2 = vadd.f32 %v2114_v41, %v1842_v31  ;;  %v1844_v43 = vadd.f32 %v1843_v59, %v4900_v32  ;;  %v1848_v51 = vadd.f32 %v1847_v45, %v4889_v1  ;;  %v1849_v18 = vpop.f32.mrf.mxu0  ;;  %v5943_v45 = vld [vmem:[#allocation36_spill] sm:$0xff] }
 0x250   :  { %v2122_v37 = vpop.f32.mrf.mxu1  ;;  %v3811_v36 = vpop.eup %3810  ;;  %v2552_v17 = vadd.f32 1.0, %v3809_v48  ;;  %v2957_v6 = vadd.f32 %v2844_v30, %v2843_v38  ;;  %v2368_v56 = vmul.f32 0.5, %v2113_v60  ;;  %v2845_v39 = vmul.f32 %v4977_v9, %v2737_v20 }
 0x251   :  { %v2553_v40 = vadd.f32 1.0, %v3811_v36  ;;  %v2369_v49 = vmul.f32 0.5, %v2115_v2  ;;  %v2846_v13 = vmul.f32 %v4985_v16, %v2738_v24  ;;  %v2117_v12 = vadd.f32 %v2116_v54, %v1844_v43  ;;  %v1851_v15 = vpop.f32.mrf.mxu0  ;;  %v5944_v2 = vld [vmem:[#allocation37_spill] sm:$0xff] }
 0x252   :  { %v2124_v23 = vpop.f32.mrf.mxu1  ;;  %v3813_v41 = vpop.eup %3812  ;;  %v2648_v29 = vmul.f32 0.5, %v2552_v17  ;;  %2958 = vadd.xlane.f32.xlu0 %v2957_v6  ;;  %3824 = vtanh.f32 %v2368_v56  ;;  %v2121_v33 = vadd.f32 %v2120_v11, %v1848_v51  ;;  %v2739_v14 = vmul.f32 %v4766_v58, %v5142_v21 }
 0x253   :  { %v3815_v0 = vpop.eup %3814  ;;  %v5177_v59 = vmul.f32 0.5, %v2553_v40  ;;  %v2554_v10 = vadd.f32 1.0, %v3813_v41  ;;  %3826 = vtanh.f32 %v2369_v49  ;;  %v2960_v4 = vadd.f32 %v2846_v13, %v2845_v39  ;;  %v1853_v38 = vpop.f32.mrf.mxu0 }
 0x254   :  { %v2126_v53 = vpop.f32.mrf.mxu1  ;;  %v2555_v34 = vadd.f32 1.0, %v3815_v0  ;;  %v2370_v54 = vmul.f32 0.5, %v2117_v12  ;;  %v2371_v31 = vmul.f32 0.5, %v2121_v33  ;;  %v2740_v30 = vmul.f32 %v5943_v45, %v5152_v55 }
 0x255   :  { %v2650_v60 = vmul.f32 0.5, %v2554_v10  ;;  %2961 = vadd.xlane.f32.xlu1 %v2960_v4  ;;  %v2847_v11 = vmul.f32 %v4977_v9, %v2739_v14  ;;  %v1850_v58 = vadd.f32 %v1849_v18, %v4900_v32  ;;  %v1852_v21 = vadd.f32 %v1851_v15, %v4889_v1  ;;  %v1857_v20 = vpop.f32.mrf.mxu0 }
 0x256   :  { %v2130_v62 = vpop.f32.mrf.mxu1  ;;  %v5184_v24 = vmul.f32 0.5, %v2555_v34  ;;  %3828 = vtanh.f32 %v2370_v54  ;;  %v2848_v48 = vmul.f32 %v4985_v16, %v2740_v30  ;;  %v2741_v43 = vmul.f32 %v5944_v2, %v5156_v50 }
 0x257   :  { %v3817_v51 = vpop.eup %3816  ;;  %3830 = vtanh.f32 %v2371_v31  ;;  %v2123_v55 = vadd.f32 %v2122_v37, %v1850_v58  ;;  %v2125_v36 = vadd.f32 %v2124_v23, %v1852_v21  ;;  %v2742_v17 = vmul.f32 %v4780_v35, %v5158_v28  ;;  %v1859_v18 = vpop.f32.mrf.mxu0 }
 0x258   :  { %v2132_v6 = vpop.f32.mrf.mxu1  ;;  %v3819_v56 = vpop.eup %3818  ;;  %v2556_v39 = vadd.f32 1.0, %v3817_v51  ;;  %v2963_v40 = vadd.f32 %v2848_v48, %v2847_v11  ;;  %v2849_v49 = vmul.f32 %v4977_v9, %v2741_v43  ;;  %v1854_v13 = vadd.f32 %v1853_v38, %v4900_v32  ;;  %v5945_v11 = vld [vmem:[#allocation38_spill] sm:$0xff] }
 0x259   :  { %v2557_v12 = vadd.f32 1.0, %v3819_v56  ;;  %v2372_v15 = vmul.f32 0.5, %v2123_v55  ;;  %v2373_v41 = vmul.f32 0.5, %v2125_v36  ;;  %v2850_v50 = vmul.f32 %v4985_v16, %v2742_v17  ;;  %v1861_v33 = vpop.f32.mrf.mxu0  ;;  %v5946_v17 = vld [vmem:[#allocation39_spill] sm:$0xff] }
 0x25a   :  { %v2134_v37 = vpop.f32.mrf.mxu1  ;;  %v3821_v23 = vpop.eup %3820  ;;  %v5194_v14 = vmul.f32 0.5, %v2556_v39  ;;  %2964 = vadd.xlane.f32.xlu0 %v2963_v40  ;;  %v2127_v35 = vadd.f32 %v2126_v53, %v1854_v13  ;;  %v1858_v28 = vadd.f32 %v1857_v20, %v4889_v1  ;;  %v2743_v0 = vmul.f32 %v4788_v22, %v5164_v3 }
 0x25b   :  { %v5199_v10 = vmul.f32 0.5, %v2557_v12  ;;  %v2558_v4 = vadd.f32 1.0, %v3821_v23  ;;  %3832 = vtanh.f32 %v2372_v15  ;;  %v2966_v38 = vadd.f32 %v2850_v50, %v2849_v49  ;;  %v1863_v34 = vpop.f32.mrf.mxu0 }
 0x25c   :  { %v2136_v54 = vpop.f32.mrf.mxu1  ;;  %v3823_v31 = vpop.eup %3822  ;;  %3834 = vtanh.f32 %v2373_v41  ;;  %v2374_v45 = vmul.f32 0.5, %v2127_v35  ;;  %v2131_v30 = vadd.f32 %v2130_v62, %v1858_v28  ;;  %v2744_v58 = vmul.f32 %v5945_v11, %v2648_v29 }
 0x25d   :  { %v5202_v21 = vmul.f32 0.5, %v2558_v4  ;;  %v2559_v53 = vadd.f32 1.0, %v3823_v31  ;;  %2967 = vadd.xlane.f32.xlu1 %v2966_v38  ;;  %v2851_v20 = vmul.f32 %v4977_v9, %v2743_v0  ;;  %v1860_v22 = vadd.f32 %v1859_v18, %v4900_v32  ;;  %v1867_v3 = vpop.f32.mrf.mxu0 }
 0x25e   :  { %v2140_v48 = vpop.f32.mrf.mxu1  ;;  %3836 = vtanh.f32 %v2374_v45  ;;  %v2375_v2 = vmul.f32 0.5, %v2131_v30  ;;  %v2852_v43 = vmul.f32 %v4985_v16, %v2744_v58  ;;  %v1862_v51 = vadd.f32 %v1861_v33, %v4889_v1 }
 0x25f   :  { %v3825_v55 = vpop.eup %3824  ;;  %v5208_v62 = vmul.f32 0.5, %v2559_v53  ;;  %v2133_v29 = vadd.f32 %v2132_v6, %v1860_v22  ;;  %v2745_v36 = vmul.f32 %v4797_v52, %v5177_v59  ;;  %v2746_v56 = vmul.f32 %v5946_v17, %v2650_v60  ;;  %v1869_v39 = vpop.f32.mrf.mxu0 }
 0x260   :  { %v2142_v40 = vpop.f32.mrf.mxu1  ;;  %v3827_v18 = vpop.eup %3826  ;;  %v2560_v49 = vadd.f32 1.0, %v3825_v55  ;;  %3838 = vtanh.f32 %v2375_v2  ;;  %v2969_v13 = vadd.f32 %v2852_v43, %v2851_v20  ;;  %v2135_v12 = vadd.f32 %v2134_v37, %v1862_v51 }
 0x261   :  { %v2561_v15 = vadd.f32 1.0, %v3827_v18  ;;  %v2376_v41 = vmul.f32 0.5, %v2133_v29  ;;  %v2853_v50 = vmul.f32 %v4977_v9, %v2745_v36  ;;  %v2854_v33 = vmul.f32 %v4985_v16, %v2746_v56  ;;  %v1871_v23 = vpop.f32.mrf.mxu0  ;;  %v5948_v36 = vld [vmem:[#allocation41_spill] sm:$0xff] }
 0x262   :  { %v2144_v6 = vpop.f32.mrf.mxu1  ;;  %v5215_v35 = vmul.f32 0.5, %v2560_v49  ;;  %2970 = vadd.xlane.f32.xlu0 %v2969_v13  ;;  %v2377_v52 = vmul.f32 0.5, %v2135_v12  ;;  %v1864_v59 = vadd.f32 %v1863_v34, %v4900_v32  ;;  %v1868_v60 = vadd.f32 %v1867_v3, %v4889_v1  ;;  %v5947_v34 = vld [vmem:[#allocation40_spill] sm:$0xff] }
 0x263   :  { %v3829_v28 = vpop.eup %3828  ;;  %v5219_v0 = vmul.f32 0.5, %v2561_v15  ;;  %3840 = vtanh.f32 %v2376_v41  ;;  %v2972_v37 = vadd.f32 %v2854_v33, %v2853_v50  ;;  %v2747_v4 = vmul.f32 %v4806_v7, %v5184_v24  ;;  %v1873_v38 = vpop.f32.mrf.mxu0 }
 0x264   :  { %v2146_v31 = vpop.f32.mrf.mxu1  ;;  %v3831_v45 = vpop.eup %3830  ;;  %v2562_v30 = vadd.f32 1.0, %v3829_v28  ;;  %3842 = vtanh.f32 %v2377_v52  ;;  %v2137_v11 = vadd.f32 %v2136_v54, %v1864_v59  ;;  %v2141_v58 = vadd.f32 %v2140_v48, %v1868_v60 }
 0x265   :  { %v2563_v53 = vadd.f32 1.0, %v3831_v45  ;;  %2973 = vadd.xlane.f32.xlu1 %v2972_v37  ;;  %v2748_v20 = vmul.f32 %v5947_v34, %v5194_v14  ;;  %v2855_v22 = vmul.f32 %v4977_v9, %v2747_v4  ;;  %v1870_v3 = vadd.f32 %v1869_v39, %v4900_v32  ;;  %v1877_v2 = vpop.f32.mrf.mxu0  ;;  %v5949_v34 = vld [vmem:[#allocation42_spill] sm:$0xff] }
 0x266   :  { %v2150_v43 = vpop.f32.mrf.mxu1  ;;  %v5227_v51 = vmul.f32 0.5, %v2562_v30  ;;  %v2378_v7 = vmul.f32 0.5, %v2137_v11  ;;  %v2379_v24 = vmul.f32 0.5, %v2141_v58  ;;  %v1872_v55 = vadd.f32 %v1871_v23, %v4889_v1 }
 0x267   :  { %v5230_v29 = vmul.f32 0.5, %v2563_v53  ;;  %v2856_v54 = vmul.f32 %v4985_v16, %v2748_v20  ;;  %v2143_v48 = vadd.f32 %v2142_v40, %v1870_v3  ;;  %v2749_v14 = vmul.f32 %v5948_v36, %v5199_v10  ;;  %v1879_v17 = vpop.f32.mrf.mxu0 }
 0x268   :  { %v2152_v56 = vpop.f32.mrf.mxu1  ;;  %v3833_v18 = vpop.eup %3832  ;;  %3844 = vtanh.f32 %v2378_v7  ;;  %v2145_v39 = vadd.f32 %v2144_v6, %v1872_v55  ;;  %v2750_v49 = vmul.f32 %v4820_v47, %v5202_v21  ;;  %v1874_v13 = vadd.f32 %v1873_v38, %v4900_v32 }
 0x269   :  { %v3835_v12 = vpop.eup %3834  ;;  %v2564_v15 = vadd.f32 1.0, %v3833_v18  ;;  %3846 = vtanh.f32 %v2379_v24  ;;  %v2975_v41 = vadd.f32 %v2856_v54, %v2855_v22  ;;  %v2380_v50 = vmul.f32 0.5, %v2143_v48  ;;  %v1881_v33 = vpop.f32.mrf.mxu0 }
 0x26a   :  { %v2154_v40 = vpop.f32.mrf.mxu1  ;;  %v2565_v23 = vadd.f32 1.0, %v3835_v12  ;;  %v2381_v52 = vmul.f32 0.5, %v2145_v39  ;;  %v2857_v10 = vmul.f32 %v4977_v9, %v2749_v14  ;;  %v2858_v59 = vmul.f32 %v4985_v16, %v2750_v49 }
 0x26b   :  { %v3837_v60 = vpop.eup %3836  ;;  %v2660_v6 = vmul.f32 0.5, %v2564_v15  ;;  %2976 = vadd.xlane.f32.xlu0 %v2975_v41  ;;  %3848 = vtanh.f32 %v2380_v50  ;;  %v2147_v47 = vadd.f32 %v2146_v31, %v1874_v13  ;;  %v1878_v21 = vadd.f32 %v1877_v2, %v4889_v1  ;;  %v1883_v28 = vpop.f32.mrf.mxu0  ;;  %v5950_v13 = vld [vmem:[#allocation9_spill] sm:$0xff] }
 0x26c   :  { %v2156_v37 = vpop.f32.mrf.mxu1  ;;  %v5241_v4 = vmul.f32 0.5, %v2565_v23  ;;  %v2566_v38 = vadd.f32 1.0, %v3837_v60  ;;  %3850 = vtanh.f32 %v2381_v52  ;;  %v2978_v45 = vadd.f32 %v2858_v59, %v2857_v10 }
 0x26d   :  { %v3839_v30 = vpop.eup %3838  ;;  %v2382_v11 = vmul.f32 0.5, %v2147_v47  ;;  %v2151_v58 = vadd.f32 %v2150_v43, %v1878_v21  ;;  %v2751_v53 = vmul.f32 %v4828_v5, %v5208_v62  ;;  %v2752_v20 = vmul.f32 %v5949_v34, %v5215_v35  ;;  %v1887_v22 = vpop.f32.mrf.mxu0  ;;  %v5952_v21 = vld [vmem:[#allocation11_spill] sm:$0xff] }
 0x26e   :  { %v2160_v31 = vpop.f32.mrf.mxu1  ;;  %v5247_v3 = vmul.f32 0.5, %v2566_v38  ;;  %v2567_v2 = vadd.f32 1.0, %v3839_v30  ;;  %2979 = vadd.xlane.f32.xlu1 %v2978_v45  ;;  %v1880_v7 = vadd.f32 %v1879_v17, %v4900_v32  ;;  %v1882_v24 = vadd.f32 %v1881_v33, %v4889_v1 }
 0x26f   :  { %3852 = vtanh.f32 %v2382_v11  ;;  %v2383_v55 = vmul.f32 0.5, %v2151_v58  ;;  %v2859_v43 = vmul.f32 %v4977_v9, %v2751_v53  ;;  %v2860_v54 = vmul.f32 %v4985_v16, %v2752_v20  ;;  %v1889_v5 = vpop.f32.mrf.mxu0 }
 0x270   :  { %v2162_v62 = vpop.f32.mrf.mxu1  ;;  %v3841_v48 = vpop.eup %3840  ;;  %v5253_v35 = vmul.f32 0.5, %v2567_v2  ;;  %v2153_v36 = vadd.f32 %v2152_v56, %v1880_v7  ;;  %v2155_v14 = vadd.f32 %v2154_v40, %v1882_v24  ;;  %v2753_v18 = vmul.f32 %v4837_v25, %v5219_v0 }
 0x271   :  { %v3843_v39 = vpop.eup %3842  ;;  %v2568_v17 = vadd.f32 1.0, %v3841_v48  ;;  %3854 = vtanh.f32 %v2383_v55  ;;  %v2981_v49 = vadd.f32 %v2860_v54, %v2859_v43  ;;  %v2754_v12 = vmul.f32 %v5950_v13, %v5227_v51  ;;  %v1891_v15 = vpop.f32.mrf.mxu0  ;;  %v5951_v51 = vld [vmem:[#allocation10_spill] sm:$0xff] }
 0x272   :  { %v2164_v41 = vpop.f32.mrf.mxu1  ;;  %v2569_v50 = vadd.f32 1.0, %v3843_v39  ;;  %v2384_v33 = vmul.f32 0.5, %v2153_v36  ;;  %v2385_v23 = vmul.f32 0.5, %v2155_v14  ;;  %v2861_v52 = vmul.f32 %v4977_v9, %v2753_v18  ;;  %v5953_v14 = vld [vmem:[#allocation43_spill] sm:$0xff] }
 0x273   :  { %v5260_v10 = vmul.f32 0.5, %v2568_v17  ;;  %2982 = vadd.xlane.f32.xlu0 %v2981_v49  ;;  %v2862_v56 = vmul.f32 %v4985_v16, %v2754_v12  ;;  %v1884_v25 = vadd.f32 %v1883_v28, %v4900_v32  ;;  %v1888_v0 = vadd.f32 %v1887_v22, %v4889_v1  ;;  %v1893_v40 = vpop.f32.mrf.mxu0 }
 0x274   :  { %v2166_v59 = vpop.f32.mrf.mxu1  ;;  %v5265_v60 = vmul.f32 0.5, %v2569_v50  ;;  %3856 = vtanh.f32 %v2384_v33  ;;  %v2755_v47 = vmul.f32 %v5951_v51, %v5230_v29  ;;  %v2756_v38 = vmul.f32 %v5952_v21, %v2660_v6 }
 0x275   :  { %v3845_v45 = vpop.eup %3844  ;;  %3858 = vtanh.f32 %v2385_v23  ;;  %v2984_v30 = vadd.f32 %v2862_v56, %v2861_v52  ;;  %v2157_v11 = vadd.f32 %v2156_v37, %v1884_v25  ;;  %v2161_v58 = vadd.f32 %v2160_v31, %v1888_v0  ;;  %v1897_v53 = vpop.f32.mrf.mxu0 }
 0x276   :  { %v2170_v34 = vpop.f32.mrf.mxu1  ;;  %v3847_v28 = vpop.eup %3846  ;;  %v2570_v20 = vadd.f32 1.0, %v3845_v45  ;;  %v2863_v22 = vmul.f32 %v4977_v9, %v2755_v47  ;;  %v2864_v2 = vmul.f32 %v4985_v16, %v2756_v38  ;;  %v1890_v7 = vadd.f32 %v1889_v5, %v4900_v32 }
 0x277   :  { %v2571_v24 = vadd.f32 1.0, %v3847_v28  ;;  %2985 = vadd.xlane.f32.xlu1 %v2984_v30  ;;  %v2386_v29 = vmul.f32 0.5, %v2157_v11  ;;  %v2387_v55 = vmul.f32 0.5, %v2161_v58  ;;  %v1892_v6 = vadd.f32 %v1891_v15, %v4889_v1  ;;  %v1899_v43 = vpop.f32.mrf.mxu0  ;;  %v5955_v28 = vld [vmem:[#allocation12_spill] sm:$0xff] }
 0x278   :  { %v2172_v54 = vpop.f32.mrf.mxu1  ;;  %v3849_v37 = vpop.eup %3848  ;;  %v2666_v31 = vmul.f32 0.5, %v2570_v20  ;;  %v2987_v48 = vadd.f32 %v2864_v2, %v2863_v22  ;;  %v2163_v36 = vadd.f32 %v2162_v62, %v1890_v7  ;;  %v2757_v18 = vmul.f32 %v5953_v14, %v5241_v4 }
 0x279   :  { %v3851_v39 = vpop.eup %3850  ;;  %v5276_v17 = vmul.f32 0.5, %v2571_v24  ;;  %v2572_v49 = vadd.f32 1.0, %v3849_v37  ;;  %3860 = vtanh.f32 %v2386_v29  ;;  %v2165_v5 = vadd.f32 %v2164_v41, %v1892_v6  ;;  %v1901_v13 = vpop.f32.mrf.mxu0 }
 0x27a   :  { %v2174_v12 = vpop.f32.mrf.mxu1  ;;  %v2573_v50 = vadd.f32 1.0, %v3851_v39  ;;  %3862 = vtanh.f32 %v2387_v55  ;;  %2988 = vadd.xlane.f32.xlu0 %v2987_v48  ;;  %v2388_v15 = vmul.f32 0.5, %v2163_v36  ;;  %v2758_v33 = vmul.f32 %v4860_v63, %v5247_v3  ;;  %v5954_v3 = vld [vmem:[#allocation44_spill] sm:$0xff] }
 0x27b   :  { %v5280_v23 = vmul.f32 0.5, %v2572_v49  ;;  %v2389_v62 = vmul.f32 0.5, %v2165_v5  ;;  %v2865_v4 = vmul.f32 %v4977_v9, %v2757_v18  ;;  %v1894_v52 = vadd.f32 %v1893_v40, %v4900_v32  ;;  %v1903_v56 = vpop.f32.mrf.mxu0 }
 0x27c   :  { %v2176_v25 = vpop.f32.mrf.mxu1  ;;  %v3853_v0 = vpop.eup %3852  ;;  %v5284_v41 = vmul.f32 0.5, %v2573_v50  ;;  %3864 = vtanh.f32 %v2388_v15  ;;  %v2866_v51 = vmul.f32 %v4985_v16, %v2758_v33  ;;  %v1898_v47 = vadd.f32 %v1897_v53, %v4889_v1 }
 0x27d   :  { %v2574_v21 = vadd.f32 1.0, %v3853_v0  ;;  %3866 = vtanh.f32 %v2389_v62  ;;  %v2167_v63 = vadd.f32 %v2166_v59, %v1894_v52  ;;  %v2759_v38 = vmul.f32 %v5954_v3, %v5253_v35  ;;  %v1907_v45 = vpop.f32.mrf.mxu0 }
 0x27e   :  { %v2180_v30 = vpop.f32.mrf.mxu1  ;;  %v3855_v11 = vpop.eup %3854  ;;  %v2990_v40 = vadd.f32 %v2866_v51, %v2865_v4  ;;  %v2171_v58 = vadd.f32 %v2170_v34, %v1898_v47  ;;  %v2760_v20 = vmul.f32 %v5955_v28, %v5260_v10  ;;  %v1900_v22 = vadd.f32 %v1899_v43, %v4900_v32  ;;  %v5956_v10 = vld [vmem:[#allocation45_spill] sm:$0xff]  ;;  %v5957_v47 = vld [vmem:[#allocation46_spill] sm:$0xff] }
 0x27f   :  { %v5293_v2 = vmul.f32 0.5, %v2574_v21  ;;  %v2575_v7 = vadd.f32 1.0, %v3855_v11  ;;  %v2390_v53 = vmul.f32 0.5, %v2167_v63  ;;  %v2867_v24 = vmul.f32 %v4977_v9, %v2759_v38  ;;  %v1909_v59 = vpop.f32.mrf.mxu0 }
 0x280   :  { %v2182_v29 = vpop.f32.mrf.mxu1  ;;  %2991 = vadd.xlane.f32.xlu1 %v2990_v40  ;;  %v2391_v35 = vmul.f32 0.5, %v2171_v58  ;;  %v2868_v55 = vmul.f32 %v4985_v16, %v2760_v20  ;;  %v2173_v6 = vadd.f32 %v2172_v54, %v1900_v22  ;;  %v1902_v34 = vadd.f32 %v1901_v13, %v4889_v1 }
 0x281   :  { %v3857_v37 = vpop.eup %3856  ;;  %v5298_v48 = vmul.f32 0.5, %v2575_v7  ;;  %3868 = vtanh.f32 %v2390_v53  ;;  %v2761_v43 = vmul.f32 %v5956_v10, %v5265_v60  ;;  %v2762_v36 = vmul.f32 %v4880_v19, %v2666_v31  ;;  %v1911_v14 = vpop.f32.mrf.mxu0 }
 0x282   :  { %v2184_v18 = vpop.f32.mrf.mxu1  ;;  %v3859_v39 = vpop.eup %3858  ;;  %v2576_v49 = vadd.f32 1.0, %v3857_v37  ;;  %3870 = vtanh.f32 %v2391_v35  ;;  %v2993_v5 = vadd.f32 %v2868_v55, %v2867_v24  ;;  %v2392_v50 = vmul.f32 0.5, %v2173_v6 }
 0x283   :  { %v2577_v15 = vadd.f32 1.0, %v3859_v39  ;;  %v2175_v54 = vadd.f32 %v2174_v12, %v1902_v34  ;;  %v2869_v13 = vmul.f32 %v4977_v9, %v2761_v43  ;;  %v2870_v33 = vmul.f32 %v4985_v16, %v2762_v36  ;;  %v1913_v62 = vpop.f32.mrf.mxu0 }
 0x284   :  { %v2186_v4 = vpop.f32.mrf.mxu1  ;;  %v2672_v52 = vmul.f32 0.5, %v2576_v49  ;;  %2994 = vadd.xlane.f32.xlu0 %v2993_v5  ;;  %3872 = vtanh.f32 %v2392_v50  ;;  %v1904_v19 = vadd.f32 %v1903_v56, %v4900_v32  ;;  %v1908_v60 = vadd.f32 %v1907_v45, %v4889_v1 }
 0x285   :  { %v5307_v31 = vmul.f32 0.5, %v2577_v15  ;;  %v2393_v0 = vmul.f32 0.5, %v2175_v54  ;;  %v2996_v51 = vadd.f32 %v2870_v33, %v2869_v13  ;;  %v2763_v12 = vmul.f32 %v5957_v47, %v5276_v17  ;;  %v1917_v21 = vpop.f32.mrf.mxu0  ;;  %v5958_v13 = vld [vmem:[#allocation13_spill] sm:$0xff] }
 0x286   :  { %v2190_v63 = vpop.f32.mrf.mxu1  ;;  %v3861_v3 = vpop.eup %3860  ;;  %v2177_v38 = vadd.f32 %v2176_v25, %v1904_v19  ;;  %v2181_v11 = vadd.f32 %v2180_v30, %v1908_v60  ;;  %v2764_v40 = vmul.f32 %v4894_v61, %v5280_v23  ;;  %v1910_v58 = vadd.f32 %v1909_v59, %v4900_v32 }
 0x287   :  { %v3863_v56 = vpop.eup %3862  ;;  %v2578_v28 = vadd.f32 1.0, %v3861_v3  ;;  %3874 = vtanh.f32 %v2393_v0  ;;  %2997 = vadd.xlane.f32.xlu1 %v2996_v51  ;;  %v2871_v45 = vmul.f32 %v4977_v9, %v2763_v12  ;;  %v1912_v20 = vadd.f32 %v1911_v14, %v4889_v1  ;;  %v1919_v22 = vpop.f32.mrf.mxu0  ;;  %v5959_v51 = vld [vmem:[#allocation14_spill] sm:$0xff] }
 0x288   :  { %v2192_v17 = vpop.f32.mrf.mxu1  ;;  %v2579_v7 = vadd.f32 1.0, %v3863_v56  ;;  %v2394_v53 = vmul.f32 0.5, %v2177_v38  ;;  %v2395_v24 = vmul.f32 0.5, %v2181_v11  ;;  %v2872_v25 = vmul.f32 %v4985_v16, %v2764_v40  ;;  %v2905_v50 = vpop.xlane.xlu0 %2904 }
 0x289   :  { %v3865_v30 = vpop.eup %3864  ;;  %v5317_v35 = vmul.f32 0.5, %v2578_v28  ;;  %v2183_v61 = vadd.f32 %v2182_v29, %v1910_v58  ;;  %v2185_v23 = vadd.f32 %v2184_v18, %v1912_v20  ;;  %v2765_v59 = vmul.f32 %v4902_v46, %v5284_v41  ;;  %v1921_v55 = vpop.f32.mrf.mxu0 }
 0x28a   :  { %v5321_v6 = vpop.f32.mrf.mxu1  ;;  %v3867_v34 = vpop.eup %3866  ;;  %v5323_v37 = vmul.f32 0.5, %v2579_v7  ;;  %v2580_v10 = vadd.f32 1.0, %v3865_v30  ;;  %3876 = vtanh.f32 %v2394_v53  ;;  %v2999_v43 = vadd.f32 %v2872_v25, %v2871_v45 }
 0x28b   :  { %v2581_v36 = vadd.f32 1.0, %v3867_v34  ;;  %3878 = vtanh.f32 %v2395_v24  ;;  %v2396_v14 = vmul.f32 0.5, %v2183_v61  ;;  %v2397_v39 = vmul.f32 0.5, %v2185_v23  ;;  %v1923_v49 = vpop.f32.mrf.mxu0  ;;  %v5960_v34 = vld [vmem:[#allocation15_spill] sm:$0xff] }
 0x28c   :  { %v5325_v5 = vpop.f32.mrf.mxu1  ;;  %v5327_v29 = vmul.f32 0.5, %v2580_v10  ;;  %3000 = vadd.xlane.f32.xlu0 %v2999_v43  ;;  %v2766_v46 = vmul.f32 %v4905_v42, %v5293_v2  ;;  %v2873_v41 = vmul.f32 %v4977_v9, %v2765_v59  ;;  %v1914_v18 = vadd.f32 %v1913_v62, %v4900_v32  ;;  %v2908_v61 = vpop.xlane.xlu0 %2907  ;;  %v5961_v43 = vld [vmem:[#allocation47_spill] sm:$0xff] }
 0x28d   :  { %v5333_v15 = vmul.f32 0.5, %v2581_v36  ;;  %3880 = vtanh.f32 %v2396_v14  ;;  %v1918_v54 = vadd.f32 %v1917_v21, %v4889_v1  ;;  %v2767_v33 = vmul.f32 %v5958_v13, %v5298_v48  ;;  %v1927_v19 = vpop.f32.mrf.mxu0 }
 0x28e   :  { %v5338_v60 = vpop.f32.mrf.mxu1  ;;  %v3869_v0 = vpop.eup %3868  ;;  %3882 = vtanh.f32 %v2397_v39  ;;  %v2874_v42 = vmul.f32 %v4985_v16, %v2766_v46  ;;  %v2187_v2 = vadd.f32 %v2186_v4, %v1914_v18  ;;  %v2768_v47 = vmul.f32 %v5959_v51, %v2672_v52 }
 0x28f   :  { %v3871_v62 = vpop.eup %3870  ;;  %v2582_v12 = vadd.f32 1.0, %v3869_v0  ;;  %v2191_v3 = vadd.f32 %v2190_v63, %v1918_v54  ;;  %v2875_v38 = vmul.f32 %v4977_v9, %v2767_v33  ;;  %v1920_v21 = vadd.f32 %v1919_v22, %v4900_v32  ;;  %v1929_v11 = vpop.f32.mrf.mxu0 }
 0x290   :  { %v2583_v40 = vadd.f32 1.0, %v3871_v62  ;;  %v3002_v48 = vadd.f32 %v2874_v42, %v2873_v41  ;;  %v2398_v58 = vmul.f32 0.5, %v2187_v2  ;;  %v2876_v56 = vmul.f32 %v4985_v16, %v2768_v47  ;;  %v2202_v63 = vpop.f32.mrf.mxu1 }
 0x291   :  { %v3873_v28 = vpop.eup %3872  ;;  %v5345_v45 = vmul.f32 0.5, %v2582_v12  ;;  %v2399_v20 = vmul.f32 0.5, %v2191_v3  ;;  %v2193_v4 = vadd.f32 %v2192_v17, %v1920_v21  ;;  %v5350_v52 = vstv %s5697_s4  ;;  %v1931_v24 = vpop.f32.mrf.mxu0 }
 0x292   :  { %v5352_v7 = vmul.f32 0.5, %v2583_v40  ;;  %v2584_v22 = vadd.f32 1.0, %v3873_v28  ;;  %3003 = vadd.xlane.f32.xlu1 %v3002_v48  ;;  %3884 = vtanh.f32 %v2398_v58  ;;  %v3005_v53 = vadd.f32 %v2876_v56, %v2875_v38  ;;  %v2204_v41 = vpop.f32.mrf.mxu1  ;;  %v2911_v42 = vpop.xlane.xlu1 %2910 }
 0x293   :  { %3886 = vtanh.f32 %v2399_v20  ;;  %v2400_v25 = vmul.f32 0.5, %v2193_v4  ;;  %v3049_v30 = vadd.f32 %v5350_v52, %v2905_v50  ;;  %v1922_v59 = vadd.f32 %v1921_v55, %v4889_v1  ;;  %v1933_v13 = vpop.f32.mrf.mxu0 }
 0x294   :  { %v3875_v17 = vpop.eup %3874  ;;  %v5355_v23 = vmul.f32 0.5, %v2584_v22  ;;  %3006 = vadd.xlane.f32.xlu0 %v3005_v53  ;;  %v2769_v10 = vmul.f32 %v5960_v34, %v5307_v31  ;;  %v2770_v36 = vmul.f32 %v5961_v43, %v5317_v35  ;;  %v1924_v46 = vadd.f32 %v1923_v49, %v4900_v32  ;;  %v2206_v48 = vpop.f32.mrf.mxu1 }
 0x295   :  { %v2585_v14 = vadd.f32 1.0, %v3875_v17  ;;  %3888 = vtanh.f32 %v2400_v25  ;;  %v3097_v39 = vmax.f32 %v3049_v30, 0.0  ;;  %v2195_v18 = vadd.f32 %v5321_v6, %v1922_v59  ;;  %v5962_v6 = vld [vmem:[#allocation48_spill] sm:$0xff]  ;;  %v1937_v56 = vpop.f32.mrf.mxu0 }
 0x296   :  { %v2877_v50 = vmul.f32 %v4977_v9, %v2769_v10  ;;  %v2878_v54 = vmul.f32 %v4985_v16, %v2770_v36  ;;  %v3050_v55 = vadd.f32 %v5350_v52, %v2908_v61  ;;  %v2197_v35 = vadd.f32 %v5325_v5, %v1924_v46  ;;  %v2914_v17 = vpop.xlane.xlu1 %2913  ;;  %v2210_v59 = vpop.f32.mrf.mxu1 }
 0x297   :  { %v3877_v33 = vpop.eup %3876  ;;  %v5367_v31 = vmul.f32 0.5, %v2585_v14  ;;  %3146 = vst.msk [vmem:[%s5698_s5] sm:$0xff] %vm3145_vm0, %v3097_v39  ;;  %v1928_v49 = vadd.f32 %v1927_v19, %v4889_v1  ;;  %v2771_v0 = vmul.f32 %v5962_v6, %v5323_v37  ;;  %v2401_v47 = vmul.f32 0.5, %v2195_v18  ;;  %v1939_v14 = vpop.f32.mrf.mxu0 }
 0x298   :  { %v3879_v2 = vpop.eup %3878  ;;  %v2586_v51 = vadd.f32 1.0, %v3877_v33  ;;  %v3008_v62 = vadd.f32 %v2878_v54, %v2877_v50  ;;  %v3098_v12 = vmax.f32 %v3050_v55, 0.0  ;;  %v2402_v38 = vmul.f32 0.5, %v2197_v35  ;;  %v2212_v35 = vpop.f32.mrf.mxu1 }
 0x299   :  { %v2587_v3 = vadd.f32 1.0, %v3879_v2  ;;  %v2201_v21 = vadd.f32 %v5338_v60, %v1928_v49  ;;  %v2772_v40 = vmul.f32 %v4928_v57, %v5327_v29  ;;  %3890 = vtanh.f32 %v2401_v47  ;;  %v1941_v47 = vpop.f32.mrf.mxu0 }
 0x29a   :  { %v3881_v5 = vpop.eup %3880  ;;  %v5380_v58 = vmul.f32 0.5, %v2586_v51  ;;  %3009 = vadd.xlane.f32.xlu1 %v3008_v62  ;;  %3147 = vst.msk [vmem:[%s5698_s5 + $0x8] sm:$0xff] %vm3145_vm0, %v3098_v12  ;;  %v2879_v37 = vmul.f32 %v4977_v9, %v2771_v0  ;;  %v1930_v19 = vadd.f32 %v1929_v11, %v4900_v32  ;;  %3892 = vtanh.f32 %v2402_v38  ;;  %v5963_v11 = vld [vmem:[#allocation49_spill] sm:$0xff] }
 0x29b   :  { %v3883_v60 = vpop.eup %3882  ;;  %v5388_v28 = vmul.f32 0.5, %v2587_v3  ;;  %v2588_v57 = vadd.f32 1.0, %v3881_v5  ;;  %v2403_v29 = vmul.f32 0.5, %v2201_v21  ;;  %v2880_v4 = vmul.f32 %v4985_v16, %v2772_v40  ;;  %v5965_v40 = vld [vmem:[#allocation51_spill] sm:$0xff] }
 0x29c   :  { %v2589_v20 = vadd.f32 1.0, %v3883_v60  ;;  %v2203_v22 = vadd.f32 %v2202_v63, %v1930_v19  ;;  %v3051_v53 = vadd.f32 %v5350_v52, %v2911_v42  ;;  %v1932_v30 = vadd.f32 %v1931_v24, %v4889_v1  ;;  %v5964_v42 = vld [vmem:[#allocation50_spill] sm:$0xff] }
 0x29d   :  { %v5392_v25 = vmul.f32 0.5, %v2588_v57  ;;  %3894 = vtanh.f32 %v2403_v29  ;;  %v2773_v61 = vmul.f32 %v5963_v11, %v5333_v15  ;;  %v3011_v10 = vadd.f32 %v2880_v4, %v2879_v37  ;;  %v2917_v51 = vpop.xlane.xlu0 %2916  ;;  %v2214_v57 = vpop.f32.mrf.mxu1  ;;  %v5966_v29 = vld [vmem:[#allocation52_spill] sm:$0xff] }
 0x29e   :  { %v5397_v34 = vmul.f32 0.5, %v2589_v20  ;;  %v2404_v43 = vmul.f32 0.5, %v2203_v22  ;;  %v3099_v36 = vmax.f32 %v3051_v53, 0.0  ;;  %v2205_v63 = vadd.f32 %v2204_v41, %v1932_v30  ;;  %v1943_v22 = vpop.f32.mrf.mxu0 }
 0x29f   :  { %v3885_v39 = vpop.eup %3884  ;;  %v2774_v46 = vmul.f32 %v4934_v27, %v5345_v45  ;;  %v2881_v18 = vmul.f32 %v4977_v9, %v2773_v61  ;;  %v1934_v24 = vadd.f32 %v1933_v13, %v4900_v32  ;;  %3012 = vadd.xlane.f32.xlu0 %v3011_v10  ;;  %v3052_v15 = vadd.f32 %v5350_v52, %v2914_v17 }
 0x2a0   :  { %v3887_v50 = vpop.eup %3886  ;;  %v2590_v54 = vadd.f32 1.0, %v3885_v39  ;;  %3896 = vtanh.f32 %v2404_v43  ;;  %3148 = vst.msk [vmem:[%s5698_s5 + $0x10] sm:$0xff] %vm3145_vm0, %v3099_v36  ;;  %v1938_v41 = vadd.f32 %v1937_v56, %v4889_v1  ;;  %v2405_v33 = vmul.f32 0.5, %v2205_v63  ;;  %v2920_v17 = vpop.xlane.xlu1 %2919 }
 0x2a1   :  { %v2591_v55 = vadd.f32 1.0, %v3887_v50  ;;  %v2882_v27 = vmul.f32 %v4985_v16, %v2774_v46  ;;  %v2207_v45 = vadd.f32 %v2206_v48, %v1934_v24  ;;  %v3100_v6 = vmax.f32 %v3052_v15, 0.0  ;;  %v2216_v24 = vpop.f32.mrf.mxu1 }
 0x2a2   :  { %v3889_v13 = vpop.eup %3888  ;;  %v5410_v49 = vmul.f32 0.5, %v2590_v54  ;;  %v2211_v0 = vadd.f32 %v2210_v59, %v1938_v41  ;;  %v2775_v2 = vmul.f32 %v5964_v42, %v5352_v7  ;;  %3898 = vtanh.f32 %v2405_v33  ;;  %v5968_v54 = vld [vmem:[#allocation54_spill] sm:$0xff] }
 0x2a3   :  { %v5414_v62 = vmul.f32 0.5, %v2591_v55  ;;  %v2592_v12 = vadd.f32 1.0, %v3889_v13  ;;  %v3014_v3 = vadd.f32 %v2882_v27, %v2881_v18  ;;  %v2406_v38 = vmul.f32 0.5, %v2207_v45  ;;  %3149 = vst.msk [vmem:[%s5698_s5 + $0x18] sm:$0xff] %vm3145_vm0, %v3100_v6 }
 0x2a4   :  { %v2407_v21 = vmul.f32 0.5, %v2211_v0  ;;  %v2776_v48 = vmul.f32 %v5965_v40, %v5355_v23  ;;  %v2883_v5 = vmul.f32 %v4977_v9, %v2775_v2  ;;  %v1940_v37 = vadd.f32 %v1939_v14, %v4900_v32  ;;  %v5967_v23 = vld [vmem:[#allocation53_spill] sm:$0xff] }
 0x2a5   :  { %v5423_v7 = vmul.f32 0.5, %v2592_v12  ;;  %3015 = vadd.xlane.f32.xlu1 %v3014_v3  ;;  %v3053_v19 = vadd.f32 %v5350_v52, %v2917_v51  ;;  %v1942_v56 = vadd.f32 %v1941_v47, %v4889_v1  ;;  %3900 = vtanh.f32 %v2406_v38  ;;  %v2923_v41 = vpop.xlane.xlu0 %2922 }
 0x2a6   :  { %v2884_v60 = vmul.f32 %v4985_v16, %v2776_v48  ;;  %v2777_v20 = vmul.f32 %v5966_v29, %v5367_v31  ;;  %v2778_v4 = vmul.f32 %v5967_v23, %v5380_v58  ;;  %v3891_v53 = vpop.eup %3890  ;;  %3902 = vtanh.f32 %v2407_v21 }
 0x2a7   :  { %v2213_v30 = vadd.f32 %v2212_v35, %v1940_v37  ;;  %v3101_v11 = vmax.f32 %v3053_v19, 0.0  ;;  %v2215_v61 = vadd.f32 %v2214_v57, %v1942_v56  ;;  %v3893_v59 = vpop.eup %3892  ;;  %v2593_v10 = vadd.f32 1.0, %v3891_v53  ;;  %v5974_v53 = vld [vmem:[#allocation60_spill] sm:$0xff] }
 0x2a8   :  { %v3017_v1 = vadd.f32 %v2884_v60, %v2883_v5  ;;  %v2885_v43 = vmul.f32 %v4977_v9, %v2777_v20  ;;  %v2886_v36 = vmul.f32 %v4985_v16, %v2778_v4  ;;  %v2594_v14 = vadd.f32 1.0, %v3893_v59  ;;  %v5972_v5 = vld [vmem:[#allocation58_spill] sm:$0xff] }
 0x2a9   :  { %v2408_v39 = vmul.f32 0.5, %v2213_v30  ;;  %3150 = vst.msk [vmem:[%s5698_s5 + $0x20] sm:$0xff] %vm3145_vm0, %v3101_v11  ;;  %v2409_v31 = vmul.f32 0.5, %v2215_v61  ;;  %v1944_v58 = vadd.f32 %v1943_v22, %v4900_v32  ;;  %v2689_v46 = vmul.f32 0.5, %v2593_v10  ;;  %v5969_v32 = vld [vmem:[#allocation55_spill] sm:$0xff]  ;;  %v5975_v11 = vld [vmem:[#allocation61_spill] sm:$0xff] }
 0x2aa   :  { %v3895_v63 = vpop.eup %3894  ;;  %3018 = vadd.xlane.f32.xlu0 %v3017_v1  ;;  %v3020_v18 = vadd.f32 %v2886_v36, %v2885_v43  ;;  %v3054_v50 = vadd.f32 %v5350_v52, %v2920_v17  ;;  %v2779_v15 = vmul.f32 %v5968_v54, %v5388_v28  ;;  %v2690_v55 = vmul.f32 0.5, %v2594_v14  ;;  %v2926_v45 = vpop.xlane.xlu1 %2925  ;;  %v5970_v28 = vld [vmem:[#allocation56_spill] sm:$0xff]  ;;  %v5976_v17 = vld [vmem:[#allocation62_spill] sm:$0xff]  ;;  %v5977_v36 = vld [vmem:[#allocation63_spill] sm:$0xff] }
 0x2ab   :  { %v2595_v33 = vadd.f32 1.0, %v3895_v63  ;;  %3904 = vtanh.f32 %v2408_v39  ;;  %v2217_v27 = vadd.f32 %v2216_v24, %v1944_v58  ;;  %v2780_v13 = vmul.f32 %v5969_v32, %v5392_v25  ;;  %v5971_v25 = vld [vmem:[#allocation57_spill] sm:$0xff] }
 0x2ac   :  { %3906 = vtanh.f32 %v2409_v31  ;;  %3021 = vadd.xlane.f32.xlu1 %v3020_v18  ;;  %v3102_v35 = vmax.f32 %v3054_v50, 0.0  ;;  %v2887_v6 = vmul.f32 %v4977_v9, %v2779_v15  ;;  %v3055_v51 = vadd.f32 %v5350_v52, %v2923_v41 }
 0x2ad   :  { %v3897_v0 = vpop.eup %3896  ;;  %v2691_v42 = vmul.f32 0.5, %v2595_v33  ;;  %v2410_v2 = vmul.f32 0.5, %v2217_v27  ;;  %v2781_v47 = vmul.f32 %v5970_v28, %v5397_v34  ;;  %v2888_v3 = vmul.f32 %v4985_v16, %v2780_v13  ;;  %v5978_v33 = vld [vmem:[#allocation64_spill] sm:$0xff] }
 0x2ae   :  { %v2596_v12 = vadd.f32 1.0, %v3897_v0  ;;  %3151 = vst.msk [vmem:[%s5698_s5 + $0x28] sm:$0xff] %vm3145_vm0, %v3102_v35  ;;  %v2782_v38 = vmul.f32 %v5971_v25, %v5410_v49  ;;  %v3056_v21 = vadd.f32 %v5350_v52, %v2926_v45  ;;  %v3103_v40 = vmax.f32 %v3055_v51, 0.0  ;;  %v5973_v49 = vld [vmem:[#allocation59_spill] sm:$0xff]  ;;  %v5979_v25 = vld [vmem:[#allocation65_spill] sm:$0xff] }
 0x2af   :  { %3908 = vtanh.f32 %v2410_v2  ;;  %v2889_v48 = vmul.f32 %v4977_v9, %v2781_v47  ;;  %v2783_v34 = vmul.f32 %v5972_v5, %v5414_v62  ;;  %v2929_v37 = vpop.xlane.xlu0 %2928  ;;  %v3899_v19 = vpop.eup %3898  ;;  %v3023_v60 = vadd.f32 %v2888_v3, %v2887_v6 }
 0x2b0   :  { %v2692_v56 = vmul.f32 0.5, %v2596_v12  ;;  %v2890_v57 = vmul.f32 %v4985_v16, %v2782_v38  ;;  %v3104_v29 = vmax.f32 %v3056_v21, 0.0  ;;  %v2597_v20 = vadd.f32 1.0, %v3899_v19  ;;  %3152 = vst.msk [vmem:[%s5698_s5 + $0x30] sm:$0xff] %vm3145_vm0, %v3103_v40  ;;  %v5980_v19 = vld [vmem:[#allocation66_spill] sm:$0xff] }
 0x2b1   :  { %v2784_v23 = vmul.f32 %v5973_v49, %v5423_v7  ;;  %v2891_v4 = vmul.f32 %v4977_v9, %v2783_v34  ;;  %v3057_v62 = vadd.f32 %v5350_v52, %v2929_v37  ;;  %3024 = vadd.xlane.f32.xlu0 %v3023_v60  ;;  %v2785_v30 = vmul.f32 %v5974_v53, %v2689_v46 }
 0x2b2   :  { %v3026_v22 = vadd.f32 %v2890_v57, %v2889_v48  ;;  %3153 = vst.msk [vmem:[%s5698_s5 + $0x38] sm:$0xff] %vm3145_vm0, %v3104_v29  ;;  %v2786_v61 = vmul.f32 %v5975_v11, %v2690_v55  ;;  %v2787_v59 = vmul.f32 %v5976_v17, %v2691_v42  ;;  %v3901_v10 = vpop.eup %3900  ;;  %v2693_v1 = vmul.f32 0.5, %v2597_v20 }
 0x2b3   :  { %v2892_v7 = vmul.f32 %v4985_v16, %v2784_v23  ;;  %v3105_v43 = vmax.f32 %v3057_v62, 0.0  ;;  %v2788_v14 = vmul.f32 %v5977_v36, %v2692_v56  ;;  %v3903_v39 = vpop.eup %3902  ;;  %v2598_v31 = vadd.f32 1.0, %v3901_v10 }
 0x2b4   :  { %3027 = vadd.xlane.f32.xlu1 %v3026_v22  ;;  %v2893_v58 = vmul.f32 %v4977_v9, %v2785_v30  ;;  %v2894_v63 = vmul.f32 %v4985_v16, %v2786_v61  ;;  %v2932_v18 = vpop.xlane.xlu1 %2931  ;;  %v2895_v46 = vmul.f32 %v4977_v9, %v2787_v59  ;;  %v2599_v24 = vadd.f32 1.0, %v3903_v39 }
 0x2b5   :  { %v3029_v50 = vadd.f32 %v2892_v7, %v2891_v4  ;;  %3154 = vst.msk [vmem:[%s5698_s5 + $0x40] sm:$0xff] %vm3145_vm0, %v3105_v43  ;;  %v3058_v54 = vadd.f32 %v5350_v52, %v2932_v18  ;;  %v2896_v15 = vmul.f32 %v4985_v16, %v2788_v14  ;;  %v2694_v41 = vmul.f32 0.5, %v2598_v31 }
 0x2b6   :  { %v3032_v55 = vadd.f32 %v2894_v63, %v2893_v58  ;;  %v2789_v27 = vmul.f32 %v5978_v33, %v2693_v1  ;;  %v2695_v45 = vmul.f32 0.5, %v2599_v24 }
 0x2b7   :  { %3030 = vadd.xlane.f32.xlu0 %v3029_v50  ;;  %v3106_v35 = vmax.f32 %v3058_v54, 0.0  ;;  %v3035_v32 = vadd.f32 %v2896_v15, %v2895_v46  ;;  %v2935_v13 = vpop.xlane.xlu0 %2934  ;;  %v2790_v42 = vmul.f32 %v5002_v8, %v2694_v41 }
 0x2b8   :  { %v3905_v6 = vpop.eup %3904  ;;  %3033 = vadd.xlane.f32.xlu1 %v3032_v55  ;;  %v3059_v0 = vadd.f32 %v5350_v52, %v2935_v13  ;;  %v2897_v28 = vmul.f32 %v4977_v9, %v2789_v27  ;;  %v2791_v38 = vmul.f32 %v5979_v25, %v2695_v45 }
 0x2b9   :  { %v3907_v2 = vpop.eup %3906  ;;  %v2600_v51 = vadd.f32 1.0, %v3905_v6  ;;  %3155 = vst.msk [vmem:[%s5698_s5 + $0x48] sm:$0xff] %vm3145_vm0, %v3106_v35  ;;  %v2898_v3 = vmul.f32 %v4985_v16, %v2790_v42 }
 0x2ba   :  { %v2601_v47 = vadd.f32 1.0, %v3907_v2  ;;  %v3107_v12 = vmax.f32 %v3059_v0, 0.0  ;;  %v2899_v60 = vmul.f32 %v4977_v9, %v2791_v38 }
 0x2bb   :  { %v2696_v21 = vmul.f32 0.5, %v2600_v51  ;;  %3036 = vadd.xlane.f32.xlu0 %v3035_v32  ;;  %v3038_v8 = vadd.f32 %v2898_v3, %v2897_v28 }
 0x2bc   :  { %v3909_v40 = vpop.eup %3908  ;;  %v2697_v48 = vmul.f32 0.5, %v2601_v47  ;;  %3156 = vst.msk [vmem:[%s5698_s5 + $0x50] sm:$0xff] %vm3145_vm0, %v3107_v12  ;;  %v2938_v5 = vpop.xlane.xlu1 %2937 }
 0x2bd   :  { %v2602_v34 = vadd.f32 1.0, %v3909_v40  ;;  %v3060_v37 = vadd.f32 %v5350_v52, %v2938_v5  ;;  %v2792_v56 = vmul.f32 %v5980_v19, %v2696_v21  ;;  %3039 = vadd.xlane.f32.xlu1 %v3038_v8 }
 0x2be   :  { %v2793_v49 = vmul.f32 %v5015_v26, %v2697_v48 }
 0x2bf   :  { %v2698_v57 = vmul.f32 0.5, %v2602_v34  ;;  %v3108_v29 = vmax.f32 %v3060_v37, 0.0  ;;  %v2900_v20 = vmul.f32 %v4985_v16, %v2792_v56 }
 0x2c0   :  { %v2941_v23 = vpop.xlane.xlu0 %2940  ;;  %v2901_v30 = vmul.f32 %v4977_v9, %v2793_v49 }
 0x2c1   :  { %3157 = vst.msk [vmem:[%s5698_s5 + $0x58] sm:$0xff] %vm3145_vm0, %v3108_v29  ;;  %v3041_v4 = vadd.f32 %v2900_v20, %v2899_v60  ;;  %v3061_v62 = vadd.f32 %v5350_v52, %v2941_v23  ;;  %v2794_v22 = vmul.f32 %v5020_v44, %v2698_v57 }
 0x2c3   :  { %3042 = vadd.xlane.f32.xlu0 %v3041_v4  ;;  %v3109_v53 = vmax.f32 %v3061_v62, 0.0  ;;  %v2902_v11 = vmul.f32 %v4985_v16, %v2794_v22 }
 0x2c5   :  { %3158 = vst.msk [vmem:[%s5698_s5 + $0x60] sm:$0xff] %vm3145_vm0, %v3109_v53  ;;  %v3044_v26 = vadd.f32 %v2902_v11, %v2901_v30  ;;  %v2944_v61 = vpop.xlane.xlu1 %2943 }
 0x2c6   :  { %v3062_v17 = vadd.f32 %v5350_v52, %v2944_v61 }
 0x2c7   :  { %3045 = vadd.xlane.f32.xlu1 %v3044_v26 }
 0x2c8   :  { %v3110_v59 = vmax.f32 %v3062_v17, 0.0  ;;  %v2947_v10 = vpop.xlane.xlu0 %2946 }
 0x2c9   :  { %v3063_v44 = vadd.f32 %v5350_v52, %v2947_v10 }
 0x2ca   :  { %3159 = vst.msk [vmem:[%s5698_s5 + $0x68] sm:$0xff] %vm3145_vm0, %v3110_v59 }
 0x2cb   :  { %v3111_v9 = vmax.f32 %v3063_v44, 0.0 }
 0x2cd   :  { %3160 = vst.msk [vmem:[%s5698_s5 + $0x70] sm:$0xff] %vm3145_vm0, %v3111_v9  ;;  %v2950_v16 = vpop.xlane.xlu1 %2949 }
 0x2ce   :  { %v3064_v1 = vadd.f32 %v5350_v52, %v2950_v16 }
 0x2d0   :  { %v3112_v7 = vmax.f32 %v3064_v1, 0.0 }
 0x2d1   :  { %v2953_v43 = vpop.xlane.xlu0 %2952 }
 0x2d2   :  { %3161 = vst.msk [vmem:[%s5698_s5 + $0x78] sm:$0xff] %vm3145_vm0, %v3112_v7  ;;  %v3065_v36 = vadd.f32 %v5350_v52, %v2953_v43 }
 0x2d4   :  { %v3113_v14 = vmax.f32 %v3065_v36, 0.0 }
 0x2d5   :  { %v2956_v39 = vpop.xlane.xlu1 %2955 }
 0x2d6   :  { %3162 = vst.msk [vmem:[%s5698_s5 + $0x80] sm:$0xff] %vm3145_vm0, %v3113_v14  ;;  %v3066_v31 = vadd.f32 %v5350_v52, %v2956_v39 }
 0x2d8   :  { %v3114_v58 = vmax.f32 %v3066_v31, 0.0 }
 0x2da   :  { %3163 = vst.msk [vmem:[%s5698_s5 + $0x88] sm:$0xff] %vm3145_vm0, %v3114_v58 }
 0x2db   :  { %v2959_v63 = vpop.xlane.xlu0 %2958 }
 0x2dc   :  { %v3067_v18 = vadd.f32 %v5350_v52, %v2959_v63 }
 0x2de   :  { %v3115_v46 = vmax.f32 %v3067_v18, 0.0  ;;  %v2962_v24 = vpop.xlane.xlu1 %2961 }
 0x2df   :  { %v3068_v50 = vadd.f32 %v5350_v52, %v2962_v24 }
 0x2e0   :  { %3164 = vst.msk [vmem:[%s5698_s5 + $0x90] sm:$0xff] %vm3145_vm0, %v3115_v46 }
 0x2e1   :  { %v3116_v54 = vmax.f32 %v3068_v50, 0.0 }
 0x2e3   :  { %3165 = vst.msk [vmem:[%s5698_s5 + $0x98] sm:$0xff] %vm3145_vm0, %v3116_v54  ;;  %v2965_v15 = vpop.xlane.xlu0 %2964 }
 0x2e4   :  { %v3069_v41 = vadd.f32 %v5350_v52, %v2965_v15 }
 0x2e6   :  { %v3117_v55 = vmax.f32 %v3069_v41, 0.0  ;;  %v2968_v33 = vpop.xlane.xlu1 %2967 }
 0x2e7   :  { %v3070_v27 = vadd.f32 %v5350_v52, %v2968_v33 }
 0x2e8   :  { %3166 = vst.msk [vmem:[%s5698_s5 + $0xa0] sm:$0xff] %vm3145_vm0, %v3117_v55 }
 0x2e9   :  { %v3118_v45 = vmax.f32 %v3070_v27, 0.0 }
 0x2eb   :  { %3167 = vst.msk [vmem:[%s5698_s5 + $0xa8] sm:$0xff] %vm3145_vm0, %v3118_v45  ;;  %v2971_v35 = vpop.xlane.xlu0 %2970 }
 0x2ec   :  { %v3071_v32 = vadd.f32 %v5350_v52, %v2971_v35 }
 0x2ee   :  { %v3119_v13 = vmax.f32 %v3071_v32, 0.0  ;;  %v2974_v6 = vpop.xlane.xlu1 %2973 }
 0x2ef   :  { %v3072_v0 = vadd.f32 %v5350_v52, %v2974_v6 }
 0x2f0   :  { %3168 = vst.msk [vmem:[%s5698_s5 + $0xb0] sm:$0xff] %vm3145_vm0, %v3119_v13 }
 0x2f1   :  { %v3120_v42 = vmax.f32 %v3072_v0, 0.0 }
 0x2f3   :  { %3169 = vst.msk [vmem:[%s5698_s5 + $0xb8] sm:$0xff] %vm3145_vm0, %v3120_v42 }
 0x2f4   :  { %v2977_v2 = vpop.xlane.xlu0 %2976 }
 0x2f5   :  { %v3073_v51 = vadd.f32 %v5350_v52, %v2977_v2 }
 0x2f7   :  { %v3121_v28 = vmax.f32 %v3073_v51, 0.0  ;;  %v2980_v47 = vpop.xlane.xlu1 %2979 }
 0x2f8   :  { %v3074_v12 = vadd.f32 %v5350_v52, %v2980_v47 }
 0x2f9   :  { %3170 = vst.msk [vmem:[%s5698_s5 + $0xc0] sm:$0xff] %vm3145_vm0, %v3121_v28 }
 0x2fa   :  { %v3122_v3 = vmax.f32 %v3074_v12, 0.0 }
 0x2fc   :  { %3171 = vst.msk [vmem:[%s5698_s5 + $0xc8] sm:$0xff] %vm3145_vm0, %v3122_v3  ;;  %v2983_v25 = vpop.xlane.xlu0 %2982 }
 0x2fd   :  { %v3075_v38 = vadd.f32 %v5350_v52, %v2983_v25 }
 0x2ff   :  { %v3123_v21 = vmax.f32 %v3075_v38, 0.0 }
 0x300   :  { %v2986_v40 = vpop.xlane.xlu1 %2985 }
 0x301   :  { %3172 = vst.msk [vmem:[%s5698_s5 + $0xd0] sm:$0xff] %vm3145_vm0, %v3123_v21  ;;  %v3076_v48 = vadd.f32 %v5350_v52, %v2986_v40 }
 0x303   :  { %v3124_v8 = vmax.f32 %v3076_v48, 0.0  ;;  %v2989_v5 = vpop.xlane.xlu0 %2988 }
 0x304   :  { %v3077_v34 = vadd.f32 %v5350_v52, %v2989_v5 }
 0x305   :  { %3173 = vst.msk [vmem:[%s5698_s5 + $0xd8] sm:$0xff] %vm3145_vm0, %v3124_v8 }
 0x306   :  { %v3125_v37 = vmax.f32 %v3077_v34, 0.0 }
 0x308   :  { %3174 = vst.msk [vmem:[%s5698_s5 + $0xe0] sm:$0xff] %vm3145_vm0, %v3125_v37 }
 0x309   :  { %v2992_v19 = vpop.xlane.xlu1 %2991 }
 0x30a   :  { %v3078_v56 = vadd.f32 %v5350_v52, %v2992_v19 }
 0x30c   :  { %v3126_v60 = vmax.f32 %v3078_v56, 0.0 }
 0x30d   :  { %v2995_v57 = vpop.xlane.xlu0 %2994 }
 0x30e   :  { %3175 = vst.msk [vmem:[%s5698_s5 + $0xe8] sm:$0xff] %vm3145_vm0, %v3126_v60  ;;  %v3079_v29 = vadd.f32 %v5350_v52, %v2995_v57 }
 0x310   :  { %v3127_v20 = vmax.f32 %v3079_v29, 0.0  ;;  %v2998_v49 = vpop.xlane.xlu1 %2997 }
 0x311   :  { %v3080_v23 = vadd.f32 %v5350_v52, %v2998_v49 }
 0x312   :  { %3176 = vst.msk [vmem:[%s5698_s5 + $0xf0] sm:$0xff] %vm3145_vm0, %v3127_v20 }
 0x313   :  { %v3128_v4 = vmax.f32 %v3080_v23, 0.0 }
 0x315   :  { %3177 = vst.msk [vmem:[%s5698_s5 + $0xf8] sm:$0xff] %vm3145_vm0, %v3128_v4  ;;  %v3001_v62 = vpop.xlane.xlu0 %3000 }
 0x316   :  { %v3081_v22 = vadd.f32 %v5350_v52, %v3001_v62 }
 0x318   :  { %v3129_v53 = vmax.f32 %v3081_v22, 0.0 }
 0x31a   :  { %3178 = vst.msk [vmem:[%s5698_s5 + $0x100] sm:$0xff] %vm3145_vm0, %v3129_v53 }
 0x31b   :  { %v3004_v30 = vpop.xlane.xlu1 %3003 }
 0x31c   :  { %v3082_v11 = vadd.f32 %v5350_v52, %v3004_v30 }
 0x31d   :  { %v3007_v26 = vpop.xlane.xlu0 %3006 }
 0x31e   :  { %v3130_v61 = vmax.f32 %v3082_v11, 0.0  ;;  %v3083_v17 = vadd.f32 %v5350_v52, %v3007_v26 }
 0x320   :  { %3179 = vst.msk [vmem:[%s5698_s5 + $0x108] sm:$0xff] %vm3145_vm0, %v3130_v61  ;;  %v3131_v59 = vmax.f32 %v3083_v17, 0.0 }
 0x322   :  { %3180 = vst.msk [vmem:[%s5698_s5 + $0x110] sm:$0xff] %vm3145_vm0, %v3131_v59 }
 0x323   :  { %v3010_v10 = vpop.xlane.xlu1 %3009 }
 0x324   :  { %v3084_v44 = vadd.f32 %v5350_v52, %v3010_v10 }
 0x326   :  { %v3132_v9 = vmax.f32 %v3084_v44, 0.0 }
 0x328   :  { %3181 = vst.msk [vmem:[%s5698_s5 + $0x118] sm:$0xff] %vm3145_vm0, %v3132_v9  ;;  %v3013_v16 = vpop.xlane.xlu0 %3012 }
 0x329   :  { %v3085_v1 = vadd.f32 %v5350_v52, %v3013_v16 }
 0x32b   :  { %v3133_v7 = vmax.f32 %v3085_v1, 0.0 }
 0x32d   :  { %3182 = vst.msk [vmem:[%s5698_s5 + $0x120] sm:$0xff] %vm3145_vm0, %v3133_v7 }
 0x32e   :  { %v3016_v43 = vpop.xlane.xlu1 %3015 }
 0x32f   :  { %v3086_v36 = vadd.f32 %v5350_v52, %v3016_v43 }
 0x331   :  { %v3134_v14 = vmax.f32 %v3086_v36, 0.0 }
 0x333   :  { %3183 = vst.msk [vmem:[%s5698_s5 + $0x128] sm:$0xff] %vm3145_vm0, %v3134_v14  ;;  %v3019_v39 = vpop.xlane.xlu0 %3018 }
 0x334   :  { %v3087_v31 = vadd.f32 %v5350_v52, %v3019_v39 }
 0x335   :  { %v3022_v58 = vpop.xlane.xlu1 %3021 }
 0x336   :  { %v3135_v63 = vmax.f32 %v3087_v31, 0.0  ;;  %v3088_v18 = vadd.f32 %v5350_v52, %v3022_v58 }
 0x338   :  { %3184 = vst.msk [vmem:[%s5698_s5 + $0x130] sm:$0xff] %vm3145_vm0, %v3135_v63  ;;  %v3136_v46 = vmax.f32 %v3088_v18, 0.0 }
 0x33a   :  { %3185 = vst.msk [vmem:[%s5698_s5 + $0x138] sm:$0xff] %vm3145_vm0, %v3136_v46  ;;  %v3025_v24 = vpop.xlane.xlu0 %3024 }
 0x33b   :  { %v3089_v50 = vadd.f32 %v5350_v52, %v3025_v24 }
 0x33d   :  { %v3028_v54 = vpop.xlane.xlu1 %3027  ;;  %v3137_v15 = vmax.f32 %v3089_v50, 0.0 }
 0x33e   :  { %v3090_v41 = vadd.f32 %v5350_v52, %v3028_v54 }
 0x33f   :  { %3186 = vst.msk [vmem:[%s5698_s5 + $0x140] sm:$0xff] %vm3145_vm0, %v3137_v15 }
 0x340   :  { %v3138_v55 = vmax.f32 %v3090_v41, 0.0  ;;  %v3031_v33 = vpop.xlane.xlu0 %3030 }
 0x341   :  { %v3091_v27 = vadd.f32 %v5350_v52, %v3031_v33  ;;  %v3034_v45 = vpop.xlane.xlu1 %3033 }
 0x342   :  { %3187 = vst.msk [vmem:[%s5698_s5 + $0x148] sm:$0xff] %vm3145_vm0, %v3138_v55  ;;  %v3092_v35 = vadd.f32 %v5350_v52, %v3034_v45 }
 0x343   :  { %v3139_v32 = vmax.f32 %v3091_v27, 0.0 }
 0x344   :  { %v3140_v13 = vmax.f32 %v3092_v35, 0.0  ;;  %v3037_v6 = vpop.xlane.xlu0 %3036 }
 0x345   :  { %3188 = vst.msk [vmem:[%s5698_s5 + $0x150] sm:$0xff] %vm3145_vm0, %v3139_v32  ;;  %v3093_v0 = vadd.f32 %v5350_v52, %v3037_v6 }
 0x346   :  { %3189 = vst.msk [vmem:[%s5698_s5 + $0x158] sm:$0xff] %vm3145_vm0, %v3140_v13  ;;  %v3040_v2 = vpop.xlane.xlu1 %3039 }
 0x347   :  { %v3141_v42 = vmax.f32 %v3093_v0, 0.0  ;;  %v3094_v51 = vadd.f32 %v5350_v52, %v3040_v2 }
 0x349   :  { %3190 = vst.msk [vmem:[%s5698_s5 + $0x160] sm:$0xff] %vm3145_vm0, %v3141_v42  ;;  %v3142_v28 = vmax.f32 %v3094_v51, 0.0 }
 0x34b   :  { %3191 = vst.msk [vmem:[%s5698_s5 + $0x168] sm:$0xff] %vm3145_vm0, %v3142_v28 }
 0x34c   :  { %v3043_v47 = vpop.xlane.xlu0 %3042 }
 0x34d   :  { %v3095_v12 = vadd.f32 %v5350_v52, %v3043_v47 }
 0x34f   :  { %v3143_v3 = vmax.f32 %v3095_v12, 0.0 }
 0x350   :  { %v3046_v25 = vpop.xlane.xlu1 %3045 }
 0x351   :  { %3192 = vst.msk [vmem:[%s5698_s5 + $0x170] sm:$0xff] %vm3145_vm0, %v3143_v3  ;;  %v3096_v38 = vadd.f32 %v5350_v52, %v3046_v25 }
 0x353   :  { %v3144_v21 = vmax.f32 %v3096_v38, 0.0 }
 0x355   :  { %3193 = vst.msk [vmem:[%s5698_s5 + $0x178] sm:$0xff] %vm3145_vm0, %v3144_v21 }
 0x356   :  { %3198 = vsyncpa [#allocation4], 1 }
 0x357   :  { %3199 = vsyncpa [#allocation6], 1 }

</bundles_post_ra>
